<compile_context>
chip_gen: v6e
topology: v6e:2x2x1
jax: 0.10.0
libtpu: 0.0.40
codegen_flags: <defaults>
</compile_context>

<pallas_src>
import numpy as np
import jax
import jax.numpy as jnp
from jax.experimental import pallas as pl
from jax.experimental.pallas import tpu as pltpu

# ---- model hyperparameters (small, consistent with the module) ----
NUM_LAYERS = 4          # len(gconv_layers)
STEP_LAYER = 3
INPUT_DIM = 8
HIDDEN_DIM = 32
HEADS = 4
OUT_DIM = 32
HC = HIDDEN_DIM * HEADS  # 128 -> lane friendly

N_NODES = 16             # 2 graphs x 8 nodes
N_GRAPHS = 2


# -------------------------------------------------------------------------
# Single fused kernel: whole GAT_Res forward
# -------------------------------------------------------------------------
def gat_res_fused_kernel(x_ref, adj_ref, memb_ref, head_mask_ref,
                         wh_ref, ah_ref, bh_ref,
                         wl_ref, al_ref, bl_ref, gamma_ref, beta_ref,
                         wout_ref, bout_ref, out_ref):
    # Hoisted constants (shared by all 5 convolutions).
    adj = adj_ref[...]                                            # [N, N]
    mask_bias = jnp.where(adj > 0.0, 0.0, jnp.float32(-1e30))     # additive softmax mask
    head_mask = head_mask_ref[...]                                # [H, HC] block masks

    def gat_conv(x, w, a, b):
        # x: [N, Din], w: [Din, HC], a: [HC, 2H] (a_src | a_dst per head block), b: [1, HC]
        hp = jnp.dot(x, w, preferred_element_type=jnp.float32)    # [N, HC]  (MXU)
        s = jnp.dot(hp, a, preferred_element_type=jnp.float32)    # [N, 2H]  scores via MXU
        st = jnp.transpose(s)                                     # [2H, N]  (src rows)
        out = b                                                   # bias, broadcasts to [N, HC]
        for hd in range(HEADS):
            # e[i, j] = leaky_relu(a_dst[i] + a_src[j], 0.2) + mask_bias[i, j]
            e = s[:, HEADS + hd:HEADS + hd + 1] + st[hd:hd + 1, :]        # [N,1]+[1,N] -> [N,N]
            e = jnp.where(e > 0.0, e, 0.2 * e) + mask_bias
            e = e - jnp.max(e, axis=-1, keepdims=True)
            p = jnp.exp(e)                                        # masked entries underflow to 0
            attn = p * pl.reciprocal(jnp.sum(p, axis=-1, keepdims=True), approx=True)
            # full-width matmul on head-masked values writes straight into the [N, HC] layout
            out = out + jnp.dot(attn, hp * head_mask[hd:hd + 1, :],
                                preferred_element_type=jnp.float32)
        return out

    # head GATConv
    x = gat_conv(x_ref[...], wh_ref[...], ah_ref[...], bh_ref[...])

    # layer loop (statically unrolled; residual choice is static Python control flow)
    x_0 = x
    for i in range(NUM_LAYERS):
        if i % STEP_LAYER == 0:
            x_0 = x
        x_in = x
        y = gat_conv(x, wl_ref[i], al_ref[i], bl_ref[i])
        y = jnp.maximum(y, 0.0)                                   # relu after gconv
        if i != 0 and i != NUM_LAYERS - 1 and ((i + 1) % STEP_LAYER != 0):
            y = jnp.maximum(y + x_in, 0.0)
        elif (i != 0 and (i + 1) % STEP_LAYER == 0) or i == NUM_LAYERS - 1:
            y = jnp.maximum(y + x_0, 0.0)
        # BatchNorm1d, training-mode batch stats (biased variance), eps=1e-5
        mean = jnp.mean(y, axis=0, keepdims=True)
        var = jnp.mean((y - mean) * (y - mean), axis=0, keepdims=True)
        x = (y - mean) * jax.lax.rsqrt(var + 1e-5) * gamma_ref[i] + beta_ref[i]

    # global_mean_pool (membership matmul) + output Linear
    pooled = jnp.dot(memb_ref[...], x, preferred_element_type=jnp.float32)   # [G, HC]
    out_ref[...] = jnp.dot(pooled, wout_ref[...],
                           preferred_element_type=jnp.float32) + bout_ref[...]


def full_spec(shape):
    return pl.BlockSpec(shape, lambda i: (0,) * len(shape))


def gat_res_forward(x, adj, memb, head_mask, params):
    args = (x, adj, memb, head_mask,
            params["wh"], params["ah"], params["bh"],
            params["wl"], params["al"], params["bl"],
            params["gamma"], params["beta"],
            params["wout"], params["bout"])
    return pl.pallas_call(
        gat_res_fused_kernel,
        grid=(1,),
        in_specs=[full_spec(a.shape) for a in args],
        out_specs=full_spec((N_GRAPHS, OUT_DIM)),
        out_shape=jax.ShapeDtypeStruct((N_GRAPHS, OUT_DIM), jnp.float32),
        compiler_params=pltpu.CompilerParams(dimension_semantics=("arbitrary",)),
    )(*args)


# -------------------------------------------------------------------------
# Deterministic parameter / input construction (host-side, synthetic weights)
# -------------------------------------------------------------------------
def combine_attention(asrc, adst):
    # asrc, adst: [H, C] -> A: [HC, 2H] so that (h @ A)[:, hd] = a_src score of head hd
    # and (h @ A)[:, H + hd] = a_dst score of head hd.
    a = jnp.zeros((HC, 2 * HEADS), jnp.float32)
    for hd in range(HEADS):
        a = a.at[hd * HIDDEN_DIM:(hd + 1) * HIDDEN_DIM, hd].set(asrc[hd])
        a = a.at[hd * HIDDEN_DIM:(hd + 1) * HIDDEN_DIM, HEADS + hd].set(adst[hd])
    return a


def build_head_mask():
    hm = np.zeros((HEADS, HC), np.float32)
    for hd in range(HEADS):
        hm[hd, hd * HIDDEN_DIM:(hd + 1) * HIDDEN_DIM] = 1.0
    return jnp.asarray(hm)


def make_params(key):
    def gat_params(key, din):
        k1, k2, k3 = jax.random.split(key, 3)
        w = 0.2 * jax.random.normal(k1, (din, HC), jnp.float32)
        asrc = 0.2 * jax.random.normal(k2, (HEADS, HIDDEN_DIM), jnp.float32)
        adst = 0.2 * jax.random.normal(k3, (HEADS, HIDDEN_DIM), jnp.float32)
        return w, combine_attention(asrc, adst), jnp.zeros((1, HC), jnp.float32)

    keys = jax.random.split(key, NUM_LAYERS + 3)
    wh, ah, bh = gat_params(keys[0], INPUT_DIM)
    wl, al, bl = [], [], []
    for i in range(NUM_LAYERS):
        w, a, b = gat_params(keys[1 + i], HC)
        wl.append(w); al.append(a); bl.append(b)
    return {
        "wh": wh, "ah": ah, "bh": bh,
        "wl": jnp.stack(wl), "al": jnp.stack(al), "bl": jnp.stack(bl),
        "gamma": jnp.ones((NUM_LAYERS, 1, HC), jnp.float32),
        "beta": jnp.zeros((NUM_LAYERS, 1, HC), jnp.float32),
        "wout": 0.2 * jax.random.normal(keys[-2], (HC, OUT_DIM), jnp.float32),
        "bout": 0.01 * jax.random.normal(keys[-1], (1, OUT_DIM), jnp.float32),
    }


def build_graph():
    # 2 ring graphs of 8 nodes each; edges stored as (src, dst)
    edges = []
    nodes_per_graph = N_NODES // N_GRAPHS
    for g in range(N_GRAPHS):
        base = g * nodes_per_graph
        for u in range(nodes_per_graph):
            v = (u + 1) % nodes_per_graph
            edges.append((base + u, base + v))
            edges.append((base + v, base + u))
    edge_index = np.array(edges, dtype=np.int32).T  # [2, E]

    adj = np.zeros((N_NODES, N_NODES), np.float32)
    adj[edge_index[1], edge_index[0]] = 1.0             # adj[target, source]
    adj[np.arange(N_NODES), np.arange(N_NODES)] = 1.0   # GATConv add_self_loops=True

    batch = np.repeat(np.arange(N_GRAPHS), nodes_per_graph)
    memb = np.zeros((N_GRAPHS, N_NODES), np.float32)
    for n in range(N_NODES):
        memb[batch[n], n] = 1.0
    memb = memb / memb.sum(axis=1, keepdims=True)       # mean-pool weights

    return jnp.asarray(adj), jnp.asarray(memb)


if __name__ == "__main__":
    key = jax.random.PRNGKey(0)
    k_x, k_p = jax.random.split(key)

    x = jax.random.normal(k_x, (N_NODES, INPUT_DIM), jnp.float32)
    adj, memb = build_graph()
    head_mask = build_head_mask()
    params = make_params(k_p)

    out = gat_res_forward(x, adj, memb, head_mask, params)
    out = jax.block_until_ready(out)
    assert out.shape == (N_GRAPHS, OUT_DIM)
    assert bool(jnp.all(jnp.isfinite(out)))
    print("KERNEL_OK")
</pallas_src>

<mosaic_0001>
module attributes {stable_mosaic.version = 11 : i64} {
  func.func @gat_res_fused_kernel(%arg0: i32, %arg1: memref<16x8xf32, #tpu.memory_space<vmem>>, %arg2: memref<16x16xf32, #tpu.memory_space<vmem>>, %arg3: memref<2x16xf32, #tpu.memory_space<vmem>>, %arg4: memref<4x128xf32, #tpu.memory_space<vmem>>, %arg5: memref<8x128xf32, #tpu.memory_space<vmem>>, %arg6: memref<128x8xf32, #tpu.memory_space<vmem>>, %arg7: memref<1x128xf32, #tpu.memory_space<vmem>>, %arg8: memref<4x128x128xf32, #tpu.memory_space<vmem>>, %arg9: memref<4x128x8xf32, #tpu.memory_space<vmem>>, %arg10: memref<4x1x128xf32, #tpu.memory_space<vmem>>, %arg11: memref<4x1x128xf32, #tpu.memory_space<vmem>>, %arg12: memref<4x1x128xf32, #tpu.memory_space<vmem>>, %arg13: memref<128x32xf32, #tpu.memory_space<vmem>>, %arg14: memref<1x32xf32, #tpu.memory_space<vmem>>, %arg15: memref<2x32xf32, #tpu.memory_space<vmem>>) attributes {dimension_semantics = [#tpu.dimension_semantics<arbitrary>], iteration_bounds = array<i64: 1>, scalar_prefetch = 0 : i64, scratch_operands = 0 : i64, tpu.core_type = #tpu.core_type<tc>, window_params = [{pipeline_mode = #tpu.pipeline_mode<synchronous>, transform_indices = @transform_0, window_bounds = array<i64: 16, 8>}, {pipeline_mode = #tpu.pipeline_mode<synchronous>, transform_indices = @transform_1, window_bounds = array<i64: 16, 16>}, {pipeline_mode = #tpu.pipeline_mode<synchronous>, transform_indices = @transform_2, window_bounds = array<i64: 2, 16>}, {pipeline_mode = #tpu.pipeline_mode<synchronous>, transform_indices = @transform_3, window_bounds = array<i64: 4, 128>}, {pipeline_mode = #tpu.pipeline_mode<synchronous>, transform_indices = @transform_4, window_bounds = array<i64: 8, 128>}, {pipeline_mode = #tpu.pipeline_mode<synchronous>, transform_indices = @transform_5, window_bounds = array<i64: 128, 8>}, {pipeline_mode = #tpu.pipeline_mode<synchronous>, transform_indices = @transform_6, window_bounds = array<i64: 1, 128>}, {pipeline_mode = #tpu.pipeline_mode<synchronous>, transform_indices = @transform_7, window_bounds = array<i64: 4, 128, 128>}, {pipeline_mode = #tpu.pipeline_mode<synchronous>, transform_indices = @transform_8, window_bounds = array<i64: 4, 128, 8>}, {pipeline_mode = #tpu.pipeline_mode<synchronous>, transform_indices = @transform_9, window_bounds = array<i64: 4, 1, 128>}, {pipeline_mode = #tpu.pipeline_mode<synchronous>, transform_indices = @transform_10, window_bounds = array<i64: 4, 1, 128>}, {pipeline_mode = #tpu.pipeline_mode<synchronous>, transform_indices = @transform_11, window_bounds = array<i64: 4, 1, 128>}, {pipeline_mode = #tpu.pipeline_mode<synchronous>, transform_indices = @transform_12, window_bounds = array<i64: 128, 32>}, {pipeline_mode = #tpu.pipeline_mode<synchronous>, transform_indices = @transform_13, window_bounds = array<i64: 1, 32>}, {pipeline_mode = #tpu.pipeline_mode<synchronous>, transform_indices = @transform_14, window_bounds = array<i64: 2, 32>}]} {
    %c0 = arith.constant 0 : index
    %c0_0 = arith.constant 0 : index
    %0 = vector.load %arg2[%c0, %c0_0] : memref<16x16xf32, #tpu.memory_space<vmem>>, vector<16x16xf32>
    %cst = arith.constant 0.000000e+00 : f32
    %1 = vector.broadcast %cst : f32 to vector<16x16xf32>
    %2 = arith.cmpf ogt, %0, %1 : vector<16x16xf32>
    %cst_1 = arith.constant 0.000000e+00 : f32
    %cst_2 = arith.constant -1.000000e+30 : f32
    %3 = vector.broadcast %cst_1 : f32 to vector<16x16xf32>
    %4 = vector.broadcast %cst_2 : f32 to vector<16x16xf32>
    %5 = arith.select %2, %3, %4 : vector<16x16xi1>, vector<16x16xf32>
    %c0_3 = arith.constant 0 : index
    %c0_4 = arith.constant 0 : index
    %6 = vector.load %arg4[%c0_3, %c0_4] : memref<4x128xf32, #tpu.memory_space<vmem>>, vector<4x128xf32>
    %c0_5 = arith.constant 0 : index
    %c0_6 = arith.constant 0 : index
    %7 = vector.load %arg1[%c0_5, %c0_6] : memref<16x8xf32, #tpu.memory_space<vmem>>, vector<16x8xf32>
    %c0_7 = arith.constant 0 : index
    %c0_8 = arith.constant 0 : index
    %8 = vector.load %arg5[%c0_7, %c0_8] : memref<8x128xf32, #tpu.memory_space<vmem>>, vector<8x128xf32>
    %c0_9 = arith.constant 0 : index
    %c0_10 = arith.constant 0 : index
    %9 = vector.load %arg6[%c0_9, %c0_10] : memref<128x8xf32, #tpu.memory_space<vmem>>, vector<128x8xf32>
    %c0_11 = arith.constant 0 : index
    %c0_12 = arith.constant 0 : index
    %10 = vector.load %arg7[%c0_11, %c0_12] : memref<1x128xf32, #tpu.memory_space<vmem>>, vector<1x128xf32>
    %cst_13 = arith.constant dense<0.000000e+00> : vector<16x128xf32>
    %11 = tpu.matmul %7, %8, %cst_13 {dimension_numbers = #tpu.dot_dimension_numbers<[1], [0], [0], [1], [0, 0, 1, 1], [], []>} : vector<16x8xf32>, vector<8x128xf32>, vector<16x128xf32> -> vector<16x128xf32>
    %cst_14 = arith.constant dense<0.000000e+00> : vector<16x8xf32>
    %12 = tpu.matmul %11, %9, %cst_14 {dimension_numbers = #tpu.dot_dimension_numbers<[1], [0], [0], [1], [0, 0, 1, 1], [], []>} : vector<16x128xf32>, vector<128x8xf32>, vector<16x8xf32> -> vector<16x8xf32>
    %13 = tpu.transpose %12, [1, 0] : vector<16x8xf32> -> vector<8x16xf32>
    %14 = vector.extract_strided_slice %12 {offsets = [0, 4], sizes = [16, 1], strides = [1, 1]} : vector<16x8xf32> to vector<16x1xf32>
    %15 = vector.extract_strided_slice %13 {offsets = [0, 0], sizes = [1, 16], strides = [1, 1]} : vector<8x16xf32> to vector<1x16xf32>
    %16 = vector.broadcast %14 : vector<16x1xf32> to vector<16x16xf32>
    %17 = vector.broadcast %15 : vector<1x16xf32> to vector<16x16xf32>
    %18 = arith.addf %16, %17 : vector<16x16xf32>
    %cst_15 = arith.constant 0.000000e+00 : f32
    %19 = vector.broadcast %cst_15 : f32 to vector<16x16xf32>
    %20 = arith.cmpf ogt, %18, %19 : vector<16x16xf32>
    %cst_16 = arith.constant 2.000000e-01 : f32
    %21 = vector.broadcast %cst_16 : f32 to vector<16x16xf32>
    %22 = arith.mulf %21, %18 : vector<16x16xf32>
    %23 = arith.select %20, %18, %22 : vector<16x16xi1>, vector<16x16xf32>
    %24 = arith.addf %23, %5 : vector<16x16xf32>
    %cst_17 = arith.constant dense<0xFF800000> : vector<16xf32>
    %25 = vector.multi_reduction <maximumf>, %24, %cst_17 [1] : vector<16x16xf32> to vector<16xf32>
    %26 = vector.shape_cast %25 : vector<16xf32> to vector<16x1xf32>
    %27 = vector.broadcast %26 : vector<16x1xf32> to vector<16x16xf32>
    %28 = arith.subf %24, %27 : vector<16x16xf32>
    %29 = math.exp %28 : vector<16x16xf32>
    %cst_18 = arith.constant dense<0.000000e+00> : vector<16xf32>
    %30 = vector.multi_reduction <add>, %29, %cst_18 [1] : vector<16x16xf32> to vector<16xf32>
    %31 = vector.shape_cast %30 : vector<16xf32> to vector<16x1xf32>
    %32 = tpu.reciprocal %31 {approx = true} : vector<16x1xf32> -> vector<16x1xf32>
    %33 = vector.broadcast %32 : vector<16x1xf32> to vector<16x16xf32>
    %34 = arith.mulf %29, %33 : vector<16x16xf32>
    %35 = vector.extract_strided_slice %6 {offsets = [0, 0], sizes = [1, 128], strides = [1, 1]} : vector<4x128xf32> to vector<1x128xf32>
    %36 = vector.broadcast %35 : vector<1x128xf32> to vector<16x128xf32>
    %37 = arith.mulf %11, %36 : vector<16x128xf32>
    %cst_19 = arith.constant dense<0.000000e+00> : vector<16x128xf32>
    %38 = tpu.matmul %34, %37, %cst_19 {dimension_numbers = #tpu.dot_dimension_numbers<[1], [0], [0], [1], [0, 0, 1, 1], [], []>} : vector<16x16xf32>, vector<16x128xf32>, vector<16x128xf32> -> vector<16x128xf32>
    %39 = vector.broadcast %10 : vector<1x128xf32> to vector<16x128xf32>
    %40 = arith.addf %39, %38 : vector<16x128xf32>
    %41 = vector.extract_strided_slice %12 {offsets = [0, 5], sizes = [16, 1], strides = [1, 1]} : vector<16x8xf32> to vector<16x1xf32>
    %42 = vector.extract_strided_slice %13 {offsets = [1, 0], sizes = [1, 16], strides = [1, 1]} : vector<8x16xf32> to vector<1x16xf32>
    %43 = vector.broadcast %41 : vector<16x1xf32> to vector<16x16xf32>
    %44 = vector.broadcast %42 : vector<1x16xf32> to vector<16x16xf32>
    %45 = arith.addf %43, %44 : vector<16x16xf32>
    %cst_20 = arith.constant 0.000000e+00 : f32
    %46 = vector.broadcast %cst_20 : f32 to vector<16x16xf32>
    %47 = arith.cmpf ogt, %45, %46 : vector<16x16xf32>
    %cst_21 = arith.constant 2.000000e-01 : f32
    %48 = vector.broadcast %cst_21 : f32 to vector<16x16xf32>
    %49 = arith.mulf %48, %45 : vector<16x16xf32>
    %50 = arith.select %47, %45, %49 : vector<16x16xi1>, vector<16x16xf32>
    %51 = arith.addf %50, %5 : vector<16x16xf32>
    %cst_22 = arith.constant dense<0xFF800000> : vector<16xf32>
    %52 = vector.multi_reduction <maximumf>, %51, %cst_22 [1] : vector<16x16xf32> to vector<16xf32>
    %53 = vector.shape_cast %52 : vector<16xf32> to vector<16x1xf32>
    %54 = vector.broadcast %53 : vector<16x1xf32> to vector<16x16xf32>
    %55 = arith.subf %51, %54 : vector<16x16xf32>
    %56 = math.exp %55 : vector<16x16xf32>
    %cst_23 = arith.constant dense<0.000000e+00> : vector<16xf32>
    %57 = vector.multi_reduction <add>, %56, %cst_23 [1] : vector<16x16xf32> to vector<16xf32>
    %58 = vector.shape_cast %57 : vector<16xf32> to vector<16x1xf32>
    %59 = tpu.reciprocal %58 {approx = true} : vector<16x1xf32> -> vector<16x1xf32>
    %60 = vector.broadcast %59 : vector<16x1xf32> to vector<16x16xf32>
    %61 = arith.mulf %56, %60 : vector<16x16xf32>
    %62 = vector.extract_strided_slice %6 {offsets = [1, 0], sizes = [1, 128], strides = [1, 1]} : vector<4x128xf32> to vector<1x128xf32>
    %63 = vector.broadcast %62 : vector<1x128xf32> to vector<16x128xf32>
    %64 = arith.mulf %11, %63 : vector<16x128xf32>
    %cst_24 = arith.constant dense<0.000000e+00> : vector<16x128xf32>
    %65 = tpu.matmul %61, %64, %cst_24 {dimension_numbers = #tpu.dot_dimension_numbers<[1], [0], [0], [1], [0, 0, 1, 1], [], []>} : vector<16x16xf32>, vector<16x128xf32>, vector<16x128xf32> -> vector<16x128xf32>
    %66 = arith.addf %40, %65 : vector<16x128xf32>
    %67 = vector.extract_strided_slice %12 {offsets = [0, 6], sizes = [16, 1], strides = [1, 1]} : vector<16x8xf32> to vector<16x1xf32>
    %68 = vector.extract_strided_slice %13 {offsets = [2, 0], sizes = [1, 16], strides = [1, 1]} : vector<8x16xf32> to vector<1x16xf32>
    %69 = vector.broadcast %67 : vector<16x1xf32> to vector<16x16xf32>
    %70 = vector.broadcast %68 : vector<1x16xf32> to vector<16x16xf32>
    %71 = arith.addf %69, %70 : vector<16x16xf32>
    %cst_25 = arith.constant 0.000000e+00 : f32
    %72 = vector.broadcast %cst_25 : f32 to vector<16x16xf32>
    %73 = arith.cmpf ogt, %71, %72 : vector<16x16xf32>
    %cst_26 = arith.constant 2.000000e-01 : f32
    %74 = vector.broadcast %cst_26 : f32 to vector<16x16xf32>
    %75 = arith.mulf %74, %71 : vector<16x16xf32>
    %76 = arith.select %73, %71, %75 : vector<16x16xi1>, vector<16x16xf32>
    %77 = arith.addf %76, %5 : vector<16x16xf32>
    %cst_27 = arith.constant dense<0xFF800000> : vector<16xf32>
    %78 = vector.multi_reduction <maximumf>, %77, %cst_27 [1] : vector<16x16xf32> to vector<16xf32>
    %79 = vector.shape_cast %78 : vector<16xf32> to vector<16x1xf32>
    %80 = vector.broadcast %79 : vector<16x1xf32> to vector<16x16xf32>
    %81 = arith.subf %77, %80 : vector<16x16xf32>
    %82 = math.exp %81 : vector<16x16xf32>
    %cst_28 = arith.constant dense<0.000000e+00> : vector<16xf32>
    %83 = vector.multi_reduction <add>, %82, %cst_28 [1] : vector<16x16xf32> to vector<16xf32>
    %84 = vector.shape_cast %83 : vector<16xf32> to vector<16x1xf32>
    %85 = tpu.reciprocal %84 {approx = true} : vector<16x1xf32> -> vector<16x1xf32>
    %86 = vector.broadcast %85 : vector<16x1xf32> to vector<16x16xf32>
    %87 = arith.mulf %82, %86 : vector<16x16xf32>
    %88 = vector.extract_strided_slice %6 {offsets = [2, 0], sizes = [1, 128], strides = [1, 1]} : vector<4x128xf32> to vector<1x128xf32>
    %89 = vector.broadcast %88 : vector<1x128xf32> to vector<16x128xf32>
    %90 = arith.mulf %11, %89 : vector<16x128xf32>
    %cst_29 = arith.constant dense<0.000000e+00> : vector<16x128xf32>
    %91 = tpu.matmul %87, %90, %cst_29 {dimension_numbers = #tpu.dot_dimension_numbers<[1], [0], [0], [1], [0, 0, 1, 1], [], []>} : vector<16x16xf32>, vector<16x128xf32>, vector<16x128xf32> -> vector<16x128xf32>
    %92 = arith.addf %66, %91 : vector<16x128xf32>
    %93 = vector.extract_strided_slice %12 {offsets = [0, 7], sizes = [16, 1], strides = [1, 1]} : vector<16x8xf32> to vector<16x1xf32>
    %94 = vector.extract_strided_slice %13 {offsets = [3, 0], sizes = [1, 16], strides = [1, 1]} : vector<8x16xf32> to vector<1x16xf32>
    %95 = vector.broadcast %93 : vector<16x1xf32> to vector<16x16xf32>
    %96 = vector.broadcast %94 : vector<1x16xf32> to vector<16x16xf32>
    %97 = arith.addf %95, %96 : vector<16x16xf32>
    %cst_30 = arith.constant 0.000000e+00 : f32
    %98 = vector.broadcast %cst_30 : f32 to vector<16x16xf32>
    %99 = arith.cmpf ogt, %97, %98 : vector<16x16xf32>
    %cst_31 = arith.constant 2.000000e-01 : f32
    %100 = vector.broadcast %cst_31 : f32 to vector<16x16xf32>
    %101 = arith.mulf %100, %97 : vector<16x16xf32>
    %102 = arith.select %99, %97, %101 : vector<16x16xi1>, vector<16x16xf32>
    %103 = arith.addf %102, %5 : vector<16x16xf32>
    %cst_32 = arith.constant dense<0xFF800000> : vector<16xf32>
    %104 = vector.multi_reduction <maximumf>, %103, %cst_32 [1] : vector<16x16xf32> to vector<16xf32>
    %105 = vector.shape_cast %104 : vector<16xf32> to vector<16x1xf32>
    %106 = vector.broadcast %105 : vector<16x1xf32> to vector<16x16xf32>
    %107 = arith.subf %103, %106 : vector<16x16xf32>
    %108 = math.exp %107 : vector<16x16xf32>
    %cst_33 = arith.constant dense<0.000000e+00> : vector<16xf32>
    %109 = vector.multi_reduction <add>, %108, %cst_33 [1] : vector<16x16xf32> to vector<16xf32>
    %110 = vector.shape_cast %109 : vector<16xf32> to vector<16x1xf32>
    %111 = tpu.reciprocal %110 {approx = true} : vector<16x1xf32> -> vector<16x1xf32>
    %112 = vector.broadcast %111 : vector<16x1xf32> to vector<16x16xf32>
    %113 = arith.mulf %108, %112 : vector<16x16xf32>
    %114 = vector.extract_strided_slice %6 {offsets = [3, 0], sizes = [1, 128], strides = [1, 1]} : vector<4x128xf32> to vector<1x128xf32>
    %115 = vector.broadcast %114 : vector<1x128xf32> to vector<16x128xf32>
    %116 = arith.mulf %11, %115 : vector<16x128xf32>
    %cst_34 = arith.constant dense<0.000000e+00> : vector<16x128xf32>
    %117 = tpu.matmul %113, %116, %cst_34 {dimension_numbers = #tpu.dot_dimension_numbers<[1], [0], [0], [1], [0, 0, 1, 1], [], []>} : vector<16x16xf32>, vector<16x128xf32>, vector<16x128xf32> -> vector<16x128xf32>
    %118 = arith.addf %92, %117 : vector<16x128xf32>
    %c0_35 = arith.constant 0 : index
    %c0_36 = arith.constant 0 : index
    %c0_37 = arith.constant 0 : index
    %119 = vector.load %arg8[%c0_35, %c0_36, %c0_37] : memref<4x128x128xf32, #tpu.memory_space<vmem>>, vector<1x128x128xf32>
    %120 = vector.shape_cast %119 : vector<1x128x128xf32> to vector<128x128xf32>
    %c0_38 = arith.constant 0 : index
    %c0_39 = arith.constant 0 : index
    %c0_40 = arith.constant 0 : index
    %121 = vector.load %arg9[%c0_38, %c0_39, %c0_40] : memref<4x128x8xf32, #tpu.memory_space<vmem>>, vector<1x128x8xf32>
    %122 = vector.shape_cast %121 : vector<1x128x8xf32> to vector<128x8xf32>
    %c0_41 = arith.constant 0 : index
    %c0_42 = arith.constant 0 : index
    %c0_43 = arith.constant 0 : index
    %123 = vector.load %arg10[%c0_41, %c0_42, %c0_43] : memref<4x1x128xf32, #tpu.memory_space<vmem>>, vector<1x1x128xf32>
    %124 = vector.shape_cast %123 : vector<1x1x128xf32> to vector<1x128xf32>
    %cst_44 = arith.constant dense<0.000000e+00> : vector<16x128xf32>
    %125 = tpu.matmul %118, %120, %cst_44 {dimension_numbers = #tpu.dot_dimension_numbers<[1], [0], [0], [1], [0, 0, 1, 1], [], []>} : vector<16x128xf32>, vector<128x128xf32>, vector<16x128xf32> -> vector<16x128xf32>
    %cst_45 = arith.constant dense<0.000000e+00> : vector<16x8xf32>
    %126 = tpu.matmul %125, %122, %cst_45 {dimension_numbers = #tpu.dot_dimension_numbers<[1], [0], [0], [1], [0, 0, 1, 1], [], []>} : vector<16x128xf32>, vector<128x8xf32>, vector<16x8xf32> -> vector<16x8xf32>
    %127 = tpu.transpose %126, [1, 0] : vector<16x8xf32> -> vector<8x16xf32>
    %128 = vector.extract_strided_slice %126 {offsets = [0, 4], sizes = [16, 1], strides = [1, 1]} : vector<16x8xf32> to vector<16x1xf32>
    %129 = vector.extract_strided_slice %127 {offsets = [0, 0], sizes = [1, 16], strides = [1, 1]} : vector<8x16xf32> to vector<1x16xf32>
    %130 = vector.broadcast %128 : vector<16x1xf32> to vector<16x16xf32>
    %131 = vector.broadcast %129 : vector<1x16xf32> to vector<16x16xf32>
    %132 = arith.addf %130, %131 : vector<16x16xf32>
    %cst_46 = arith.constant 0.000000e+00 : f32
    %133 = vector.broadcast %cst_46 : f32 to vector<16x16xf32>
    %134 = arith.cmpf ogt, %132, %133 : vector<16x16xf32>
    %cst_47 = arith.constant 2.000000e-01 : f32
    %135 = vector.broadcast %cst_47 : f32 to vector<16x16xf32>
    %136 = arith.mulf %135, %132 : vector<16x16xf32>
    %137 = arith.select %134, %132, %136 : vector<16x16xi1>, vector<16x16xf32>
    %138 = arith.addf %137, %5 : vector<16x16xf32>
    %cst_48 = arith.constant dense<0xFF800000> : vector<16xf32>
    %139 = vector.multi_reduction <maximumf>, %138, %cst_48 [1] : vector<16x16xf32> to vector<16xf32>
    %140 = vector.shape_cast %139 : vector<16xf32> to vector<16x1xf32>
    %141 = vector.broadcast %140 : vector<16x1xf32> to vector<16x16xf32>
    %142 = arith.subf %138, %141 : vector<16x16xf32>
    %143 = math.exp %142 : vector<16x16xf32>
    %cst_49 = arith.constant dense<0.000000e+00> : vector<16xf32>
    %144 = vector.multi_reduction <add>, %143, %cst_49 [1] : vector<16x16xf32> to vector<16xf32>
    %145 = vector.shape_cast %144 : vector<16xf32> to vector<16x1xf32>
    %146 = tpu.reciprocal %145 {approx = true} : vector<16x1xf32> -> vector<16x1xf32>
    %147 = vector.broadcast %146 : vector<16x1xf32> to vector<16x16xf32>
    %148 = arith.mulf %143, %147 : vector<16x16xf32>
    %149 = vector.extract_strided_slice %6 {offsets = [0, 0], sizes = [1, 128], strides = [1, 1]} : vector<4x128xf32> to vector<1x128xf32>
    %150 = vector.broadcast %149 : vector<1x128xf32> to vector<16x128xf32>
    %151 = arith.mulf %125, %150 : vector<16x128xf32>
    %cst_50 = arith.constant dense<0.000000e+00> : vector<16x128xf32>
    %152 = tpu.matmul %148, %151, %cst_50 {dimension_numbers = #tpu.dot_dimension_numbers<[1], [0], [0], [1], [0, 0, 1, 1], [], []>} : vector<16x16xf32>, vector<16x128xf32>, vector<16x128xf32> -> vector<16x128xf32>
    %153 = vector.broadcast %124 : vector<1x128xf32> to vector<16x128xf32>
    %154 = arith.addf %153, %152 : vector<16x128xf32>
    %155 = vector.extract_strided_slice %126 {offsets = [0, 5], sizes = [16, 1], strides = [1, 1]} : vector<16x8xf32> to vector<16x1xf32>
    %156 = vector.extract_strided_slice %127 {offsets = [1, 0], sizes = [1, 16], strides = [1, 1]} : vector<8x16xf32> to vector<1x16xf32>
    %157 = vector.broadcast %155 : vector<16x1xf32> to vector<16x16xf32>
    %158 = vector.broadcast %156 : vector<1x16xf32> to vector<16x16xf32>
    %159 = arith.addf %157, %158 : vector<16x16xf32>
    %cst_51 = arith.constant 0.000000e+00 : f32
    %160 = vector.broadcast %cst_51 : f32 to vector<16x16xf32>
    %161 = arith.cmpf ogt, %159, %160 : vector<16x16xf32>
    %cst_52 = arith.constant 2.000000e-01 : f32
    %162 = vector.broadcast %cst_52 : f32 to vector<16x16xf32>
    %163 = arith.mulf %162, %159 : vector<16x16xf32>
    %164 = arith.select %161, %159, %163 : vector<16x16xi1>, vector<16x16xf32>
    %165 = arith.addf %164, %5 : vector<16x16xf32>
    %cst_53 = arith.constant dense<0xFF800000> : vector<16xf32>
    %166 = vector.multi_reduction <maximumf>, %165, %cst_53 [1] : vector<16x16xf32> to vector<16xf32>
    %167 = vector.shape_cast %166 : vector<16xf32> to vector<16x1xf32>
    %168 = vector.broadcast %167 : vector<16x1xf32> to vector<16x16xf32>
    %169 = arith.subf %165, %168 : vector<16x16xf32>
    %170 = math.exp %169 : vector<16x16xf32>
    %cst_54 = arith.constant dense<0.000000e+00> : vector<16xf32>
    %171 = vector.multi_reduction <add>, %170, %cst_54 [1] : vector<16x16xf32> to vector<16xf32>
    %172 = vector.shape_cast %171 : vector<16xf32> to vector<16x1xf32>
    %173 = tpu.reciprocal %172 {approx = true} : vector<16x1xf32> -> vector<16x1xf32>
    %174 = vector.broadcast %173 : vector<16x1xf32> to vector<16x16xf32>
    %175 = arith.mulf %170, %174 : vector<16x16xf32>
    %176 = vector.extract_strided_slice %6 {offsets = [1, 0], sizes = [1, 128], strides = [1, 1]} : vector<4x128xf32> to vector<1x128xf32>
    %177 = vector.broadcast %176 : vector<1x128xf32> to vector<16x128xf32>
    %178 = arith.mulf %125, %177 : vector<16x128xf32>
    %cst_55 = arith.constant dense<0.000000e+00> : vector<16x128xf32>
    %179 = tpu.matmul %175, %178, %cst_55 {dimension_numbers = #tpu.dot_dimension_numbers<[1], [0], [0], [1], [0, 0, 1, 1], [], []>} : vector<16x16xf32>, vector<16x128xf32>, vector<16x128xf32> -> vector<16x128xf32>
    %180 = arith.addf %154, %179 : vector<16x128xf32>
    %181 = vector.extract_strided_slice %126 {offsets = [0, 6], sizes = [16, 1], strides = [1, 1]} : vector<16x8xf32> to vector<16x1xf32>
    %182 = vector.extract_strided_slice %127 {offsets = [2, 0], sizes = [1, 16], strides = [1, 1]} : vector<8x16xf32> to vector<1x16xf32>
    %183 = vector.broadcast %181 : vector<16x1xf32> to vector<16x16xf32>
    %184 = vector.broadcast %182 : vector<1x16xf32> to vector<16x16xf32>
    %185 = arith.addf %183, %184 : vector<16x16xf32>
    %cst_56 = arith.constant 0.000000e+00 : f32
    %186 = vector.broadcast %cst_56 : f32 to vector<16x16xf32>
    %187 = arith.cmpf ogt, %185, %186 : vector<16x16xf32>
    %cst_57 = arith.constant 2.000000e-01 : f32
    %188 = vector.broadcast %cst_57 : f32 to vector<16x16xf32>
    %189 = arith.mulf %188, %185 : vector<16x16xf32>
    %190 = arith.select %187, %185, %189 : vector<16x16xi1>, vector<16x16xf32>
    %191 = arith.addf %190, %5 : vector<16x16xf32>
    %cst_58 = arith.constant dense<0xFF800000> : vector<16xf32>
    %192 = vector.multi_reduction <maximumf>, %191, %cst_58 [1] : vector<16x16xf32> to vector<16xf32>
    %193 = vector.shape_cast %192 : vector<16xf32> to vector<16x1xf32>
    %194 = vector.broadcast %193 : vector<16x1xf32> to vector<16x16xf32>
    %195 = arith.subf %191, %194 : vector<16x16xf32>
    %196 = math.exp %195 : vector<16x16xf32>
    %cst_59 = arith.constant dense<0.000000e+00> : vector<16xf32>
    %197 = vector.multi_reduction <add>, %196, %cst_59 [1] : vector<16x16xf32> to vector<16xf32>
    %198 = vector.shape_cast %197 : vector<16xf32> to vector<16x1xf32>
    %199 = tpu.reciprocal %198 {approx = true} : vector<16x1xf32> -> vector<16x1xf32>
    %200 = vector.broadcast %199 : vector<16x1xf32> to vector<16x16xf32>
    %201 = arith.mulf %196, %200 : vector<16x16xf32>
    %202 = vector.extract_strided_slice %6 {offsets = [2, 0], sizes = [1, 128], strides = [1, 1]} : vector<4x128xf32> to vector<1x128xf32>
    %203 = vector.broadcast %202 : vector<1x128xf32> to vector<16x128xf32>
    %204 = arith.mulf %125, %203 : vector<16x128xf32>
    %cst_60 = arith.constant dense<0.000000e+00> : vector<16x128xf32>
    %205 = tpu.matmul %201, %204, %cst_60 {dimension_numbers = #tpu.dot_dimension_numbers<[1], [0], [0], [1], [0, 0, 1, 1], [], []>} : vector<16x16xf32>, vector<16x128xf32>, vector<16x128xf32> -> vector<16x128xf32>
    %206 = arith.addf %180, %205 : vector<16x128xf32>
    %207 = vector.extract_strided_slice %126 {offsets = [0, 7], sizes = [16, 1], strides = [1, 1]} : vector<16x8xf32> to vector<16x1xf32>
    %208 = vector.extract_strided_slice %127 {offsets = [3, 0], sizes = [1, 16], strides = [1, 1]} : vector<8x16xf32> to vector<1x16xf32>
    %209 = vector.broadcast %207 : vector<16x1xf32> to vector<16x16xf32>
    %210 = vector.broadcast %208 : vector<1x16xf32> to vector<16x16xf32>
    %211 = arith.addf %209, %210 : vector<16x16xf32>
    %cst_61 = arith.constant 0.000000e+00 : f32
    %212 = vector.broadcast %cst_61 : f32 to vector<16x16xf32>
    %213 = arith.cmpf ogt, %211, %212 : vector<16x16xf32>
    %cst_62 = arith.constant 2.000000e-01 : f32
    %214 = vector.broadcast %cst_62 : f32 to vector<16x16xf32>
    %215 = arith.mulf %214, %211 : vector<16x16xf32>
    %216 = arith.select %213, %211, %215 : vector<16x16xi1>, vector<16x16xf32>
    %217 = arith.addf %216, %5 : vector<16x16xf32>
    %cst_63 = arith.constant dense<0xFF800000> : vector<16xf32>
    %218 = vector.multi_reduction <maximumf>, %217, %cst_63 [1] : vector<16x16xf32> to vector<16xf32>
    %219 = vector.shape_cast %218 : vector<16xf32> to vector<16x1xf32>
    %220 = vector.broadcast %219 : vector<16x1xf32> to vector<16x16xf32>
    %221 = arith.subf %217, %220 : vector<16x16xf32>
    %222 = math.exp %221 : vector<16x16xf32>
    %cst_64 = arith.constant dense<0.000000e+00> : vector<16xf32>
    %223 = vector.multi_reduction <add>, %222, %cst_64 [1] : vector<16x16xf32> to vector<16xf32>
    %224 = vector.shape_cast %223 : vector<16xf32> to vector<16x1xf32>
    %225 = tpu.reciprocal %224 {approx = true} : vector<16x1xf32> -> vector<16x1xf32>
    %226 = vector.broadcast %225 : vector<16x1xf32> to vector<16x16xf32>
    %227 = arith.mulf %222, %226 : vector<16x16xf32>
    %228 = vector.extract_strided_slice %6 {offsets = [3, 0], sizes = [1, 128], strides = [1, 1]} : vector<4x128xf32> to vector<1x128xf32>
    %229 = vector.broadcast %228 : vector<1x128xf32> to vector<16x128xf32>
    %230 = arith.mulf %125, %229 : vector<16x128xf32>
    %cst_65 = arith.constant dense<0.000000e+00> : vector<16x128xf32>
    %231 = tpu.matmul %227, %230, %cst_65 {dimension_numbers = #tpu.dot_dimension_numbers<[1], [0], [0], [1], [0, 0, 1, 1], [], []>} : vector<16x16xf32>, vector<16x128xf32>, vector<16x128xf32> -> vector<16x128xf32>
    %232 = arith.addf %206, %231 : vector<16x128xf32>
    %cst_66 = arith.constant 0.000000e+00 : f32
    %233 = vector.broadcast %cst_66 : f32 to vector<16x128xf32>
    %234 = arith.maximumf %232, %233 : vector<16x128xf32>
    %cst_67 = arith.constant dense<0.000000e+00> : vector<128xf32>
    %235 = vector.multi_reduction <add>, %234, %cst_67 [0] : vector<16x128xf32> to vector<128xf32>
    %236 = vector.shape_cast %235 : vector<128xf32> to vector<1x128xf32>
    %cst_68 = arith.constant 1.600000e+01 : f32
    %237 = vector.broadcast %cst_68 : f32 to vector<1x128xf32>
    %238 = arith.divf %236, %237 : vector<1x128xf32>
    %239 = vector.broadcast %238 : vector<1x128xf32> to vector<16x128xf32>
    %240 = arith.subf %234, %239 : vector<16x128xf32>
    %241 = vector.broadcast %238 : vector<1x128xf32> to vector<16x128xf32>
    %242 = arith.subf %234, %241 : vector<16x128xf32>
    %243 = arith.mulf %240, %242 : vector<16x128xf32>
    %cst_69 = arith.constant dense<0.000000e+00> : vector<128xf32>
    %244 = vector.multi_reduction <add>, %243, %cst_69 [0] : vector<16x128xf32> to vector<128xf32>
    %245 = vector.shape_cast %244 : vector<128xf32> to vector<1x128xf32>
    %cst_70 = arith.constant 1.600000e+01 : f32
    %246 = vector.broadcast %cst_70 : f32 to vector<1x128xf32>
    %247 = arith.divf %245, %246 : vector<1x128xf32>
    %248 = vector.broadcast %238 : vector<1x128xf32> to vector<16x128xf32>
    %249 = arith.subf %234, %248 : vector<16x128xf32>
    %cst_71 = arith.constant 9.99999974E-6 : f32
    %250 = vector.broadcast %cst_71 : f32 to vector<1x128xf32>
    %251 = arith.addf %247, %250 : vector<1x128xf32>
    %252 = math.rsqrt %251 : vector<1x128xf32>
    %253 = vector.broadcast %252 : vector<1x128xf32> to vector<16x128xf32>
    %254 = arith.mulf %249, %253 : vector<16x128xf32>
    %c0_72 = arith.constant 0 : index
    %c0_73 = arith.constant 0 : index
    %c0_74 = arith.constant 0 : index
    %255 = vector.load %arg11[%c0_72, %c0_73, %c0_74] : memref<4x1x128xf32, #tpu.memory_space<vmem>>, vector<1x1x128xf32>
    %256 = vector.shape_cast %255 : vector<1x1x128xf32> to vector<1x128xf32>
    %257 = vector.broadcast %256 : vector<1x128xf32> to vector<16x128xf32>
    %258 = arith.mulf %254, %257 : vector<16x128xf32>
    %c0_75 = arith.constant 0 : index
    %c0_76 = arith.constant 0 : index
    %c0_77 = arith.constant 0 : index
    %259 = vector.load %arg12[%c0_75, %c0_76, %c0_77] : memref<4x1x128xf32, #tpu.memory_space<vmem>>, vector<1x1x128xf32>
    %260 = vector.shape_cast %259 : vector<1x1x128xf32> to vector<1x128xf32>
    %261 = vector.broadcast %260 : vector<1x128xf32> to vector<16x128xf32>
    %262 = arith.addf %258, %261 : vector<16x128xf32>
    %c1 = arith.constant 1 : index
    %c0_78 = arith.constant 0 : index
    %c0_79 = arith.constant 0 : index
    %263 = vector.load %arg8[%c1, %c0_78, %c0_79] : memref<4x128x128xf32, #tpu.memory_space<vmem>>, vector<1x128x128xf32>
    %264 = vector.shape_cast %263 : vector<1x128x128xf32> to vector<128x128xf32>
    %c1_80 = arith.constant 1 : index
    %c0_81 = arith.constant 0 : index
    %c0_82 = arith.constant 0 : index
    %265 = vector.load %arg9[%c1_80, %c0_81, %c0_82] : memref<4x128x8xf32, #tpu.memory_space<vmem>>, vector<1x128x8xf32>
    %266 = vector.shape_cast %265 : vector<1x128x8xf32> to vector<128x8xf32>
    %c1_83 = arith.constant 1 : index
    %c0_84 = arith.constant 0 : index
    %c0_85 = arith.constant 0 : index
    %267 = vector.load %arg10[%c1_83, %c0_84, %c0_85] : memref<4x1x128xf32, #tpu.memory_space<vmem>>, vector<1x1x128xf32>
    %268 = vector.shape_cast %267 : vector<1x1x128xf32> to vector<1x128xf32>
    %cst_86 = arith.constant dense<0.000000e+00> : vector<16x128xf32>
    %269 = tpu.matmul %262, %264, %cst_86 {dimension_numbers = #tpu.dot_dimension_numbers<[1], [0], [0], [1], [0, 0, 1, 1], [], []>} : vector<16x128xf32>, vector<128x128xf32>, vector<16x128xf32> -> vector<16x128xf32>
    %cst_87 = arith.constant dense<0.000000e+00> : vector<16x8xf32>
    %270 = tpu.matmul %269, %266, %cst_87 {dimension_numbers = #tpu.dot_dimension_numbers<[1], [0], [0], [1], [0, 0, 1, 1], [], []>} : vector<16x128xf32>, vector<128x8xf32>, vector<16x8xf32> -> vector<16x8xf32>
    %271 = tpu.transpose %270, [1, 0] : vector<16x8xf32> -> vector<8x16xf32>
    %272 = vector.extract_strided_slice %270 {offsets = [0, 4], sizes = [16, 1], strides = [1, 1]} : vector<16x8xf32> to vector<16x1xf32>
    %273 = vector.extract_strided_slice %271 {offsets = [0, 0], sizes = [1, 16], strides = [1, 1]} : vector<8x16xf32> to vector<1x16xf32>
    %274 = vector.broadcast %272 : vector<16x1xf32> to vector<16x16xf32>
    %275 = vector.broadcast %273 : vector<1x16xf32> to vector<16x16xf32>
    %276 = arith.addf %274, %275 : vector<16x16xf32>
    %cst_88 = arith.constant 0.000000e+00 : f32
    %277 = vector.broadcast %cst_88 : f32 to vector<16x16xf32>
    %278 = arith.cmpf ogt, %276, %277 : vector<16x16xf32>
    %cst_89 = arith.constant 2.000000e-01 : f32
    %279 = vector.broadcast %cst_89 : f32 to vector<16x16xf32>
    %280 = arith.mulf %279, %276 : vector<16x16xf32>
    %281 = arith.select %278, %276, %280 : vector<16x16xi1>, vector<16x16xf32>
    %282 = arith.addf %281, %5 : vector<16x16xf32>
    %cst_90 = arith.constant dense<0xFF800000> : vector<16xf32>
    %283 = vector.multi_reduction <maximumf>, %282, %cst_90 [1] : vector<16x16xf32> to vector<16xf32>
    %284 = vector.shape_cast %283 : vector<16xf32> to vector<16x1xf32>
    %285 = vector.broadcast %284 : vector<16x1xf32> to vector<16x16xf32>
    %286 = arith.subf %282, %285 : vector<16x16xf32>
    %287 = math.exp %286 : vector<16x16xf32>
    %cst_91 = arith.constant dense<0.000000e+00> : vector<16xf32>
    %288 = vector.multi_reduction <add>, %287, %cst_91 [1] : vector<16x16xf32> to vector<16xf32>
    %289 = vector.shape_cast %288 : vector<16xf32> to vector<16x1xf32>
    %290 = tpu.reciprocal %289 {approx = true} : vector<16x1xf32> -> vector<16x1xf32>
    %291 = vector.broadcast %290 : vector<16x1xf32> to vector<16x16xf32>
    %292 = arith.mulf %287, %291 : vector<16x16xf32>
    %293 = vector.extract_strided_slice %6 {offsets = [0, 0], sizes = [1, 128], strides = [1, 1]} : vector<4x128xf32> to vector<1x128xf32>
    %294 = vector.broadcast %293 : vector<1x128xf32> to vector<16x128xf32>
    %295 = arith.mulf %269, %294 : vector<16x128xf32>
    %cst_92 = arith.constant dense<0.000000e+00> : vector<16x128xf32>
    %296 = tpu.matmul %292, %295, %cst_92 {dimension_numbers = #tpu.dot_dimension_numbers<[1], [0], [0], [1], [0, 0, 1, 1], [], []>} : vector<16x16xf32>, vector<16x128xf32>, vector<16x128xf32> -> vector<16x128xf32>
    %297 = vector.broadcast %268 : vector<1x128xf32> to vector<16x128xf32>
    %298 = arith.addf %297, %296 : vector<16x128xf32>
    %299 = vector.extract_strided_slice %270 {offsets = [0, 5], sizes = [16, 1], strides = [1, 1]} : vector<16x8xf32> to vector<16x1xf32>
    %300 = vector.extract_strided_slice %271 {offsets = [1, 0], sizes = [1, 16], strides = [1, 1]} : vector<8x16xf32> to vector<1x16xf32>
    %301 = vector.broadcast %299 : vector<16x1xf32> to vector<16x16xf32>
    %302 = vector.broadcast %300 : vector<1x16xf32> to vector<16x16xf32>
    %303 = arith.addf %301, %302 : vector<16x16xf32>
    %cst_93 = arith.constant 0.000000e+00 : f32
    %304 = vector.broadcast %cst_93 : f32 to vector<16x16xf32>
    %305 = arith.cmpf ogt, %303, %304 : vector<16x16xf32>
    %cst_94 = arith.constant 2.000000e-01 : f32
    %306 = vector.broadcast %cst_94 : f32 to vector<16x16xf32>
    %307 = arith.mulf %306, %303 : vector<16x16xf32>
    %308 = arith.select %305, %303, %307 : vector<16x16xi1>, vector<16x16xf32>
    %309 = arith.addf %308, %5 : vector<16x16xf32>
    %cst_95 = arith.constant dense<0xFF800000> : vector<16xf32>
    %310 = vector.multi_reduction <maximumf>, %309, %cst_95 [1] : vector<16x16xf32> to vector<16xf32>
    %311 = vector.shape_cast %310 : vector<16xf32> to vector<16x1xf32>
    %312 = vector.broadcast %311 : vector<16x1xf32> to vector<16x16xf32>
    %313 = arith.subf %309, %312 : vector<16x16xf32>
    %314 = math.exp %313 : vector<16x16xf32>
    %cst_96 = arith.constant dense<0.000000e+00> : vector<16xf32>
    %315 = vector.multi_reduction <add>, %314, %cst_96 [1] : vector<16x16xf32> to vector<16xf32>
    %316 = vector.shape_cast %315 : vector<16xf32> to vector<16x1xf32>
    %317 = tpu.reciprocal %316 {approx = true} : vector<16x1xf32> -> vector<16x1xf32>
    %318 = vector.broadcast %317 : vector<16x1xf32> to vector<16x16xf32>
    %319 = arith.mulf %314, %318 : vector<16x16xf32>
    %320 = vector.extract_strided_slice %6 {offsets = [1, 0], sizes = [1, 128], strides = [1, 1]} : vector<4x128xf32> to vector<1x128xf32>
    %321 = vector.broadcast %320 : vector<1x128xf32> to vector<16x128xf32>
    %322 = arith.mulf %269, %321 : vector<16x128xf32>
    %cst_97 = arith.constant dense<0.000000e+00> : vector<16x128xf32>
    %323 = tpu.matmul %319, %322, %cst_97 {dimension_numbers = #tpu.dot_dimension_numbers<[1], [0], [0], [1], [0, 0, 1, 1], [], []>} : vector<16x16xf32>, vector<16x128xf32>, vector<16x128xf32> -> vector<16x128xf32>
    %324 = arith.addf %298, %323 : vector<16x128xf32>
    %325 = vector.extract_strided_slice %270 {offsets = [0, 6], sizes = [16, 1], strides = [1, 1]} : vector<16x8xf32> to vector<16x1xf32>
    %326 = vector.extract_strided_slice %271 {offsets = [2, 0], sizes = [1, 16], strides = [1, 1]} : vector<8x16xf32> to vector<1x16xf32>
    %327 = vector.broadcast %325 : vector<16x1xf32> to vector<16x16xf32>
    %328 = vector.broadcast %326 : vector<1x16xf32> to vector<16x16xf32>
    %329 = arith.addf %327, %328 : vector<16x16xf32>
    %cst_98 = arith.constant 0.000000e+00 : f32
    %330 = vector.broadcast %cst_98 : f32 to vector<16x16xf32>
    %331 = arith.cmpf ogt, %329, %330 : vector<16x16xf32>
    %cst_99 = arith.constant 2.000000e-01 : f32
    %332 = vector.broadcast %cst_99 : f32 to vector<16x16xf32>
    %333 = arith.mulf %332, %329 : vector<16x16xf32>
    %334 = arith.select %331, %329, %333 : vector<16x16xi1>, vector<16x16xf32>
    %335 = arith.addf %334, %5 : vector<16x16xf32>
    %cst_100 = arith.constant dense<0xFF800000> : vector<16xf32>
    %336 = vector.multi_reduction <maximumf>, %335, %cst_100 [1] : vector<16x16xf32> to vector<16xf32>
    %337 = vector.shape_cast %336 : vector<16xf32> to vector<16x1xf32>
    %338 = vector.broadcast %337 : vector<16x1xf32> to vector<16x16xf32>
    %339 = arith.subf %335, %338 : vector<16x16xf32>
    %340 = math.exp %339 : vector<16x16xf32>
    %cst_101 = arith.constant dense<0.000000e+00> : vector<16xf32>
    %341 = vector.multi_reduction <add>, %340, %cst_101 [1] : vector<16x16xf32> to vector<16xf32>
    %342 = vector.shape_cast %341 : vector<16xf32> to vector<16x1xf32>
    %343 = tpu.reciprocal %342 {approx = true} : vector<16x1xf32> -> vector<16x1xf32>
    %344 = vector.broadcast %343 : vector<16x1xf32> to vector<16x16xf32>
    %345 = arith.mulf %340, %344 : vector<16x16xf32>
    %346 = vector.extract_strided_slice %6 {offsets = [2, 0], sizes = [1, 128], strides = [1, 1]} : vector<4x128xf32> to vector<1x128xf32>
    %347 = vector.broadcast %346 : vector<1x128xf32> to vector<16x128xf32>
    %348 = arith.mulf %269, %347 : vector<16x128xf32>
    %cst_102 = arith.constant dense<0.000000e+00> : vector<16x128xf32>
    %349 = tpu.matmul %345, %348, %cst_102 {dimension_numbers = #tpu.dot_dimension_numbers<[1], [0], [0], [1], [0, 0, 1, 1], [], []>} : vector<16x16xf32>, vector<16x128xf32>, vector<16x128xf32> -> vector<16x128xf32>
    %350 = arith.addf %324, %349 : vector<16x128xf32>
    %351 = vector.extract_strided_slice %270 {offsets = [0, 7], sizes = [16, 1], strides = [1, 1]} : vector<16x8xf32> to vector<16x1xf32>
    %352 = vector.extract_strided_slice %271 {offsets = [3, 0], sizes = [1, 16], strides = [1, 1]} : vector<8x16xf32> to vector<1x16xf32>
    %353 = vector.broadcast %351 : vector<16x1xf32> to vector<16x16xf32>
    %354 = vector.broadcast %352 : vector<1x16xf32> to vector<16x16xf32>
    %355 = arith.addf %353, %354 : vector<16x16xf32>
    %cst_103 = arith.constant 0.000000e+00 : f32
    %356 = vector.broadcast %cst_103 : f32 to vector<16x16xf32>
    %357 = arith.cmpf ogt, %355, %356 : vector<16x16xf32>
    %cst_104 = arith.constant 2.000000e-01 : f32
    %358 = vector.broadcast %cst_104 : f32 to vector<16x16xf32>
    %359 = arith.mulf %358, %355 : vector<16x16xf32>
    %360 = arith.select %357, %355, %359 : vector<16x16xi1>, vector<16x16xf32>
    %361 = arith.addf %360, %5 : vector<16x16xf32>
    %cst_105 = arith.constant dense<0xFF800000> : vector<16xf32>
    %362 = vector.multi_reduction <maximumf>, %361, %cst_105 [1] : vector<16x16xf32> to vector<16xf32>
    %363 = vector.shape_cast %362 : vector<16xf32> to vector<16x1xf32>
    %364 = vector.broadcast %363 : vector<16x1xf32> to vector<16x16xf32>
    %365 = arith.subf %361, %364 : vector<16x16xf32>
    %366 = math.exp %365 : vector<16x16xf32>
    %cst_106 = arith.constant dense<0.000000e+00> : vector<16xf32>
    %367 = vector.multi_reduction <add>, %366, %cst_106 [1] : vector<16x16xf32> to vector<16xf32>
    %368 = vector.shape_cast %367 : vector<16xf32> to vector<16x1xf32>
    %369 = tpu.reciprocal %368 {approx = true} : vector<16x1xf32> -> vector<16x1xf32>
    %370 = vector.broadcast %369 : vector<16x1xf32> to vector<16x16xf32>
    %371 = arith.mulf %366, %370 : vector<16x16xf32>
    %372 = vector.extract_strided_slice %6 {offsets = [3, 0], sizes = [1, 128], strides = [1, 1]} : vector<4x128xf32> to vector<1x128xf32>
    %373 = vector.broadcast %372 : vector<1x128xf32> to vector<16x128xf32>
    %374 = arith.mulf %269, %373 : vector<16x128xf32>
    %cst_107 = arith.constant dense<0.000000e+00> : vector<16x128xf32>
    %375 = tpu.matmul %371, %374, %cst_107 {dimension_numbers = #tpu.dot_dimension_numbers<[1], [0], [0], [1], [0, 0, 1, 1], [], []>} : vector<16x16xf32>, vector<16x128xf32>, vector<16x128xf32> -> vector<16x128xf32>
    %376 = arith.addf %350, %375 : vector<16x128xf32>
    %cst_108 = arith.constant 0.000000e+00 : f32
    %377 = vector.broadcast %cst_108 : f32 to vector<16x128xf32>
    %378 = arith.maximumf %376, %377 : vector<16x128xf32>
    %379 = arith.addf %378, %262 : vector<16x128xf32>
    %cst_109 = arith.constant 0.000000e+00 : f32
    %380 = vector.broadcast %cst_109 : f32 to vector<16x128xf32>
    %381 = arith.maximumf %379, %380 : vector<16x128xf32>
    %cst_110 = arith.constant dense<0.000000e+00> : vector<128xf32>
    %382 = vector.multi_reduction <add>, %381, %cst_110 [0] : vector<16x128xf32> to vector<128xf32>
    %383 = vector.shape_cast %382 : vector<128xf32> to vector<1x128xf32>
    %cst_111 = arith.constant 1.600000e+01 : f32
    %384 = vector.broadcast %cst_111 : f32 to vector<1x128xf32>
    %385 = arith.divf %383, %384 : vector<1x128xf32>
    %386 = vector.broadcast %385 : vector<1x128xf32> to vector<16x128xf32>
    %387 = arith.subf %381, %386 : vector<16x128xf32>
    %388 = vector.broadcast %385 : vector<1x128xf32> to vector<16x128xf32>
    %389 = arith.subf %381, %388 : vector<16x128xf32>
    %390 = arith.mulf %387, %389 : vector<16x128xf32>
    %cst_112 = arith.constant dense<0.000000e+00> : vector<128xf32>
    %391 = vector.multi_reduction <add>, %390, %cst_112 [0] : vector<16x128xf32> to vector<128xf32>
    %392 = vector.shape_cast %391 : vector<128xf32> to vector<1x128xf32>
    %cst_113 = arith.constant 1.600000e+01 : f32
    %393 = vector.broadcast %cst_113 : f32 to vector<1x128xf32>
    %394 = arith.divf %392, %393 : vector<1x128xf32>
    %395 = vector.broadcast %385 : vector<1x128xf32> to vector<16x128xf32>
    %396 = arith.subf %381, %395 : vector<16x128xf32>
    %cst_114 = arith.constant 9.99999974E-6 : f32
    %397 = vector.broadcast %cst_114 : f32 to vector<1x128xf32>
    %398 = arith.addf %394, %397 : vector<1x128xf32>
    %399 = math.rsqrt %398 : vector<1x128xf32>
    %400 = vector.broadcast %399 : vector<1x128xf32> to vector<16x128xf32>
    %401 = arith.mulf %396, %400 : vector<16x128xf32>
    %c1_115 = arith.constant 1 : index
    %c0_116 = arith.constant 0 : index
    %c0_117 = arith.constant 0 : index
    %402 = vector.load %arg11[%c1_115, %c0_116, %c0_117] : memref<4x1x128xf32, #tpu.memory_space<vmem>>, vector<1x1x128xf32>
    %403 = vector.shape_cast %402 : vector<1x1x128xf32> to vector<1x128xf32>
    %404 = vector.broadcast %403 : vector<1x128xf32> to vector<16x128xf32>
    %405 = arith.mulf %401, %404 : vector<16x128xf32>
    %c1_118 = arith.constant 1 : index
    %c0_119 = arith.constant 0 : index
    %c0_120 = arith.constant 0 : index
    %406 = vector.load %arg12[%c1_118, %c0_119, %c0_120] : memref<4x1x128xf32, #tpu.memory_space<vmem>>, vector<1x1x128xf32>
    %407 = vector.shape_cast %406 : vector<1x1x128xf32> to vector<1x128xf32>
    %408 = vector.broadcast %407 : vector<1x128xf32> to vector<16x128xf32>
    %409 = arith.addf %405, %408 : vector<16x128xf32>
    %c2 = arith.constant 2 : index
    %c0_121 = arith.constant 0 : index
    %c0_122 = arith.constant 0 : index
    %410 = vector.load %arg8[%c2, %c0_121, %c0_122] : memref<4x128x128xf32, #tpu.memory_space<vmem>>, vector<1x128x128xf32>
    %411 = vector.shape_cast %410 : vector<1x128x128xf32> to vector<128x128xf32>
    %c2_123 = arith.constant 2 : index
    %c0_124 = arith.constant 0 : index
    %c0_125 = arith.constant 0 : index
    %412 = vector.load %arg9[%c2_123, %c0_124, %c0_125] : memref<4x128x8xf32, #tpu.memory_space<vmem>>, vector<1x128x8xf32>
    %413 = vector.shape_cast %412 : vector<1x128x8xf32> to vector<128x8xf32>
    %c2_126 = arith.constant 2 : index
    %c0_127 = arith.constant 0 : index
    %c0_128 = arith.constant 0 : index
    %414 = vector.load %arg10[%c2_126, %c0_127, %c0_128] : memref<4x1x128xf32, #tpu.memory_space<vmem>>, vector<1x1x128xf32>
    %415 = vector.shape_cast %414 : vector<1x1x128xf32> to vector<1x128xf32>
    %cst_129 = arith.constant dense<0.000000e+00> : vector<16x128xf32>
    %416 = tpu.matmul %409, %411, %cst_129 {dimension_numbers = #tpu.dot_dimension_numbers<[1], [0], [0], [1], [0, 0, 1, 1], [], []>} : vector<16x128xf32>, vector<128x128xf32>, vector<16x128xf32> -> vector<16x128xf32>
    %cst_130 = arith.constant dense<0.000000e+00> : vector<16x8xf32>
    %417 = tpu.matmul %416, %413, %cst_130 {dimension_numbers = #tpu.dot_dimension_numbers<[1], [0], [0], [1], [0, 0, 1, 1], [], []>} : vector<16x128xf32>, vector<128x8xf32>, vector<16x8xf32> -> vector<16x8xf32>
    %418 = tpu.transpose %417, [1, 0] : vector<16x8xf32> -> vector<8x16xf32>
    %419 = vector.extract_strided_slice %417 {offsets = [0, 4], sizes = [16, 1], strides = [1, 1]} : vector<16x8xf32> to vector<16x1xf32>
    %420 = vector.extract_strided_slice %418 {offsets = [0, 0], sizes = [1, 16], strides = [1, 1]} : vector<8x16xf32> to vector<1x16xf32>
    %421 = vector.broadcast %419 : vector<16x1xf32> to vector<16x16xf32>
    %422 = vector.broadcast %420 : vector<1x16xf32> to vector<16x16xf32>
    %423 = arith.addf %421, %422 : vector<16x16xf32>
    %cst_131 = arith.constant 0.000000e+00 : f32
    %424 = vector.broadcast %cst_131 : f32 to vector<16x16xf32>
    %425 = arith.cmpf ogt, %423, %424 : vector<16x16xf32>
    %cst_132 = arith.constant 2.000000e-01 : f32
    %426 = vector.broadcast %cst_132 : f32 to vector<16x16xf32>
    %427 = arith.mulf %426, %423 : vector<16x16xf32>
    %428 = arith.select %425, %423, %427 : vector<16x16xi1>, vector<16x16xf32>
    %429 = arith.addf %428, %5 : vector<16x16xf32>
    %cst_133 = arith.constant dense<0xFF800000> : vector<16xf32>
    %430 = vector.multi_reduction <maximumf>, %429, %cst_133 [1] : vector<16x16xf32> to vector<16xf32>
    %431 = vector.shape_cast %430 : vector<16xf32> to vector<16x1xf32>
    %432 = vector.broadcast %431 : vector<16x1xf32> to vector<16x16xf32>
    %433 = arith.subf %429, %432 : vector<16x16xf32>
    %434 = math.exp %433 : vector<16x16xf32>
    %cst_134 = arith.constant dense<0.000000e+00> : vector<16xf32>
    %435 = vector.multi_reduction <add>, %434, %cst_134 [1] : vector<16x16xf32> to vector<16xf32>
    %436 = vector.shape_cast %435 : vector<16xf32> to vector<16x1xf32>
    %437 = tpu.reciprocal %436 {approx = true} : vector<16x1xf32> -> vector<16x1xf32>
    %438 = vector.broadcast %437 : vector<16x1xf32> to vector<16x16xf32>
    %439 = arith.mulf %434, %438 : vector<16x16xf32>
    %440 = vector.extract_strided_slice %6 {offsets = [0, 0], sizes = [1, 128], strides = [1, 1]} : vector<4x128xf32> to vector<1x128xf32>
    %441 = vector.broadcast %440 : vector<1x128xf32> to vector<16x128xf32>
    %442 = arith.mulf %416, %441 : vector<16x128xf32>
    %cst_135 = arith.constant dense<0.000000e+00> : vector<16x128xf32>
    %443 = tpu.matmul %439, %442, %cst_135 {dimension_numbers = #tpu.dot_dimension_numbers<[1], [0], [0], [1], [0, 0, 1, 1], [], []>} : vector<16x16xf32>, vector<16x128xf32>, vector<16x128xf32> -> vector<16x128xf32>
    %444 = vector.broadcast %415 : vector<1x128xf32> to vector<16x128xf32>
    %445 = arith.addf %444, %443 : vector<16x128xf32>
    %446 = vector.extract_strided_slice %417 {offsets = [0, 5], sizes = [16, 1], strides = [1, 1]} : vector<16x8xf32> to vector<16x1xf32>
    %447 = vector.extract_strided_slice %418 {offsets = [1, 0], sizes = [1, 16], strides = [1, 1]} : vector<8x16xf32> to vector<1x16xf32>
    %448 = vector.broadcast %446 : vector<16x1xf32> to vector<16x16xf32>
    %449 = vector.broadcast %447 : vector<1x16xf32> to vector<16x16xf32>
    %450 = arith.addf %448, %449 : vector<16x16xf32>
    %cst_136 = arith.constant 0.000000e+00 : f32
    %451 = vector.broadcast %cst_136 : f32 to vector<16x16xf32>
    %452 = arith.cmpf ogt, %450, %451 : vector<16x16xf32>
    %cst_137 = arith.constant 2.000000e-01 : f32
    %453 = vector.broadcast %cst_137 : f32 to vector<16x16xf32>
    %454 = arith.mulf %453, %450 : vector<16x16xf32>
    %455 = arith.select %452, %450, %454 : vector<16x16xi1>, vector<16x16xf32>
    %456 = arith.addf %455, %5 : vector<16x16xf32>
    %cst_138 = arith.constant dense<0xFF800000> : vector<16xf32>
    %457 = vector.multi_reduction <maximumf>, %456, %cst_138 [1] : vector<16x16xf32> to vector<16xf32>
    %458 = vector.shape_cast %457 : vector<16xf32> to vector<16x1xf32>
    %459 = vector.broadcast %458 : vector<16x1xf32> to vector<16x16xf32>
    %460 = arith.subf %456, %459 : vector<16x16xf32>
    %461 = math.exp %460 : vector<16x16xf32>
    %cst_139 = arith.constant dense<0.000000e+00> : vector<16xf32>
    %462 = vector.multi_reduction <add>, %461, %cst_139 [1] : vector<16x16xf32> to vector<16xf32>
    %463 = vector.shape_cast %462 : vector<16xf32> to vector<16x1xf32>
    %464 = tpu.reciprocal %463 {approx = true} : vector<16x1xf32> -> vector<16x1xf32>
    %465 = vector.broadcast %464 : vector<16x1xf32> to vector<16x16xf32>
    %466 = arith.mulf %461, %465 : vector<16x16xf32>
    %467 = vector.extract_strided_slice %6 {offsets = [1, 0], sizes = [1, 128], strides = [1, 1]} : vector<4x128xf32> to vector<1x128xf32>
    %468 = vector.broadcast %467 : vector<1x128xf32> to vector<16x128xf32>
    %469 = arith.mulf %416, %468 : vector<16x128xf32>
    %cst_140 = arith.constant dense<0.000000e+00> : vector<16x128xf32>
    %470 = tpu.matmul %466, %469, %cst_140 {dimension_numbers = #tpu.dot_dimension_numbers<[1], [0], [0], [1], [0, 0, 1, 1], [], []>} : vector<16x16xf32>, vector<16x128xf32>, vector<16x128xf32> -> vector<16x128xf32>
    %471 = arith.addf %445, %470 : vector<16x128xf32>
    %472 = vector.extract_strided_slice %417 {offsets = [0, 6], sizes = [16, 1], strides = [1, 1]} : vector<16x8xf32> to vector<16x1xf32>
    %473 = vector.extract_strided_slice %418 {offsets = [2, 0], sizes = [1, 16], strides = [1, 1]} : vector<8x16xf32> to vector<1x16xf32>
    %474 = vector.broadcast %472 : vector<16x1xf32> to vector<16x16xf32>
    %475 = vector.broadcast %473 : vector<1x16xf32> to vector<16x16xf32>
    %476 = arith.addf %474, %475 : vector<16x16xf32>
    %cst_141 = arith.constant 0.000000e+00 : f32
    %477 = vector.broadcast %cst_141 : f32 to vector<16x16xf32>
    %478 = arith.cmpf ogt, %476, %477 : vector<16x16xf32>
    %cst_142 = arith.constant 2.000000e-01 : f32
    %479 = vector.broadcast %cst_142 : f32 to vector<16x16xf32>
    %480 = arith.mulf %479, %476 : vector<16x16xf32>
    %481 = arith.select %478, %476, %480 : vector<16x16xi1>, vector<16x16xf32>
    %482 = arith.addf %481, %5 : vector<16x16xf32>
    %cst_143 = arith.constant dense<0xFF800000> : vector<16xf32>
    %483 = vector.multi_reduction <maximumf>, %482, %cst_143 [1] : vector<16x16xf32> to vector<16xf32>
    %484 = vector.shape_cast %483 : vector<16xf32> to vector<16x1xf32>
    %485 = vector.broadcast %484 : vector<16x1xf32> to vector<16x16xf32>
    %486 = arith.subf %482, %485 : vector<16x16xf32>
    %487 = math.exp %486 : vector<16x16xf32>
    %cst_144 = arith.constant dense<0.000000e+00> : vector<16xf32>
    %488 = vector.multi_reduction <add>, %487, %cst_144 [1] : vector<16x16xf32> to vector<16xf32>
    %489 = vector.shape_cast %488 : vector<16xf32> to vector<16x1xf32>
    %490 = tpu.reciprocal %489 {approx = true} : vector<16x1xf32> -> vector<16x1xf32>
    %491 = vector.broadcast %490 : vector<16x1xf32> to vector<16x16xf32>
    %492 = arith.mulf %487, %491 : vector<16x16xf32>
    %493 = vector.extract_strided_slice %6 {offsets = [2, 0], sizes = [1, 128], strides = [1, 1]} : vector<4x128xf32> to vector<1x128xf32>
    %494 = vector.broadcast %493 : vector<1x128xf32> to vector<16x128xf32>
    %495 = arith.mulf %416, %494 : vector<16x128xf32>
    %cst_145 = arith.constant dense<0.000000e+00> : vector<16x128xf32>
    %496 = tpu.matmul %492, %495, %cst_145 {dimension_numbers = #tpu.dot_dimension_numbers<[1], [0], [0], [1], [0, 0, 1, 1], [], []>} : vector<16x16xf32>, vector<16x128xf32>, vector<16x128xf32> -> vector<16x128xf32>
    %497 = arith.addf %471, %496 : vector<16x128xf32>
    %498 = vector.extract_strided_slice %417 {offsets = [0, 7], sizes = [16, 1], strides = [1, 1]} : vector<16x8xf32> to vector<16x1xf32>
    %499 = vector.extract_strided_slice %418 {offsets = [3, 0], sizes = [1, 16], strides = [1, 1]} : vector<8x16xf32> to vector<1x16xf32>
    %500 = vector.broadcast %498 : vector<16x1xf32> to vector<16x16xf32>
    %501 = vector.broadcast %499 : vector<1x16xf32> to vector<16x16xf32>
    %502 = arith.addf %500, %501 : vector<16x16xf32>
    %cst_146 = arith.constant 0.000000e+00 : f32
    %503 = vector.broadcast %cst_146 : f32 to vector<16x16xf32>
    %504 = arith.cmpf ogt, %502, %503 : vector<16x16xf32>
    %cst_147 = arith.constant 2.000000e-01 : f32
    %505 = vector.broadcast %cst_147 : f32 to vector<16x16xf32>
    %506 = arith.mulf %505, %502 : vector<16x16xf32>
    %507 = arith.select %504, %502, %506 : vector<16x16xi1>, vector<16x16xf32>
    %508 = arith.addf %507, %5 : vector<16x16xf32>
    %cst_148 = arith.constant dense<0xFF800000> : vector<16xf32>
    %509 = vector.multi_reduction <maximumf>, %508, %cst_148 [1] : vector<16x16xf32> to vector<16xf32>
    %510 = vector.shape_cast %509 : vector<16xf32> to vector<16x1xf32>
    %511 = vector.broadcast %510 : vector<16x1xf32> to vector<16x16xf32>
    %512 = arith.subf %508, %511 : vector<16x16xf32>
    %513 = math.exp %512 : vector<16x16xf32>
    %cst_149 = arith.constant dense<0.000000e+00> : vector<16xf32>
    %514 = vector.multi_reduction <add>, %513, %cst_149 [1] : vector<16x16xf32> to vector<16xf32>
    %515 = vector.shape_cast %514 : vector<16xf32> to vector<16x1xf32>
    %516 = tpu.reciprocal %515 {approx = true} : vector<16x1xf32> -> vector<16x1xf32>
    %517 = vector.broadcast %516 : vector<16x1xf32> to vector<16x16xf32>
    %518 = arith.mulf %513, %517 : vector<16x16xf32>
    %519 = vector.extract_strided_slice %6 {offsets = [3, 0], sizes = [1, 128], strides = [1, 1]} : vector<4x128xf32> to vector<1x128xf32>
    %520 = vector.broadcast %519 : vector<1x128xf32> to vector<16x128xf32>
    %521 = arith.mulf %416, %520 : vector<16x128xf32>
    %cst_150 = arith.constant dense<0.000000e+00> : vector<16x128xf32>
    %522 = tpu.matmul %518, %521, %cst_150 {dimension_numbers = #tpu.dot_dimension_numbers<[1], [0], [0], [1], [0, 0, 1, 1], [], []>} : vector<16x16xf32>, vector<16x128xf32>, vector<16x128xf32> -> vector<16x128xf32>
    %523 = arith.addf %497, %522 : vector<16x128xf32>
    %cst_151 = arith.constant 0.000000e+00 : f32
    %524 = vector.broadcast %cst_151 : f32 to vector<16x128xf32>
    %525 = arith.maximumf %523, %524 : vector<16x128xf32>
    %526 = arith.addf %525, %118 : vector<16x128xf32>
    %cst_152 = arith.constant 0.000000e+00 : f32
    %527 = vector.broadcast %cst_152 : f32 to vector<16x128xf32>
    %528 = arith.maximumf %526, %527 : vector<16x128xf32>
    %cst_153 = arith.constant dense<0.000000e+00> : vector<128xf32>
    %529 = vector.multi_reduction <add>, %528, %cst_153 [0] : vector<16x128xf32> to vector<128xf32>
    %530 = vector.shape_cast %529 : vector<128xf32> to vector<1x128xf32>
    %cst_154 = arith.constant 1.600000e+01 : f32
    %531 = vector.broadcast %cst_154 : f32 to vector<1x128xf32>
    %532 = arith.divf %530, %531 : vector<1x128xf32>
    %533 = vector.broadcast %532 : vector<1x128xf32> to vector<16x128xf32>
    %534 = arith.subf %528, %533 : vector<16x128xf32>
    %535 = vector.broadcast %532 : vector<1x128xf32> to vector<16x128xf32>
    %536 = arith.subf %528, %535 : vector<16x128xf32>
    %537 = arith.mulf %534, %536 : vector<16x128xf32>
    %cst_155 = arith.constant dense<0.000000e+00> : vector<128xf32>
    %538 = vector.multi_reduction <add>, %537, %cst_155 [0] : vector<16x128xf32> to vector<128xf32>
    %539 = vector.shape_cast %538 : vector<128xf32> to vector<1x128xf32>
    %cst_156 = arith.constant 1.600000e+01 : f32
    %540 = vector.broadcast %cst_156 : f32 to vector<1x128xf32>
    %541 = arith.divf %539, %540 : vector<1x128xf32>
    %542 = vector.broadcast %532 : vector<1x128xf32> to vector<16x128xf32>
    %543 = arith.subf %528, %542 : vector<16x128xf32>
    %cst_157 = arith.constant 9.99999974E-6 : f32
    %544 = vector.broadcast %cst_157 : f32 to vector<1x128xf32>
    %545 = arith.addf %541, %544 : vector<1x128xf32>
    %546 = math.rsqrt %545 : vector<1x128xf32>
    %547 = vector.broadcast %546 : vector<1x128xf32> to vector<16x128xf32>
    %548 = arith.mulf %543, %547 : vector<16x128xf32>
    %c2_158 = arith.constant 2 : index
    %c0_159 = arith.constant 0 : index
    %c0_160 = arith.constant 0 : index
    %549 = vector.load %arg11[%c2_158, %c0_159, %c0_160] : memref<4x1x128xf32, #tpu.memory_space<vmem>>, vector<1x1x128xf32>
    %550 = vector.shape_cast %549 : vector<1x1x128xf32> to vector<1x128xf32>
    %551 = vector.broadcast %550 : vector<1x128xf32> to vector<16x128xf32>
    %552 = arith.mulf %548, %551 : vector<16x128xf32>
    %c2_161 = arith.constant 2 : index
    %c0_162 = arith.constant 0 : index
    %c0_163 = arith.constant 0 : index
    %553 = vector.load %arg12[%c2_161, %c0_162, %c0_163] : memref<4x1x128xf32, #tpu.memory_space<vmem>>, vector<1x1x128xf32>
    %554 = vector.shape_cast %553 : vector<1x1x128xf32> to vector<1x128xf32>
    %555 = vector.broadcast %554 : vector<1x128xf32> to vector<16x128xf32>
    %556 = arith.addf %552, %555 : vector<16x128xf32>
    %c3 = arith.constant 3 : index
    %c0_164 = arith.constant 0 : index
    %c0_165 = arith.constant 0 : index
    %557 = vector.load %arg8[%c3, %c0_164, %c0_165] : memref<4x128x128xf32, #tpu.memory_space<vmem>>, vector<1x128x128xf32>
    %558 = vector.shape_cast %557 : vector<1x128x128xf32> to vector<128x128xf32>
    %c3_166 = arith.constant 3 : index
    %c0_167 = arith.constant 0 : index
    %c0_168 = arith.constant 0 : index
    %559 = vector.load %arg9[%c3_166, %c0_167, %c0_168] : memref<4x128x8xf32, #tpu.memory_space<vmem>>, vector<1x128x8xf32>
    %560 = vector.shape_cast %559 : vector<1x128x8xf32> to vector<128x8xf32>
    %c3_169 = arith.constant 3 : index
    %c0_170 = arith.constant 0 : index
    %c0_171 = arith.constant 0 : index
    %561 = vector.load %arg10[%c3_169, %c0_170, %c0_171] : memref<4x1x128xf32, #tpu.memory_space<vmem>>, vector<1x1x128xf32>
    %562 = vector.shape_cast %561 : vector<1x1x128xf32> to vector<1x128xf32>
    %cst_172 = arith.constant dense<0.000000e+00> : vector<16x128xf32>
    %563 = tpu.matmul %556, %558, %cst_172 {dimension_numbers = #tpu.dot_dimension_numbers<[1], [0], [0], [1], [0, 0, 1, 1], [], []>} : vector<16x128xf32>, vector<128x128xf32>, vector<16x128xf32> -> vector<16x128xf32>
    %cst_173 = arith.constant dense<0.000000e+00> : vector<16x8xf32>
    %564 = tpu.matmul %563, %560, %cst_173 {dimension_numbers = #tpu.dot_dimension_numbers<[1], [0], [0], [1], [0, 0, 1, 1], [], []>} : vector<16x128xf32>, vector<128x8xf32>, vector<16x8xf32> -> vector<16x8xf32>
    %565 = tpu.transpose %564, [1, 0] : vector<16x8xf32> -> vector<8x16xf32>
    %566 = vector.extract_strided_slice %564 {offsets = [0, 4], sizes = [16, 1], strides = [1, 1]} : vector<16x8xf32> to vector<16x1xf32>
    %567 = vector.extract_strided_slice %565 {offsets = [0, 0], sizes = [1, 16], strides = [1, 1]} : vector<8x16xf32> to vector<1x16xf32>
    %568 = vector.broadcast %566 : vector<16x1xf32> to vector<16x16xf32>
    %569 = vector.broadcast %567 : vector<1x16xf32> to vector<16x16xf32>
    %570 = arith.addf %568, %569 : vector<16x16xf32>
    %cst_174 = arith.constant 0.000000e+00 : f32
    %571 = vector.broadcast %cst_174 : f32 to vector<16x16xf32>
    %572 = arith.cmpf ogt, %570, %571 : vector<16x16xf32>
    %cst_175 = arith.constant 2.000000e-01 : f32
    %573 = vector.broadcast %cst_175 : f32 to vector<16x16xf32>
    %574 = arith.mulf %573, %570 : vector<16x16xf32>
    %575 = arith.select %572, %570, %574 : vector<16x16xi1>, vector<16x16xf32>
    %576 = arith.addf %575, %5 : vector<16x16xf32>
    %cst_176 = arith.constant dense<0xFF800000> : vector<16xf32>
    %577 = vector.multi_reduction <maximumf>, %576, %cst_176 [1] : vector<16x16xf32> to vector<16xf32>
    %578 = vector.shape_cast %577 : vector<16xf32> to vector<16x1xf32>
    %579 = vector.broadcast %578 : vector<16x1xf32> to vector<16x16xf32>
    %580 = arith.subf %576, %579 : vector<16x16xf32>
    %581 = math.exp %580 : vector<16x16xf32>
    %cst_177 = arith.constant dense<0.000000e+00> : vector<16xf32>
    %582 = vector.multi_reduction <add>, %581, %cst_177 [1] : vector<16x16xf32> to vector<16xf32>
    %583 = vector.shape_cast %582 : vector<16xf32> to vector<16x1xf32>
    %584 = tpu.reciprocal %583 {approx = true} : vector<16x1xf32> -> vector<16x1xf32>
    %585 = vector.broadcast %584 : vector<16x1xf32> to vector<16x16xf32>
    %586 = arith.mulf %581, %585 : vector<16x16xf32>
    %587 = vector.extract_strided_slice %6 {offsets = [0, 0], sizes = [1, 128], strides = [1, 1]} : vector<4x128xf32> to vector<1x128xf32>
    %588 = vector.broadcast %587 : vector<1x128xf32> to vector<16x128xf32>
    %589 = arith.mulf %563, %588 : vector<16x128xf32>
    %cst_178 = arith.constant dense<0.000000e+00> : vector<16x128xf32>
    %590 = tpu.matmul %586, %589, %cst_178 {dimension_numbers = #tpu.dot_dimension_numbers<[1], [0], [0], [1], [0, 0, 1, 1], [], []>} : vector<16x16xf32>, vector<16x128xf32>, vector<16x128xf32> -> vector<16x128xf32>
    %591 = vector.broadcast %562 : vector<1x128xf32> to vector<16x128xf32>
    %592 = arith.addf %591, %590 : vector<16x128xf32>
    %593 = vector.extract_strided_slice %564 {offsets = [0, 5], sizes = [16, 1], strides = [1, 1]} : vector<16x8xf32> to vector<16x1xf32>
    %594 = vector.extract_strided_slice %565 {offsets = [1, 0], sizes = [1, 16], strides = [1, 1]} : vector<8x16xf32> to vector<1x16xf32>
    %595 = vector.broadcast %593 : vector<16x1xf32> to vector<16x16xf32>
    %596 = vector.broadcast %594 : vector<1x16xf32> to vector<16x16xf32>
    %597 = arith.addf %595, %596 : vector<16x16xf32>
    %cst_179 = arith.constant 0.000000e+00 : f32
    %598 = vector.broadcast %cst_179 : f32 to vector<16x16xf32>
    %599 = arith.cmpf ogt, %597, %598 : vector<16x16xf32>
    %cst_180 = arith.constant 2.000000e-01 : f32
    %600 = vector.broadcast %cst_180 : f32 to vector<16x16xf32>
    %601 = arith.mulf %600, %597 : vector<16x16xf32>
    %602 = arith.select %599, %597, %601 : vector<16x16xi1>, vector<16x16xf32>
    %603 = arith.addf %602, %5 : vector<16x16xf32>
    %cst_181 = arith.constant dense<0xFF800000> : vector<16xf32>
    %604 = vector.multi_reduction <maximumf>, %603, %cst_181 [1] : vector<16x16xf32> to vector<16xf32>
    %605 = vector.shape_cast %604 : vector<16xf32> to vector<16x1xf32>
    %606 = vector.broadcast %605 : vector<16x1xf32> to vector<16x16xf32>
    %607 = arith.subf %603, %606 : vector<16x16xf32>
    %608 = math.exp %607 : vector<16x16xf32>
    %cst_182 = arith.constant dense<0.000000e+00> : vector<16xf32>
    %609 = vector.multi_reduction <add>, %608, %cst_182 [1] : vector<16x16xf32> to vector<16xf32>
    %610 = vector.shape_cast %609 : vector<16xf32> to vector<16x1xf32>
    %611 = tpu.reciprocal %610 {approx = true} : vector<16x1xf32> -> vector<16x1xf32>
    %612 = vector.broadcast %611 : vector<16x1xf32> to vector<16x16xf32>
    %613 = arith.mulf %608, %612 : vector<16x16xf32>
    %614 = vector.extract_strided_slice %6 {offsets = [1, 0], sizes = [1, 128], strides = [1, 1]} : vector<4x128xf32> to vector<1x128xf32>
    %615 = vector.broadcast %614 : vector<1x128xf32> to vector<16x128xf32>
    %616 = arith.mulf %563, %615 : vector<16x128xf32>
    %cst_183 = arith.constant dense<0.000000e+00> : vector<16x128xf32>
    %617 = tpu.matmul %613, %616, %cst_183 {dimension_numbers = #tpu.dot_dimension_numbers<[1], [0], [0], [1], [0, 0, 1, 1], [], []>} : vector<16x16xf32>, vector<16x128xf32>, vector<16x128xf32> -> vector<16x128xf32>
    %618 = arith.addf %592, %617 : vector<16x128xf32>
    %619 = vector.extract_strided_slice %564 {offsets = [0, 6], sizes = [16, 1], strides = [1, 1]} : vector<16x8xf32> to vector<16x1xf32>
    %620 = vector.extract_strided_slice %565 {offsets = [2, 0], sizes = [1, 16], strides = [1, 1]} : vector<8x16xf32> to vector<1x16xf32>
    %621 = vector.broadcast %619 : vector<16x1xf32> to vector<16x16xf32>
    %622 = vector.broadcast %620 : vector<1x16xf32> to vector<16x16xf32>
    %623 = arith.addf %621, %622 : vector<16x16xf32>
    %cst_184 = arith.constant 0.000000e+00 : f32
    %624 = vector.broadcast %cst_184 : f32 to vector<16x16xf32>
    %625 = arith.cmpf ogt, %623, %624 : vector<16x16xf32>
    %cst_185 = arith.constant 2.000000e-01 : f32
    %626 = vector.broadcast %cst_185 : f32 to vector<16x16xf32>
    %627 = arith.mulf %626, %623 : vector<16x16xf32>
    %628 = arith.select %625, %623, %627 : vector<16x16xi1>, vector<16x16xf32>
    %629 = arith.addf %628, %5 : vector<16x16xf32>
    %cst_186 = arith.constant dense<0xFF800000> : vector<16xf32>
    %630 = vector.multi_reduction <maximumf>, %629, %cst_186 [1] : vector<16x16xf32> to vector<16xf32>
    %631 = vector.shape_cast %630 : vector<16xf32> to vector<16x1xf32>
    %632 = vector.broadcast %631 : vector<16x1xf32> to vector<16x16xf32>
    %633 = arith.subf %629, %632 : vector<16x16xf32>
    %634 = math.exp %633 : vector<16x16xf32>
    %cst_187 = arith.constant dense<0.000000e+00> : vector<16xf32>
    %635 = vector.multi_reduction <add>, %634, %cst_187 [1] : vector<16x16xf32> to vector<16xf32>
    %636 = vector.shape_cast %635 : vector<16xf32> to vector<16x1xf32>
    %637 = tpu.reciprocal %636 {approx = true} : vector<16x1xf32> -> vector<16x1xf32>
    %638 = vector.broadcast %637 : vector<16x1xf32> to vector<16x16xf32>
    %639 = arith.mulf %634, %638 : vector<16x16xf32>
    %640 = vector.extract_strided_slice %6 {offsets = [2, 0], sizes = [1, 128], strides = [1, 1]} : vector<4x128xf32> to vector<1x128xf32>
    %641 = vector.broadcast %640 : vector<1x128xf32> to vector<16x128xf32>
    %642 = arith.mulf %563, %641 : vector<16x128xf32>
    %cst_188 = arith.constant dense<0.000000e+00> : vector<16x128xf32>
    %643 = tpu.matmul %639, %642, %cst_188 {dimension_numbers = #tpu.dot_dimension_numbers<[1], [0], [0], [1], [0, 0, 1, 1], [], []>} : vector<16x16xf32>, vector<16x128xf32>, vector<16x128xf32> -> vector<16x128xf32>
    %644 = arith.addf %618, %643 : vector<16x128xf32>
    %645 = vector.extract_strided_slice %564 {offsets = [0, 7], sizes = [16, 1], strides = [1, 1]} : vector<16x8xf32> to vector<16x1xf32>
    %646 = vector.extract_strided_slice %565 {offsets = [3, 0], sizes = [1, 16], strides = [1, 1]} : vector<8x16xf32> to vector<1x16xf32>
    %647 = vector.broadcast %645 : vector<16x1xf32> to vector<16x16xf32>
    %648 = vector.broadcast %646 : vector<1x16xf32> to vector<16x16xf32>
    %649 = arith.addf %647, %648 : vector<16x16xf32>
    %cst_189 = arith.constant 0.000000e+00 : f32
    %650 = vector.broadcast %cst_189 : f32 to vector<16x16xf32>
    %651 = arith.cmpf ogt, %649, %650 : vector<16x16xf32>
    %cst_190 = arith.constant 2.000000e-01 : f32
    %652 = vector.broadcast %cst_190 : f32 to vector<16x16xf32>
    %653 = arith.mulf %652, %649 : vector<16x16xf32>
    %654 = arith.select %651, %649, %653 : vector<16x16xi1>, vector<16x16xf32>
    %655 = arith.addf %654, %5 : vector<16x16xf32>
    %cst_191 = arith.constant dense<0xFF800000> : vector<16xf32>
    %656 = vector.multi_reduction <maximumf>, %655, %cst_191 [1] : vector<16x16xf32> to vector<16xf32>
    %657 = vector.shape_cast %656 : vector<16xf32> to vector<16x1xf32>
    %658 = vector.broadcast %657 : vector<16x1xf32> to vector<16x16xf32>
    %659 = arith.subf %655, %658 : vector<16x16xf32>
    %660 = math.exp %659 : vector<16x16xf32>
    %cst_192 = arith.constant dense<0.000000e+00> : vector<16xf32>
    %661 = vector.multi_reduction <add>, %660, %cst_192 [1] : vector<16x16xf32> to vector<16xf32>
    %662 = vector.shape_cast %661 : vector<16xf32> to vector<16x1xf32>
    %663 = tpu.reciprocal %662 {approx = true} : vector<16x1xf32> -> vector<16x1xf32>
    %664 = vector.broadcast %663 : vector<16x1xf32> to vector<16x16xf32>
    %665 = arith.mulf %660, %664 : vector<16x16xf32>
    %666 = vector.extract_strided_slice %6 {offsets = [3, 0], sizes = [1, 128], strides = [1, 1]} : vector<4x128xf32> to vector<1x128xf32>
    %667 = vector.broadcast %666 : vector<1x128xf32> to vector<16x128xf32>
    %668 = arith.mulf %563, %667 : vector<16x128xf32>
    %cst_193 = arith.constant dense<0.000000e+00> : vector<16x128xf32>
    %669 = tpu.matmul %665, %668, %cst_193 {dimension_numbers = #tpu.dot_dimension_numbers<[1], [0], [0], [1], [0, 0, 1, 1], [], []>} : vector<16x16xf32>, vector<16x128xf32>, vector<16x128xf32> -> vector<16x128xf32>
    %670 = arith.addf %644, %669 : vector<16x128xf32>
    %cst_194 = arith.constant 0.000000e+00 : f32
    %671 = vector.broadcast %cst_194 : f32 to vector<16x128xf32>
    %672 = arith.maximumf %670, %671 : vector<16x128xf32>
    %673 = arith.addf %672, %556 : vector<16x128xf32>
    %cst_195 = arith.constant 0.000000e+00 : f32
    %674 = vector.broadcast %cst_195 : f32 to vector<16x128xf32>
    %675 = arith.maximumf %673, %674 : vector<16x128xf32>
    %cst_196 = arith.constant dense<0.000000e+00> : vector<128xf32>
    %676 = vector.multi_reduction <add>, %675, %cst_196 [0] : vector<16x128xf32> to vector<128xf32>
    %677 = vector.shape_cast %676 : vector<128xf32> to vector<1x128xf32>
    %cst_197 = arith.constant 1.600000e+01 : f32
    %678 = vector.broadcast %cst_197 : f32 to vector<1x128xf32>
    %679 = arith.divf %677, %678 : vector<1x128xf32>
    %680 = vector.broadcast %679 : vector<1x128xf32> to vector<16x128xf32>
    %681 = arith.subf %675, %680 : vector<16x128xf32>
    %682 = vector.broadcast %679 : vector<1x128xf32> to vector<16x128xf32>
    %683 = arith.subf %675, %682 : vector<16x128xf32>
    %684 = arith.mulf %681, %683 : vector<16x128xf32>
    %cst_198 = arith.constant dense<0.000000e+00> : vector<128xf32>
    %685 = vector.multi_reduction <add>, %684, %cst_198 [0] : vector<16x128xf32> to vector<128xf32>
    %686 = vector.shape_cast %685 : vector<128xf32> to vector<1x128xf32>
    %cst_199 = arith.constant 1.600000e+01 : f32
    %687 = vector.broadcast %cst_199 : f32 to vector<1x128xf32>
    %688 = arith.divf %686, %687 : vector<1x128xf32>
    %689 = vector.broadcast %679 : vector<1x128xf32> to vector<16x128xf32>
    %690 = arith.subf %675, %689 : vector<16x128xf32>
    %cst_200 = arith.constant 9.99999974E-6 : f32
    %691 = vector.broadcast %cst_200 : f32 to vector<1x128xf32>
    %692 = arith.addf %688, %691 : vector<1x128xf32>
    %693 = math.rsqrt %692 : vector<1x128xf32>
    %694 = vector.broadcast %693 : vector<1x128xf32> to vector<16x128xf32>
    %695 = arith.mulf %690, %694 : vector<16x128xf32>
    %c3_201 = arith.constant 3 : index
    %c0_202 = arith.constant 0 : index
    %c0_203 = arith.constant 0 : index
    %696 = vector.load %arg11[%c3_201, %c0_202, %c0_203] : memref<4x1x128xf32, #tpu.memory_space<vmem>>, vector<1x1x128xf32>
    %697 = vector.shape_cast %696 : vector<1x1x128xf32> to vector<1x128xf32>
    %698 = vector.broadcast %697 : vector<1x128xf32> to vector<16x128xf32>
    %699 = arith.mulf %695, %698 : vector<16x128xf32>
    %c3_204 = arith.constant 3 : index
    %c0_205 = arith.constant 0 : index
    %c0_206 = arith.constant 0 : index
    %700 = vector.load %arg12[%c3_204, %c0_205, %c0_206] : memref<4x1x128xf32, #tpu.memory_space<vmem>>, vector<1x1x128xf32>
    %701 = vector.shape_cast %700 : vector<1x1x128xf32> to vector<1x128xf32>
    %702 = vector.broadcast %701 : vector<1x128xf32> to vector<16x128xf32>
    %703 = arith.addf %699, %702 : vector<16x128xf32>
    %c0_207 = arith.constant 0 : index
    %c0_208 = arith.constant 0 : index
    %704 = vector.load %arg3[%c0_207, %c0_208] : memref<2x16xf32, #tpu.memory_space<vmem>>, vector<2x16xf32>
    %cst_209 = arith.constant dense<0.000000e+00> : vector<2x128xf32>
    %705 = tpu.matmul %704, %703, %cst_209 {dimension_numbers = #tpu.dot_dimension_numbers<[1], [0], [0], [1], [0, 0, 1, 1], [], []>} : vector<2x16xf32>, vector<16x128xf32>, vector<2x128xf32> -> vector<2x128xf32>
    %c0_210 = arith.constant 0 : index
    %c0_211 = arith.constant 0 : index
    %706 = vector.load %arg13[%c0_210, %c0_211] : memref<128x32xf32, #tpu.memory_space<vmem>>, vector<128x32xf32>
    %cst_212 = arith.constant dense<0.000000e+00> : vector<2x32xf32>
    %707 = tpu.matmul %705, %706, %cst_212 {dimension_numbers = #tpu.dot_dimension_numbers<[1], [0], [0], [1], [0, 0, 1, 1], [], []>} : vector<2x128xf32>, vector<128x32xf32>, vector<2x32xf32> -> vector<2x32xf32>
    %c0_213 = arith.constant 0 : index
    %c0_214 = arith.constant 0 : index
    %708 = vector.load %arg14[%c0_213, %c0_214] : memref<1x32xf32, #tpu.memory_space<vmem>>, vector<1x32xf32>
    %709 = vector.broadcast %708 : vector<1x32xf32> to vector<2x32xf32>
    %710 = arith.addf %707, %709 : vector<2x32xf32>
    %c0_215 = arith.constant 0 : index
    %c0_216 = arith.constant 0 : index
    %711 = vector.load %arg15[%c0_215, %c0_216] : memref<2x32xf32, #tpu.memory_space<vmem>>, vector<2x32xf32>
    tpu.vector_store %arg15[%c0_215, %c0_216], %710 {strides = array<i32>} : memref<2x32xf32, #tpu.memory_space<vmem>>, vector<2x32xf32>,
    return
  }
  func.func @transform_0(%arg0: i32) -> (i32, i32) {
    %c0_i32 = arith.constant 0 : i32
    %c0_i32_0 = arith.constant 0 : i32
    %c0_i32_1 = arith.constant 0 : i32
    return %c0_i32, %c0_i32_0 : i32, i32
  }
  func.func @transform_1(%arg0: i32) -> (i32, i32) {
    %c0_i32 = arith.constant 0 : i32
    %c0_i32_0 = arith.constant 0 : i32
    %c0_i32_1 = arith.constant 0 : i32
    return %c0_i32, %c0_i32_0 : i32, i32
  }
  func.func @transform_2(%arg0: i32) -> (i32, i32) {
    %c0_i32 = arith.constant 0 : i32
    %c0_i32_0 = arith.constant 0 : i32
    %c0_i32_1 = arith.constant 0 : i32
    return %c0_i32, %c0_i32_0 : i32, i32
  }
  func.func @transform_3(%arg0: i32) -> (i32, i32) {
    %c0_i32 = arith.constant 0 : i32
    %c0_i32_0 = arith.constant 0 : i32
    %c0_i32_1 = arith.constant 0 : i32
    return %c0_i32, %c0_i32_0 : i32, i32
  }
  func.func @transform_4(%arg0: i32) -> (i32, i32) {
    %c0_i32 = arith.constant 0 : i32
    %c0_i32_0 = arith.constant 0 : i32
    %c0_i32_1 = arith.constant 0 : i32
    return %c0_i32, %c0_i32_0 : i32, i32
  }
  func.func @transform_5(%arg0: i32) -> (i32, i32) {
    %c0_i32 = arith.constant 0 : i32
    %c0_i32_0 = arith.constant 0 : i32
    %c0_i32_1 = arith.constant 0 : i32
    return %c0_i32, %c0_i32_0 : i32, i32
  }
  func.func @transform_6(%arg0: i32) -> (i32, i32) {
    %c0_i32 = arith.constant 0 : i32
    %c0_i32_0 = arith.constant 0 : i32
    %c0_i32_1 = arith.constant 0 : i32
    return %c0_i32, %c0_i32_0 : i32, i32
  }
  func.func @transform_7(%arg0: i32) -> (i32, i32, i32) {
    %c0_i32 = arith.constant 0 : i32
    %c0_i32_0 = arith.constant 0 : i32
    %c0_i32_1 = arith.constant 0 : i32
    %c0_i32_2 = arith.constant 0 : i32
    return %c0_i32, %c0_i32_0, %c0_i32_1 : i32, i32, i32
  }
  func.func @transform_8(%arg0: i32) -> (i32, i32, i32) {
    %c0_i32 = arith.constant 0 : i32
    %c0_i32_0 = arith.constant 0 : i32
    %c0_i32_1 = arith.constant 0 : i32
    %c0_i32_2 = arith.constant 0 : i32
    return %c0_i32, %c0_i32_0, %c0_i32_1 : i32, i32, i32
  }
  func.func @transform_9(%arg0: i32) -> (i32, i32, i32) {
    %c0_i32 = arith.constant 0 : i32
    %c0_i32_0 = arith.constant 0 : i32
    %c0_i32_1 = arith.constant 0 : i32
    %c0_i32_2 = arith.constant 0 : i32
    return %c0_i32, %c0_i32_0, %c0_i32_1 : i32, i32, i32
  }
  func.func @transform_10(%arg0: i32) -> (i32, i32, i32) {
    %c0_i32 = arith.constant 0 : i32
    %c0_i32_0 = arith.constant 0 : i32
    %c0_i32_1 = arith.constant 0 : i32
    %c0_i32_2 = arith.constant 0 : i32
    return %c0_i32, %c0_i32_0, %c0_i32_1 : i32, i32, i32
  }
  func.func @transform_11(%arg0: i32) -> (i32, i32, i32) {
    %c0_i32 = arith.constant 0 : i32
    %c0_i32_0 = arith.constant 0 : i32
    %c0_i32_1 = arith.constant 0 : i32
    %c0_i32_2 = arith.constant 0 : i32
    return %c0_i32, %c0_i32_0, %c0_i32_1 : i32, i32, i32
  }
  func.func @transform_12(%arg0: i32) -> (i32, i32) {
    %c0_i32 = arith.constant 0 : i32
    %c0_i32_0 = arith.constant 0 : i32
    %c0_i32_1 = arith.constant 0 : i32
    return %c0_i32, %c0_i32_0 : i32, i32
  }
  func.func @transform_13(%arg0: i32) -> (i32, i32) {
    %c0_i32 = arith.constant 0 : i32
    %c0_i32_0 = arith.constant 0 : i32
    %c0_i32_1 = arith.constant 0 : i32
    return %c0_i32, %c0_i32_0 : i32, i32
  }
  func.func @transform_14(%arg0: i32) -> (i32, i32) {
    %c0_i32 = arith.constant 0 : i32
    %c0_i32_0 = arith.constant 0 : i32
    %c0_i32_1 = arith.constant 0 : i32
    return %c0_i32, %c0_i32_0 : i32, i32
  }
}

</mosaic_0001>

<bundles_post_ra>
// kernel: tpu_custom_call.1
= control target key start
LH: loop header
LB: loop body
LE: loop exit
PB: predicated region body
PF: predicated region fallthrough
CT: control target
= control target key end

     0   :  { %vm75_vm0 = vcmask 64512   ;;  %s6388_s0 = inlined_call_operand.vmem [shape: f32[16,8], index: 0, kind: input, shape index: {}]   ;;  %s6389_s1 = inlined_call_operand.vmem [shape: f32[16,16], index: 1, kind: input, shape index: {}]   ;;  %s6390_s2 = inlined_call_operand.vmem [shape: f32[2,16], index: 2, kind: input, shape index: {}]   ;;  %s6391_s3 = inlined_call_operand.vmem [shape: f32[4,128], index: 3, kind: input, shape index: {}]   ;;  %s6392_s4 = inlined_call_operand.vmem [shape: f32[8,128], index: 4, kind: input, shape index: {}]   ;;  %s6393_s5 = inlined_call_operand.vmem [shape: f32[128,8], index: 5, kind: input, shape index: {}]   ;;  %s6394_s6 = inlined_call_operand.vmem [shape: f32[1,128], index: 6, kind: input, shape index: {}]   ;;  %s6395_s7 = inlined_call_operand.vmem [shape: f32[4,128,128], index: 7, kind: input, shape index: {}]   ;;  %s6396_s8 = inlined_call_operand.vmem [shape: f32[4,128,8], index: 8, kind: input, shape index: {}]   ;;  %s6397_s9 = inlined_call_operand.vmem [shape: f32[4,1,128], index: 9, kind: input, shape index: {}]   ;;  %s6398_s10 = inlined_call_operand.vmem [shape: f32[4,1,128], index: 10, kind: input, shape index: {}]   ;;  %s6399_s11 = inlined_call_operand.vmem [shape: f32[4,1,128], index: 11, kind: input, shape index: {}]   ;;  %s6400_s12 = inlined_call_operand.vmem [shape: f32[128,32], index: 12, kind: input, shape index: {}]   ;;  %s6401_s13 = inlined_call_operand.vmem [shape: f32[1,32], index: 13, kind: input, shape index: {}]   ;;  %s6402_s14 = inlined_call_operand.hbm [shape: f32[2,32], index: 14, kind: output, shape index: {}]  }
   0x1   :  { %v57_v0 = vld [vmem:[%s6392_s4] sm:$0xff]  ;;  %v56_v2 = vld [vmem:[%s6388_s0 + $0x8] sm:$0xff]  ;;  %v73_v3 = vld [vmem:[%s6393_s5 + $0x78] sm:$0xff] }
   0x2   :  { %v55_v1 = vld [vmem:[%s6388_s0] sm:$0xff]  ;;  %4575 = vmatprep.subr.mxu1 %v57_v0  ;;  %v72_v4 = vld [vmem:[%s6393_s5 + $0x70] sm:$0xff]  ;;  %v71_v5 = vld [vmem:[%s6393_s5 + $0x68] sm:$0xff] }
   0x3   :  { %4577 = vmatprep.mubr.msk.f32.mxu1 %vm75_vm0, %v55_v1  ;;  %4576 = vmatpush3.msra.mxu1 %v57_v0  ;;  %v70_v6 = vld [vmem:[%s6393_s5 + $0x60] sm:$0xff] }
   0x4   :  { %4578 = vmatmul.mubr.msk.f32.vlgmr.msra.gmra.mxu1 %vm75_vm0, %v56_v2  ;;  %4580 = vmatprep.subr.mxu1 %v73_v3 }
   0x5   :  { %4581 = vmatpush3.msra.mxu1 %v73_v3 }
   0x6   :  { %4582 = vmatprep.subr.mxu1 %v72_v4 }
   0x7   :  { %4583 = vmatpush3.msra.mxu1 %v72_v4 }
   0x8   :  { %19 = vsyncpa [#allocation3], 0  ;;  %4584 = vmatprep.subr.mxu1 %v71_v5  ;;  %v69_v7 = vld [vmem:[%s6393_s5 + $0x58] sm:$0xff]  ;;  %v68_v8 = vld [vmem:[%s6393_s5 + $0x50] sm:$0xff]  ;;  %v5313_v19 = vmov 5   ;;  %v5314_v20 = vmov 4   ;;  %v274_v21 = vlaneseq }
   0x9   :  { %4585 = vmatpush3.msra.mxu1 %v71_v5  ;;  %v67_v9 = vld [vmem:[%s6393_s5 + $0x48] sm:$0xff]  ;;  %v66_v10 = vld [vmem:[%s6393_s5 + $0x40] sm:$0xff]  ;;  %v65_v11 = vld [vmem:[%s6393_s5 + $0x38] sm:$0xff]  ;;  %5086 = vset.pattern.permute.xlu1 %v5313_v19  ;;  %v5315_v39 = vmov 6   ;;  %v5316_v40 = vmov 7   ;;  %vm288_vm4 = vcmask 130048  }
   0xa   :  { %4586 = vmatprep.subr.mxu1 %v70_v6  ;;  %v64_v12 = vld [vmem:[%s6393_s5 + $0x30] sm:$0xff]  ;;  %v63_v13 = vld [vmem:[%s6393_s5 + $0x28] sm:$0xff]  ;;  %v62_v14 = vld [vmem:[%s6393_s5 + $0x20] sm:$0xff]  ;;  %5085 = vset.pattern.permute.xlu0 %v5314_v20  ;;  %v275_v22 = vshrl.u32 %v274_v21, 7  ;;  %v5317_v58 = vmov -1e+30  }
   0xb   :  { %4587 = vmatpush3.msra.mxu1 %v70_v6  ;;  %v61_v15 = vld [vmem:[%s6393_s5 + $0x18] sm:$0xff]  ;;  %v60_v16 = vld [vmem:[%s6393_s5 + $0x10] sm:$0xff]  ;;  %v59_v17 = vld [vmem:[%s6393_s5 + $0x8] sm:$0xff]  ;;  %s5320_s22 = smov [#allocation2]  }
   0xc   :  { %4588 = vmatprep.subr.mxu1 %v69_v7  ;;  %v58_v18 = vld [vmem:[%s6393_s5] sm:$0xff]  ;;  %v5455_v23 = vsub.s32 0, %v275_v22  ;;  %v5457_v24 = vsub.s32 3, %v275_v22  ;;  %v5472_v28 = vsub.s32 1, %v275_v22  ;;  %v49_v46 = vld [vmem:[%s6389_s1 + $0x8] sm:$0xff]  ;;  %v5507_v47 = vsub.s32 2, %v275_v22 }
   0xd   :  { %4589 = vmatpush3.msra.mxu1 %v69_v7  ;;  %v5462_v25 = vld [vmem:[%s6391_s3] sm:$0xf]  ;;  %vm51_vm1 = vcmp.gt.f32.partialorder %v49_v46, 0.0  ;;  %s4140_s4 = sshll.u32 %s5320_s22, 4  ;;  %s4141_s4 = int_to_ptr.vmem [resolvable:$true] %s4140_s4 }
   0xe   :  { %4590 = vmatprep.subr.mxu1 %v68_v8  ;;  %v5466_v26 = vrot.slane %v5462_v25, %v5455_v23  ;;  %v5470_v27 = vrot.slane %v5462_v25, %v5457_v24  ;;  %v5484_v33 = vrot.slane %v5462_v25, %v5472_v28  ;;  %v48_v56 = vld [vmem:[%s6389_s1] sm:$0xff]  ;;  %v5515_v59 = vsel %vm51_vm1, 0.0, %v5317_v58  ;;  %p5296_p1 = scmp.lt.s32.totalorder %s4141_s4, %s4141_s4 }
   0xf   :  { %4591 = vmatpush3.msra.mxu1 %v68_v8  ;;  %vm50_vm6 = vcmp.gt.f32.partialorder %v48_v56, 0.0 }
  0x10   :  { %4592 = vmatprep.subr.mxu1 %v67_v9 }
  0x11   :  { %4593 = vmatpush3.msra.mxu1 %v67_v9 }
  0x12   :  { %4594 = vmatprep.subr.mxu1 %v66_v10 }
  0x13   :  { %4595 = vmatpush3.msra.mxu1 %v66_v10  ;;  %v5522_v10 = vsel %vm50_vm6, 0.0, %v5317_v58 }
  0x14   :  { %4596 = vmatprep.subr.mxu1 %v65_v11 }
  0x15   :  { %4597 = vmatpush3.msra.mxu1 %v65_v11 }
  0x16   :  { %4598 = vmatprep.subr.mxu1 %v64_v12 }
  0x17   :  { %4599 = vmatpush3.msra.mxu1 %v64_v12 }
  0x18   :  { %4600 = vmatprep.subr.mxu1 %v63_v13 }
  0x19   :  { %4601 = vmatpush3.msra.mxu1 %v63_v13 }
  0x1a   :  { %4602 = vmatprep.subr.mxu1 %v62_v14 }
  0x1b   :  { %4603 = vmatpush3.msra.mxu1 %v62_v14 }
  0x1c   :  { %4604 = vmatprep.subr.mxu1 %v61_v15 }
  0x1d   :  { %4605 = vmatpush3.msra.mxu1 %v61_v15 }
  0x1e   :  { %4606 = vmatprep.subr.mxu1 %v60_v16 }
  0x1f   :  { %4607 = vmatpush3.msra.mxu1 %v60_v16 }
  0x20   :  { %4608 = vmatprep.subr.mxu1 %v59_v17 }
  0x21   :  { %4609 = vmatpush3.msra.mxu1 %v59_v17 }
  0x22   :  { %4610 = vmatprep.subr.mxu1 %v58_v18 }
  0x23   :  { %4611 = vmatpush3.msra.mxu1 %v58_v18 }
  0xc4   :  { %v5474_v29 = vpop.f32.mrf.mxu1 }
  0xc5   :  { %v316_v30 = vmul.f32 %v5474_v29, %v5466_v26  ;;  %v721_v31 = vmul.f32 %v5474_v29, %v5470_v27  ;;  %v5494_v36 = vmul.f32 %v5474_v29, %v5484_v33 }
  0xc6   :  { %v5480_v32 = vpop.f32.mrf.mxu1 }
  0xc7   :  { %4612 = vmatprep.mubr.f32.mxu1 %v5480_v32  ;;  %4615 = vmatprep.subr.mxu1 %v316_v30  ;;  %v315_v34 = vmul.f32 %v5466_v26, %v5480_v32  ;;  %v720_v35 = vmul.f32 %v5470_v27, %v5480_v32 }
  0xc8   :  { %4636 = vmatprep.subr.mxu0 %v721_v31  ;;  %4613 = vmatmul.mubr.f32.vlgmr.msra.gmra.mxu1 %v5474_v29 }
  0xc9   :  { %4616 = vmatpush3.msra.mxu1 %v316_v30  ;;  %4637 = vmatpush3.msra.mxu0 %v721_v31 }
  0xca   :  { %4617 = vmatprep.subr.mxu1 %v315_v34  ;;  %4638 = vmatprep.subr.mxu0 %v720_v35 }
  0xcb   :  { %4618 = vmatpush3.msra.mxu1 %v315_v34  ;;  %4639 = vmatpush3.msra.mxu0 %v720_v35 }
  0xcc   :  { %4622 = vmatprep.subr.mxu1 %v5494_v36 }
 0x188   :  { %v4614_v37 = vpop.f32.mrf.mxu1 }
 0x189   :  { %411 = vperm.xlu1 %5086, %v4614_v37   ;;  %271 = vperm.xlu0 %5085, %v4614_v37  }
 0x18a   :  { %v223_v38 = vpop.f32.mrf.mxu1 }
 0x18d   :  { %5087 = vset.pattern.permute.xlu1 %v5315_v39  ;;  %266 = vperm.xlu0 %5085, %v223_v38  }
 0x18e   :  { %544 = vperm.xlu1 %5087, %v4614_v37  }
 0x191   :  { %5089 = vset.pattern.permute.xlu0 %v5315_v39 }
 0x192   :  { %5088 = vset.pattern.permute.xlu1 %v5313_v19  ;;  %540 = vperm.xlu0 %5089, %v223_v38  }
 0x193   :  { %407 = vperm.xlu1 %5088, %v223_v38  }
 0x196   :  { %5090 = vset.pattern.permute.xlu0 %v5316_v40 }
 0x197   :  { %5091 = vset.pattern.permute.xlu1 %v5316_v40  ;;  %677 = vperm.xlu0 %5090, %v4614_v37  }
 0x198   :  { %673 = vperm.xlu1 %5091, %v223_v38  }
 0x19b   :  { %5092 = vset.pattern.permute.xlu0 %v5314_v20 }
 0x1c1   :  { %232 = vxpose.xlu1.b32.start [1/2] (short) (narrow) %v223_v38, 8 }
 0x1c5   :  { %233 = vxpose.xlu1.b32.end [2/2] (short) (narrow) %v4614_v37, 8 }
 0x1e3   :  { %5093 = vset.pattern.permute.xlu1 %v5313_v19 }
 0x204   :  { %v412_v41 = vpop.permute.xlu1 %411  ;;  %v272_v44 = vpop.permute.xlu0 %271 }
 0x208   :  { %v267_v52 = vpop.permute.xlu0 %266 }
 0x209   :  { %v545_v42 = vpop.permute.xlu1 %544 }
 0x20d   :  { %v541_v6 = vpop.permute.xlu0 %540 }
 0x20e   :  { %v408_v43 = vpop.permute.xlu1 %407 }
 0x212   :  { %v678_v22 = vpop.permute.xlu0 %677 }
 0x213   :  { %v674_v45 = vpop.permute.xlu1 %673 }
 0x23d   :  { %v248_v48 = vpop.trf.xlu1 }
 0x23e   :  { %v277_v49 = vrot.slane %v248_v48, %v5455_v23  ;;  %v417_v50 = vrot.slane %v248_v48, %v5472_v28  ;;  %v550_v51 = vrot.slane %v248_v48, %v5507_v47  ;;  %v683_v12 = vrot.slane %v248_v48, %v5457_v24 }
 0x240   :  { %v278_v53 = vadd.f32 %v277_v49, %v267_v52  ;;  %v279_v54 = vadd.f32 %v277_v49, %v272_v44  ;;  %v419_v55 = vadd.f32 %v417_v50, %v412_v41  ;;  %v552_v57 = vadd.f32 %v550_v51, %v545_v42 }
 0x241   :  { %v418_v63 = vadd.f32 %v417_v50, %v408_v43  ;;  %v551_v11 = vadd.f32 %v550_v51, %v541_v6  ;;  %v684_v17 = vadd.f32 %v683_v12, %v674_v45  ;;  %v685_v34 = vadd.f32 %v683_v12, %v678_v22 }
 0x242   :  { %vm421_vm2 = vcmp.gt.f32.partialorder %v419_v55, 0.0  ;;  %v423_v60 = vmul.f32 0.2, %v419_v55  ;;  %vm281_vm3 = vcmp.gt.f32.partialorder %v279_v54, 0.0  ;;  %v283_v61 = vmul.f32 0.2, %v279_v54 }
 0x243   :  { %vm554_vm5 = vcmp.gt.f32.partialorder %v552_v57, 0.0  ;;  %v556_v62 = vmul.f32 0.2, %v552_v57  ;;  %v282_v2 = vmul.f32 0.2, %v278_v53  ;;  %vm280_vm7 = vcmp.gt.f32.partialorder %v278_v53, 0.0 }
 0x244   :  { %v425_v0 = vsel %vm421_vm2, %v419_v55, %v423_v60  ;;  %v285_v1 = vsel %vm281_vm3, %v279_v54, %v283_v61  ;;  %v422_v14 = vmul.f32 0.2, %v418_v63  ;;  %vm420_vm8 = vcmp.gt.f32.partialorder %v418_v63, 0.0 }
 0x245   :  { %v427_v3 = vadd.f32 %v425_v0, %v5515_v59  ;;  %v287_v4 = vadd.f32 %v285_v1, %v5515_v59  ;;  %v558_v5 = vsel %vm554_vm5, %v552_v57, %v556_v62  ;;  %v284_v13 = vsel %vm280_vm7, %v278_v53, %v282_v2 }
 0x246   :  { %v560_v9 = vadd.f32 %v558_v5, %v5515_v59  ;;  %v286_v16 = vadd.f32 %v284_v13, %v5522_v10  ;;  %v424_v18 = vsel %vm420_vm8, %v418_v63, %v422_v14  ;;  %v555_v21 = vmul.f32 0.2, %v551_v11 }
 0x247   :  { %v431_v7 = vsel %vm288_vm4, %v427_v3, -inf  ;;  %v292_v8 = vsel %vm288_vm4, %v287_v4, -inf  ;;  %vm553_vm9 = vcmp.gt.f32.partialorder %v551_v11, 0.0  ;;  %v426_v31 = vadd.f32 %v424_v18, %v5522_v10 }
 0x248   :  { %432 = vmax.xlane.f32.xlu1 %v431_v7  ;;  %293 = vmax.xlane.f32.xlu0 %v292_v8  ;;  %v564_v15 = vsel %vm288_vm4, %v560_v9, -inf  ;;  %v289_v30 = vsel %vm288_vm4, %v286_v16, -inf  ;;  %v557_v35 = vsel %vm553_vm9, %v551_v11, %v555_v21  ;;  %v688_v37 = vmul.f32 0.2, %v684_v17 }
 0x249   :  { %vm686_vm10 = vcmp.gt.f32.partialorder %v684_v17, 0.0  ;;  %v428_v38 = vsel %vm288_vm4, %v426_v31, -inf  ;;  %v559_v41 = vadd.f32 %v557_v35, %v5522_v10  ;;  %v689_v43 = vmul.f32 0.2, %v685_v34 }
 0x24a   :  { %v690_v42 = vsel %vm686_vm10, %v684_v17, %v688_v37  ;;  %vm687_vm11 = vcmp.gt.f32.partialorder %v685_v34, 0.0 }
 0x24b   :  { %v561_v44 = vsel %vm288_vm4, %v559_v41, -inf  ;;  %v692_v45 = vadd.f32 %v690_v42, %v5522_v10  ;;  %v691_v46 = vsel %vm687_vm11, %v685_v34, %v689_v43  ;;  %v820_v43 = vld [vmem:[%s6395_s7 + $0x78] sm:$0xff] }
 0x24c   :  { %565 = vmax.xlane.f32.xlu0 %v564_v15  ;;  %v693_v49 = vadd.f32 %v691_v46, %v5515_v59  ;;  %4643 = vmatprep.subr.mxu0 %v820_v43 }
 0x24d   :  { %v694_v48 = vsel %vm288_vm4, %v692_v45, -inf }
 0x24e   :  { %v697_v50 = vsel %vm288_vm4, %v693_v49, -inf }
 0x250   :  { %290 = vmax.xlane.f32.xlu0 %v289_v30 }
 0x254   :  { %429 = vmax.xlane.f32.xlu0 %v428_v38 }
 0x258   :  { %562 = vmax.xlane.f32.xlu0 %v561_v44 }
 0x25c   :  { %695 = vmax.xlane.f32.xlu0 %v694_v48 }
 0x260   :  { %698 = vmax.xlane.f32.xlu0 %v697_v50 }
 0x2d1   :  { %v433_v51 = vpop.xlane.xlu1 %432  ;;  %v294_v52 = vpop.xlane.xlu0 %293 }
 0x2d2   :  { %v435_v53 = vsub.f32 %v427_v3, %v433_v51  ;;  %v296_v54 = vsub.f32 %v287_v4, %v294_v52 }
 0x2d4   :  { %v299_v55 = vmul.f32 1.442695, %v296_v54  ;;  %v438_v56 = vmul.f32 1.442695, %v435_v53 }
 0x2d5   :  { %v566_v57 = vpop.xlane.xlu0 %565 }
 0x2d6   :  { %v568_v58 = vsub.f32 %v560_v9, %v566_v57  ;;  %5123 = vpow2.f32 %v299_v55 }
 0x2d7   :  { %5125 = vpow2.f32 %v438_v56  ;;  %v5555_v56 = vrot.slane %v5462_v25, %v5507_v47 }
 0x2d8   :  { %v571_v60 = vmul.f32 1.442695, %v568_v58 }
 0x2d9   :  { %v291_v61 = vpop.xlane.xlu0 %290 }
 0x2da   :  { %v295_v62 = vsub.f32 %v286_v16, %v291_v61  ;;  %5127 = vpow2.f32 %v571_v60  ;;  %v454_v61 = vmul.f32 %v5484_v33, %v5480_v32 }
 0x2dc   :  { %v297_v63 = vmul.f32 1.442695, %v295_v62 }
 0x2dd   :  { %v430_v0 = vpop.xlane.xlu0 %429 }
 0x2de   :  { %v434_v1 = vsub.f32 %v426_v31, %v430_v0  ;;  %5129 = vpow2.f32 %v297_v63  ;;  %v588_v0 = vmul.f32 %v5474_v29, %v5555_v56 }
 0x2e0   :  { %v436_v2 = vmul.f32 1.442695, %v434_v1 }
 0x2e1   :  { %v563_v5 = vpop.xlane.xlu0 %562 }
 0x2e2   :  { %v567_v6 = vsub.f32 %v559_v41, %v563_v5  ;;  %5131 = vpow2.f32 %v436_v2  ;;  %v587_v5 = vmul.f32 %v5555_v56, %v5480_v32  ;;  %v818_v32 = vld [vmem:[%s6395_s7 + $0x68] sm:$0xff] }
 0x2e3   :  { %v5124_v7 = vpop.eup %5123 }
 0x2e4   :  { %v569_v3 = vmul.f32 1.442695, %v567_v6  ;;  %v304_v4 = vsel %vm288_vm4, %v5124_v7, 0.0  ;;  %v5537_v9 = vpop.eup %5125 }
 0x2e5   :  { %v696_v8 = vpop.xlane.xlu0 %695  ;;  %305 = vadd.xlane.f32.xlu0 %v304_v4  ;;  %v443_v13 = vsel %vm288_vm4, %v5537_v9, 0.0  ;;  %v819_v4 = vld [vmem:[%s6395_s7 + $0x70] sm:$0xff] }
 0x2e6   :  { %v700_v11 = vsub.f32 %v692_v45, %v696_v8  ;;  %5133 = vpow2.f32 %v569_v3  ;;  %v817_v8 = vld [vmem:[%s6395_s7 + $0x60] sm:$0xff] }
 0x2e7   :  { %v5541_v15 = vpop.eup %5127 }
 0x2e8   :  { %v702_v12 = vmul.f32 1.442695, %v700_v11  ;;  %v576_v18 = vsel %vm288_vm4, %v5541_v15, 0.0  ;;  %v815_v11 = vld [vmem:[%s6395_s7 + $0x50] sm:$0xff] }
 0x2e9   :  { %v699_v14 = vpop.xlane.xlu0 %698  ;;  %444 = vadd.xlane.f32.xlu0 %v443_v13  ;;  %v813_v13 = vld [vmem:[%s6395_s7 + $0x40] sm:$0xff] }
 0x2ea   :  { %5135 = vpow2.f32 %v702_v12  ;;  %v701_v16 = vsub.f32 %v693_v49, %v699_v14  ;;  %v814_v12 = vld [vmem:[%s6395_s7 + $0x48] sm:$0xff]  ;;  %v812_v14 = vld [vmem:[%s6395_s7 + $0x38] sm:$0xff] }
 0x2eb   :  { %v5130_v21 = vpop.eup %5129 }
 0x2ec   :  { %v704_v17 = vmul.f32 1.442695, %v701_v16  ;;  %v301_v22 = vsel %vm288_vm4, %v5130_v21, 0.0  ;;  %v810_v16 = vld [vmem:[%s6395_s7 + $0x28] sm:$0xff] }
 0x2ed   :  { %577 = vadd.xlane.f32.xlu0 %v576_v18  ;;  %v808_v18 = vld [vmem:[%s6395_s7 + $0x18] sm:$0xff] }
 0x2ee   :  { %5137 = vpow2.f32 %v704_v17  ;;  %v809_v17 = vld [vmem:[%s6395_s7 + $0x20] sm:$0xff] }
 0x2ef   :  { %v5132_v30 = vpop.eup %5131 }
 0x2f0   :  { %v440_v31 = vsel %vm288_vm4, %v5132_v30, 0.0 }
 0x2f1   :  { %302 = vadd.xlane.f32.xlu0 %v301_v22  ;;  %v806_v22 = vld [vmem:[%s6395_s7 + $0x8] sm:$0xff] }
 0x2f3   :  { %v5134_v34 = vpop.eup %5133 }
 0x2f4   :  { %v573_v38 = vsel %vm288_vm4, %v5134_v34, 0.0 }
 0x2f5   :  { %441 = vadd.xlane.f32.xlu0 %v440_v31  ;;  %v836_v31 = vld [vmem:[%s6396_s8 + $0x78] sm:$0xff] }
 0x2f7   :  { %v5136_v35 = vpop.eup %5135 }
 0x2f8   :  { %v706_v37 = vsel %vm288_vm4, %v5136_v35, 0.0 }
 0x2f9   :  { %707 = vadd.xlane.f32.xlu1 %v706_v37  ;;  %574 = vadd.xlane.f32.xlu0 %v573_v38  ;;  %v833_v37 = vld [vmem:[%s6396_s8 + $0x60] sm:$0xff]  ;;  %v832_v38 = vld [vmem:[%s6396_s8 + $0x58] sm:$0xff] }
 0x2fb   :  { %v5138_v41 = vpop.eup %5137 }
 0x2fc   :  { %v709_v42 = vsel %vm288_vm4, %v5138_v41, 0.0 }
 0x2fd   :  { %710 = vadd.xlane.f32.xlu0 %v709_v42  ;;  %v830_v42 = vld [vmem:[%s6396_s8 + $0x48] sm:$0xff] }
 0x36e   :  { %v306_v44 = vpop.xlane.xlu0 %305 }
 0x36f   :  { %5139 = vrcp.f32 %v306_v44  ;;  %v828_v44 = vld [vmem:[%s6396_s8 + $0x38] sm:$0xff] }
 0x372   :  { %v445_v45 = vpop.xlane.xlu0 %444 }
 0x376   :  { %v578_v46 = vpop.xlane.xlu0 %577 }
 0x37a   :  { %v303_v48 = vpop.xlane.xlu0 %302 }
 0x37b   :  { %5141 = vrcp.f32 %v303_v48  ;;  %v825_v48 = vld [vmem:[%s6396_s8 + $0x20] sm:$0xff] }
 0x37c   :  { %5143 = vrcp.f32 %v445_v45  ;;  %v5140_v53 = vpop.eup %5139  ;;  %v827_v45 = vld [vmem:[%s6396_s8 + $0x30] sm:$0xff] }
 0x37d   :  { %v310_v57 = vmul.f32 %v5140_v53, %v5124_v7  ;;  %v4152_v53 = vld [vmem:[%s6394_s6] ss:$0 sm:$0xff] }
 0x37e   :  { %v442_v49 = vpop.xlane.xlu0 %441 }
 0x37f   :  { %5145 = vrcp.f32 %v442_v49  ;;  %v824_v49 = vld [vmem:[%s6396_s8 + $0x18] sm:$0xff] }
 0x380   :  { %5147 = vrcp.f32 %v578_v46  ;;  %v826_v46 = vld [vmem:[%s6396_s8 + $0x28] sm:$0xff] }
 0x382   :  { %v708_v50 = vpop.xlane.xlu1 %707  ;;  %v575_v51 = vpop.xlane.xlu0 %574 }
 0x383   :  { %5149 = vrcp.f32 %v708_v50  ;;  %v823_v50 = vld [vmem:[%s6396_s8 + $0x10] sm:$0xff] }
 0x384   :  { %5151 = vrcp.f32 %v575_v51 }
 0x386   :  { %v711_v52 = vpop.xlane.xlu0 %710 }
 0x387   :  { %5153 = vrcp.f32 %v711_v52 }
 0x388   :  { %v5142_v54 = vpop.eup %5141 }
 0x389   :  { %v309_v55 = vmul.f32 %v5142_v54, %v5130_v21  ;;  %v5144_v58 = vpop.eup %5143  ;;  %v807_v21 = vld [vmem:[%s6395_s7 + $0x10] sm:$0xff] }
 0x38a   :  { %v449_v25 = vmul.f32 %v5144_v58, %v5537_v9  ;;  %v816_v9 = vld [vmem:[%s6395_s7 + $0x58] sm:$0xff] }
 0x38b   :  { %4619 = vmatprep.mubr.msk.f32.mxu1 %vm288_vm4, %v309_v55 }
 0x38c   :  { %v5146_v60 = vpop.eup %5145  ;;  %4620 = vmatmul.mubr.msk.f32.vlgmr.msra.gmra.mxu1 %vm288_vm4, %v310_v57 }
 0x38d   :  { %4623 = vmatpush3.msra.mxu1 %v5494_v36  ;;  %v448_v62 = vmul.f32 %v5146_v60, %v5132_v30  ;;  %v5148_v63 = vpop.eup %5147  ;;  %v805_v30 = vld [vmem:[%s6395_s7] sm:$0xff] }
 0x38e   :  { %4624 = vmatprep.subr.mxu1 %v454_v61  ;;  %v582_v29 = vmul.f32 %v5148_v63, %v5541_v15  ;;  %v811_v15 = vld [vmem:[%s6395_s7 + $0x30] sm:$0xff] }
 0x38f   :  { %4625 = vmatpush3.msra.mxu1 %v454_v61  ;;  %4626 = vmatprep.mubr.msk.f32.mxu1 %vm288_vm4, %v448_v62 }
 0x390   :  { %v5150_v1 = vpop.eup %5149  ;;  %4629 = vmatprep.subr.mxu1 %v588_v0  ;;  %4627 = vmatmul.mubr.msk.f32.vlgmr.msra.gmra.mxu1 %vm288_vm4, %v449_v25 }
 0x391   :  { %v5152_v2 = vpop.eup %5151  ;;  %v714_v36 = vmul.f32 %v5150_v1, %v5136_v35  ;;  %4630 = vmatpush3.msra.mxu1 %v588_v0  ;;  %v834_v35 = vld [vmem:[%s6396_s8 + $0x68] sm:$0xff] }
 0x392   :  { %v581_v6 = vmul.f32 %v5152_v2, %v5134_v34  ;;  %4631 = vmatprep.subr.mxu1 %v587_v5  ;;  %v835_v34 = vld [vmem:[%s6396_s8 + $0x70] sm:$0xff] }
 0x393   :  { %4640 = vmatprep.mubr.msk.f32.mxu0 %vm288_vm4, %v714_v36  ;;  %4632 = vmatpush3.msra.mxu1 %v587_v5 }
 0x394   :  { %4633 = vmatprep.mubr.msk.f32.mxu1 %vm288_vm4, %v581_v6  ;;  %v5154_v7 = vpop.eup %5153  ;;  %4678 = vmatprep.subr.mxu1 %v836_v31  ;;  %v822_v6 = vld [vmem:[%s6396_s8 + $0x8] sm:$0xff] }
 0x395   :  { %4634 = vmatmul.mubr.msk.f32.vlgmr.msra.gmra.mxu1 %vm288_vm4, %v582_v29  ;;  %v715_v3 = vmul.f32 %v5154_v7, %v5138_v41  ;;  %v831_v41 = vld [vmem:[%s6396_s8 + $0x50] sm:$0xff]  ;;  %v821_v29 = vld [vmem:[%s6396_s8] sm:$0xff] }
 0x396   :  { %4679 = vmatpush3.msra.mxu1 %v836_v31 }
 0x397   :  { %4641 = vmatmul.mubr.msk.f32.vlgmr.msra.gmra.mxu0 %vm288_vm4, %v715_v3  ;;  %4680 = vmatprep.subr.mxu1 %v835_v34 }
 0x398   :  { %4644 = vmatpush3.msra.mxu0 %v820_v43  ;;  %4681 = vmatpush3.msra.mxu1 %v835_v34  ;;  %v829_v43 = vld [vmem:[%s6396_s8 + $0x40] sm:$0xff] }
 0x399   :  { %4645 = vmatprep.subr.mxu0 %v819_v4  ;;  %4682 = vmatprep.subr.mxu1 %v834_v35 }
 0x39a   :  { %4646 = vmatpush3.msra.mxu0 %v819_v4  ;;  %4683 = vmatpush3.msra.mxu1 %v834_v35 }
 0x39b   :  { %4647 = vmatprep.subr.mxu0 %v818_v32  ;;  %4684 = vmatprep.subr.mxu1 %v833_v37 }
 0x39c   :  { %4648 = vmatpush3.msra.mxu0 %v818_v32  ;;  %4685 = vmatpush3.msra.mxu1 %v833_v37 }
 0x39d   :  { %4649 = vmatprep.subr.mxu0 %v817_v8  ;;  %4686 = vmatprep.subr.mxu1 %v832_v38 }
 0x39e   :  { %4650 = vmatpush3.msra.mxu0 %v817_v8  ;;  %4687 = vmatpush3.msra.mxu1 %v832_v38 }
 0x39f   :  { %4651 = vmatprep.subr.mxu0 %v816_v9  ;;  %4688 = vmatprep.subr.mxu1 %v831_v41 }
 0x3a0   :  { %4652 = vmatpush3.msra.mxu0 %v816_v9  ;;  %4689 = vmatpush3.msra.mxu1 %v831_v41 }
 0x3a1   :  { %4653 = vmatprep.subr.mxu0 %v815_v11  ;;  %4690 = vmatprep.subr.mxu1 %v830_v42 }
 0x3a2   :  { %4654 = vmatpush3.msra.mxu0 %v815_v11  ;;  %4691 = vmatpush3.msra.mxu1 %v830_v42 }
 0x3a3   :  { %4655 = vmatprep.subr.mxu0 %v814_v12  ;;  %4692 = vmatprep.subr.mxu1 %v829_v43 }
 0x3a4   :  { %4656 = vmatpush3.msra.mxu0 %v814_v12  ;;  %4693 = vmatpush3.msra.mxu1 %v829_v43 }
 0x3a5   :  { %4657 = vmatprep.subr.mxu0 %v813_v13  ;;  %4694 = vmatprep.subr.mxu1 %v828_v44 }
 0x3a6   :  { %4658 = vmatpush3.msra.mxu0 %v813_v13  ;;  %4695 = vmatpush3.msra.mxu1 %v828_v44 }
 0x3a7   :  { %4659 = vmatprep.subr.mxu0 %v812_v14  ;;  %4696 = vmatprep.subr.mxu1 %v827_v45 }
 0x3a8   :  { %4660 = vmatpush3.msra.mxu0 %v812_v14  ;;  %4697 = vmatpush3.msra.mxu1 %v827_v45 }
 0x3a9   :  { %4661 = vmatprep.subr.mxu0 %v811_v15  ;;  %4698 = vmatprep.subr.mxu1 %v826_v46 }
 0x3aa   :  { %4662 = vmatpush3.msra.mxu0 %v811_v15  ;;  %4699 = vmatpush3.msra.mxu1 %v826_v46 }
 0x3ab   :  { %4663 = vmatprep.subr.mxu0 %v810_v16  ;;  %4700 = vmatprep.subr.mxu1 %v825_v48 }
 0x3ac   :  { %4664 = vmatpush3.msra.mxu0 %v810_v16  ;;  %4701 = vmatpush3.msra.mxu1 %v825_v48 }
 0x3ad   :  { %4665 = vmatprep.subr.mxu0 %v809_v17  ;;  %4702 = vmatprep.subr.mxu1 %v824_v49 }
 0x3ae   :  { %4666 = vmatpush3.msra.mxu0 %v809_v17  ;;  %4703 = vmatpush3.msra.mxu1 %v824_v49 }
 0x3af   :  { %4667 = vmatprep.subr.mxu0 %v808_v18  ;;  %4704 = vmatprep.subr.mxu1 %v823_v50 }
 0x3b0   :  { %4668 = vmatpush3.msra.mxu0 %v808_v18  ;;  %4705 = vmatpush3.msra.mxu1 %v823_v50 }
 0x3b1   :  { %4669 = vmatprep.subr.mxu0 %v807_v21  ;;  %4706 = vmatprep.subr.mxu1 %v822_v6 }
 0x3b2   :  { %4670 = vmatpush3.msra.mxu0 %v807_v21  ;;  %4707 = vmatpush3.msra.mxu1 %v822_v6 }
 0x3b3   :  { %4671 = vmatprep.subr.mxu0 %v806_v22  ;;  %4708 = vmatprep.subr.mxu1 %v821_v29 }
 0x3b4   :  { %4672 = vmatpush3.msra.mxu0 %v806_v22  ;;  %4709 = vmatpush3.msra.mxu1 %v821_v29 }
 0x3b5   :  { %4673 = vmatprep.subr.mxu0 %v805_v30 }
 0x3b6   :  { %4674 = vmatpush3.msra.mxu0 %v805_v30 }
 0x44c   :  { %v4621_v51 = vpop.f32.mrf.mxu1 }
 0x44d   :  { %v405_v57 = vadd.f32 %v4621_v51, %v4152_v53 }
 0x44e   :  { %v389_v52 = vpop.f32.mrf.mxu1 }
 0x44f   :  { %v404_v58 = vadd.f32 %v4152_v53, %v389_v52 }
 0x450   :  { %v4628_v54 = vpop.f32.mrf.mxu1 }
 0x451   :  { %v538_v61 = vadd.f32 %v4628_v54, %v405_v57 }
 0x452   :  { %v528_v55 = vpop.f32.mrf.mxu1 }
 0x453   :  { %v537_v62 = vadd.f32 %v528_v55, %v404_v58 }
 0x455   :  { %v4635_v60 = vpop.f32.mrf.mxu1 }
 0x456   :  { %v671_v0 = vadd.f32 %v4635_v60, %v538_v61 }
 0x457   :  { %v661_v63 = vpop.f32.mrf.mxu1  ;;  %v4642_v1 = vpop.f32.mrf.mxu0 }
 0x458   :  { %v670_v25 = vadd.f32 %v661_v63, %v537_v62  ;;  %v5666_v36 = vadd.f32 %v4642_v1, %v671_v0 }
 0x459   :  { %v794_v2 = vpop.f32.mrf.mxu0 }
 0x45a   :  { %v5664_v5 = vadd.f32 %v794_v2, %v670_v25 }
 0x45c   :  { %4675 = vmatprep.mubr.f32.mxu0 %v5664_v5 }
 0x45d   :  { %4676 = vmatmul.mubr.f32.vlgmr.msra.gmra.mxu0 %v5666_v36 }
 0x51d   :  { %v5676_v7 = vpop.f32.mrf.mxu0 }
 0x51e   :  { %v1067_v3 = vmul.f32 %v5676_v7, %v5466_v26  ;;  %v5688_v8 = vmul.f32 %v5676_v7, %v5484_v33 }
 0x51f   :  { %v5680_v4 = vpop.f32.mrf.mxu0 }
 0x520   :  { %4710 = vmatprep.mubr.f32.mxu1 %v5680_v4  ;;  %4713 = vmatprep.subr.mxu0 %v1067_v3  ;;  %v1066_v32 = vmul.f32 %v5680_v4, %v5466_v26 }
 0x521   :  { %4711 = vmatmul.mubr.f32.vlgmr.msra.gmra.mxu1 %v5676_v7  ;;  %4714 = vmatpush3.msra.mxu0 %v1067_v3 }
 0x522   :  { %4715 = vmatprep.subr.mxu0 %v1066_v32 }
 0x523   :  { %4716 = vmatpush3.msra.mxu0 %v1066_v32 }
 0x524   :  { %4720 = vmatprep.subr.mxu0 %v5688_v8 }
 0x5e1   :  { %v4712_v9 = vpop.f32.mrf.mxu1 }
 0x5e2   :  { %1162 = vperm.xlu1 %5093, %v4712_v9   ;;  %1027 = vperm.xlu0 %5092, %v4712_v9  }
 0x5e3   :  { %v979_v11 = vpop.f32.mrf.mxu1 }
 0x5e6   :  { %5094 = vset.pattern.permute.xlu1 %v5315_v39 }
 0x5e7   :  { %1291 = vperm.xlu1 %5094, %v4712_v9  }
 0x5eb   :  { %5095 = vset.pattern.permute.xlu1 %v5316_v40 }
 0x5ec   :  { %1420 = vperm.xlu1 %5095, %v4712_v9  }
 0x5f0   :  { %5096 = vset.pattern.permute.xlu1 %v5314_v20 }
 0x5f1   :  { %1022 = vperm.xlu1 %5096, %v979_v11  }
 0x5f5   :  { %5097 = vset.pattern.permute.xlu1 %v5313_v19 }
 0x5f6   :  { %1158 = vperm.xlu1 %5097, %v979_v11  }
 0x5fa   :  { %5098 = vset.pattern.permute.xlu1 %v5315_v39 }
 0x5fb   :  { %1287 = vperm.xlu1 %5098, %v979_v11  }
 0x5ff   :  { %5099 = vset.pattern.permute.xlu1 %v5316_v40 }
 0x600   :  { %1416 = vperm.xlu1 %5099, %v979_v11  }
 0x629   :  { %988 = vxpose.xlu1.b32.start [1/2] (short) (narrow) %v979_v11, 8 }
 0x62d   :  { %989 = vxpose.xlu1.b32.end [2/2] (short) (narrow) %v4712_v9, 8 }
 0x64b   :  { %5100 = vset.pattern.permute.xlu1 %v5313_v19 }
 0x65d   :  { %v1163_v12 = vpop.permute.xlu1 %1162  ;;  %v1028_v34 = vpop.permute.xlu0 %1027 }
 0x662   :  { %v1292_v13 = vpop.permute.xlu1 %1291 }
 0x667   :  { %v1421_v14 = vpop.permute.xlu1 %1420 }
 0x66c   :  { %v1023_v15 = vpop.permute.xlu1 %1022 }
 0x671   :  { %v1159_v16 = vpop.permute.xlu1 %1158 }
 0x676   :  { %v1288_v17 = vpop.permute.xlu1 %1287 }
 0x67b   :  { %v1417_v18 = vpop.permute.xlu1 %1416 }
 0x6a5   :  { %v1004_v21 = vpop.trf.xlu1 }
 0x6a6   :  { %v1033_v22 = vrot.slane %v1004_v21, %v5455_v23  ;;  %v1168_v30 = vrot.slane %v1004_v21, %v5472_v28  ;;  %v1297_v31 = vrot.slane %v1004_v21, %v5507_v47  ;;  %v1426_v53 = vrot.slane %v1004_v21, %v5457_v24 }
 0x6a8   :  { %v1034_v35 = vadd.f32 %v1033_v22, %v1023_v15  ;;  %v1035_v37 = vadd.f32 %v1033_v22, %v1028_v34  ;;  %v1170_v38 = vadd.f32 %v1168_v30, %v1163_v12  ;;  %v1298_v41 = vadd.f32 %v1297_v31, %v1288_v17 }
 0x6a9   :  { %v1169_v45 = vadd.f32 %v1168_v30, %v1159_v16  ;;  %v1299_v57 = vadd.f32 %v1297_v31, %v1292_v13  ;;  %v1427_v0 = vadd.f32 %v1426_v53, %v1417_v18  ;;  %v1428_v29 = vadd.f32 %v1426_v53, %v1421_v14 }
 0x6aa   :  { %vm1037_vm12 = vcmp.gt.f32.partialorder %v1035_v37, 0.0  ;;  %v1039_v42 = vmul.f32 0.2, %v1035_v37  ;;  %vm1172_vm13 = vcmp.gt.f32.partialorder %v1170_v38, 0.0  ;;  %v1174_v43 = vmul.f32 0.2, %v1170_v38 }
 0x6ab   :  { %vm1300_vm14 = vcmp.gt.f32.partialorder %v1298_v41, 0.0  ;;  %v1302_v44 = vmul.f32 0.2, %v1298_v41  ;;  %v1038_v49 = vmul.f32 0.2, %v1034_v35  ;;  %vm1036_vm15 = vcmp.gt.f32.partialorder %v1034_v35, 0.0 }
 0x6ac   :  { %v1041_v46 = vsel %vm1037_vm12, %v1035_v37, %v1039_v42  ;;  %v1176_v48 = vsel %vm1172_vm13, %v1170_v38, %v1174_v43  ;;  %v1173_v61 = vmul.f32 0.2, %v1169_v45  ;;  %vm1171_vm0 = vcmp.gt.f32.partialorder %v1169_v45, 0.0 }
 0x6ad   :  { %v1304_v50 = vsel %vm1300_vm14, %v1298_v41, %v1302_v44  ;;  %v1043_v51 = vadd.f32 %v1041_v46, %v5515_v59  ;;  %v1178_v55 = vadd.f32 %v1176_v48, %v5515_v59  ;;  %v1040_v60 = vsel %vm1036_vm15, %v1034_v35, %v1038_v49 }
 0x6ae   :  { %v1306_v52 = vadd.f32 %v1304_v50, %v5522_v10  ;;  %v1042_v63 = vadd.f32 %v1040_v60, %v5522_v10  ;;  %v1175_v25 = vsel %vm1171_vm0, %v1169_v45, %v1173_v61  ;;  %v1303_v1 = vmul.f32 0.2, %v1299_v57 }
 0x6af   :  { %v1047_v54 = vsel %vm288_vm4, %v1043_v51, -inf  ;;  %v1182_v62 = vsel %vm288_vm4, %v1178_v55, -inf  ;;  %vm1301_vm1 = vcmp.gt.f32.partialorder %v1299_v57, 0.0  ;;  %v1177_v6 = vadd.f32 %v1175_v25, %v5522_v10 }
 0x6b0   :  { %v1308_v58 = vsel %vm288_vm4, %v1306_v52, -inf  ;;  %1048 = vmax.xlane.f32.xlu0 %v1047_v54  ;;  %v1044_v2 = vsel %vm288_vm4, %v1042_v63, -inf  ;;  %v1305_v3 = vsel %vm1301_vm1, %v1299_v57, %v1303_v1  ;;  %v1431_v32 = vmul.f32 0.2, %v1427_v0 }
 0x6b1   :  { %1309 = vmax.xlane.f32.xlu1 %v1308_v58  ;;  %vm1429_vm2 = vcmp.gt.f32.partialorder %v1427_v0, 0.0  ;;  %v1179_v9 = vsel %vm288_vm4, %v1177_v6, -inf  ;;  %v1307_v11 = vadd.f32 %v1305_v3, %v5515_v59  ;;  %v1432_v13 = vmul.f32 0.2, %v1428_v29 }
 0x6b2   :  { %v1433_v12 = vsel %vm1429_vm2, %v1427_v0, %v1431_v32  ;;  %vm1430_vm3 = vcmp.gt.f32.partialorder %v1428_v29, 0.0 }
 0x6b3   :  { %v1311_v15 = vsel %vm288_vm4, %v1307_v11, -inf  ;;  %v1435_v16 = vadd.f32 %v1433_v12, %v5522_v10  ;;  %v1434_v17 = vsel %vm1430_vm3, %v1428_v29, %v1432_v13 }
 0x6b4   :  { %1183 = vmax.xlane.f32.xlu0 %v1182_v62  ;;  %v1436_v18 = vadd.f32 %v1434_v17, %v5515_v59 }
 0x6b5   :  { %v1437_v14 = vsel %vm288_vm4, %v1435_v16, -inf }
 0x6b6   :  { %v1440_v21 = vsel %vm288_vm4, %v1436_v18, -inf }
 0x6b8   :  { %1045 = vmax.xlane.f32.xlu0 %v1044_v2 }
 0x6bc   :  { %1180 = vmax.xlane.f32.xlu0 %v1179_v9 }
 0x6c0   :  { %1312 = vmax.xlane.f32.xlu0 %v1311_v15 }
 0x6c4   :  { %1438 = vmax.xlane.f32.xlu0 %v1437_v14 }
 0x6c8   :  { %1441 = vmax.xlane.f32.xlu0 %v1440_v21 }
 0x739   :  { %v1049_v22 = vpop.xlane.xlu0 %1048 }
 0x73a   :  { %v1051_v30 = vsub.f32 %v1043_v51, %v1049_v22  ;;  %v1310_v38 = vpop.xlane.xlu1 %1309 }
 0x73b   :  { %v1314_v43 = vsub.f32 %v1306_v52, %v1310_v38 }
 0x73c   :  { %v1054_v31 = vmul.f32 1.442695, %v1051_v30 }
 0x73d   :  { %v1184_v34 = vpop.xlane.xlu0 %1183  ;;  %v1316_v48 = vmul.f32 1.442695, %v1314_v43  ;;  %v1201_v43 = vmul.f32 %v5680_v4, %v5484_v33 }
 0x73e   :  { %5155 = vpow2.f32 %v1054_v31  ;;  %v1186_v35 = vsub.f32 %v1178_v55, %v1184_v34 }
 0x740   :  { %v1189_v37 = vmul.f32 1.442695, %v1186_v35 }
 0x741   :  { %v1046_v41 = vpop.xlane.xlu0 %1045 }
 0x742   :  { %5157 = vpow2.f32 %v1189_v37  ;;  %v1050_v42 = vsub.f32 %v1042_v63, %v1046_v41 }
 0x744   :  { %v1052_v44 = vmul.f32 1.442695, %v1050_v42 }
 0x745   :  { %v1181_v45 = vpop.xlane.xlu0 %1180 }
 0x746   :  { %5159 = vpow2.f32 %v1052_v44  ;;  %v1185_v46 = vsub.f32 %v1177_v6, %v1181_v45  ;;  %v1331_v45 = vmul.f32 %v5676_v7, %v5555_v56 }
 0x748   :  { %v1187_v49 = vmul.f32 1.442695, %v1185_v46 }
 0x749   :  { %v1313_v50 = vpop.xlane.xlu0 %1312 }
 0x74a   :  { %5161 = vpow2.f32 %v1187_v49  ;;  %v1315_v53 = vsub.f32 %v1307_v11, %v1313_v50  ;;  %v1330_v49 = vmul.f32 %v5680_v4, %v5555_v56 }
 0x74b   :  { %v5156_v51 = vpop.eup %5155  ;;  %5163 = vpow2.f32 %v1316_v48 }
 0x74c   :  { %v1318_v54 = vmul.f32 1.442695, %v1315_v53  ;;  %v1059_v55 = vsel %vm288_vm4, %v5156_v51, 0.0 }
 0x74d   :  { %1060 = vadd.xlane.f32.xlu0 %v1059_v55  ;;  %v1439_v57 = vpop.xlane.xlu0 %1438 }
 0x74e   :  { %v1443_v58 = vsub.f32 %v1435_v16, %v1439_v57  ;;  %5165 = vpow2.f32 %v1318_v54 }
 0x74f   :  { %v5158_v60 = vpop.eup %5157 }
 0x750   :  { %v1445_v52 = vmul.f32 1.442695, %v1443_v58  ;;  %v1194_v61 = vsel %vm288_vm4, %v5158_v60, 0.0  ;;  %v1459_v58 = vmul.f32 %v5680_v4, %v5470_v27  ;;  %v4183_v4 = vld [vmem:[%s6395_s7 + $0xe8] sm:$0xff] }
 0x751   :  { %1195 = vadd.xlane.f32.xlu0 %v1194_v61  ;;  %v1442_v62 = vpop.xlane.xlu0 %1441  ;;  %v4182_v61 = vld [vmem:[%s6395_s7 + $0xe0] sm:$0xff] }
 0x752   :  { %5167 = vpow2.f32 %v1445_v52  ;;  %v1444_v63 = vsub.f32 %v1436_v18, %v1442_v62  ;;  %v4184_v52 = vld [vmem:[%s6395_s7 + $0xf0] sm:$0xff]  ;;  %v4181_v62 = vld [vmem:[%s6395_s7 + $0xd8] sm:$0xff] }
 0x753   :  { %v5160_v0 = vpop.eup %5159 }
 0x754   :  { %v1447_v25 = vmul.f32 1.442695, %v1444_v63  ;;  %v1056_v1 = vsel %vm288_vm4, %v5160_v0, 0.0  ;;  %v4180_v63 = vld [vmem:[%s6395_s7 + $0xd0] sm:$0xff] }
 0x755   :  { %1057 = vadd.xlane.f32.xlu0 %v1056_v1  ;;  %v4177_v1 = vld [vmem:[%s6395_s7 + $0xb8] sm:$0xff] }
 0x756   :  { %5169 = vpow2.f32 %v1447_v25  ;;  %v4178_v25 = vld [vmem:[%s6395_s7 + $0xc0] sm:$0xff] }
 0x757   :  { %v5162_v2 = vpop.eup %5161 }
 0x758   :  { %v1191_v6 = vsel %vm288_vm4, %v5162_v2, 0.0  ;;  %v5164_v29 = vpop.eup %5163 }
 0x759   :  { %1192 = vadd.xlane.f32.xlu0 %v1191_v6  ;;  %v1320_v3 = vsel %vm288_vm4, %v5164_v29, 0.0  ;;  %v4175_v6 = vld [vmem:[%s6395_s7 + $0xa8] sm:$0xff] }
 0x75b   :  { %v5166_v32 = vpop.eup %5165 }
 0x75c   :  { %v1323_v11 = vsel %vm288_vm4, %v5166_v32, 0.0 }
 0x75d   :  { %1321 = vadd.xlane.f32.xlu0 %v1320_v3  ;;  %v4173_v3 = vld [vmem:[%s6395_s7 + $0x98] sm:$0xff] }
 0x75f   :  { %v5168_v9 = vpop.eup %5167 }
 0x760   :  { %v1449_v12 = vsel %vm288_vm4, %v5168_v9, 0.0 }
 0x761   :  { %1324 = vadd.xlane.f32.xlu0 %v1323_v11  ;;  %1450 = vadd.xlane.f32.xlu1 %v1449_v12  ;;  %v4201_v11 = vld [vmem:[%s6396_s8 + $0xf8] sm:$0xff]  ;;  %v4200_v12 = vld [vmem:[%s6396_s8 + $0xf0] sm:$0xff] }
 0x763   :  { %v5170_v13 = vpop.eup %5169 }
 0x764   :  { %v1452_v15 = vsel %vm288_vm4, %v5170_v13, 0.0 }
 0x765   :  { %1453 = vadd.xlane.f32.xlu0 %v1452_v15  ;;  %v4199_v15 = vld [vmem:[%s6396_s8 + $0xe8] sm:$0xff] }
 0x7d6   :  { %v1061_v16 = vpop.xlane.xlu0 %1060 }
 0x7d7   :  { %5171 = vrcp.f32 %v1061_v16  ;;  %v4198_v16 = vld [vmem:[%s6396_s8 + $0xe0] sm:$0xff] }
 0x7da   :  { %v1196_v17 = vpop.xlane.xlu0 %1195 }
 0x7de   :  { %v1058_v14 = vpop.xlane.xlu0 %1057 }
 0x7df   :  { %5173 = vrcp.f32 %v1058_v14  ;;  %v4196_v14 = vld [vmem:[%s6396_s8 + $0xd0] sm:$0xff] }
 0x7e0   :  { %5175 = vrcp.f32 %v1196_v17  ;;  %v4197_v17 = vld [vmem:[%s6396_s8 + $0xd8] sm:$0xff] }
 0x7e2   :  { %v1193_v18 = vpop.xlane.xlu0 %1192 }
 0x7e3   :  { %5177 = vrcp.f32 %v1193_v18  ;;  %v4195_v18 = vld [vmem:[%s6396_s8 + $0xc8] sm:$0xff] }
 0x7e4   :  { %v5172_v31 = vpop.eup %5171 }
 0x7e5   :  { %v1065_v38 = vmul.f32 %v5172_v31, %v5156_v51  ;;  %v4191_v31 = vld [vmem:[%s6396_s8 + $0xa8] sm:$0xff] }
 0x7e6   :  { %v1322_v21 = vpop.xlane.xlu0 %1321 }
 0x7e7   :  { %5179 = vrcp.f32 %v1322_v21  ;;  %v4194_v21 = vld [vmem:[%s6396_s8 + $0xc0] sm:$0xff] }
 0x7ea   :  { %v1451_v22 = vpop.xlane.xlu1 %1450  ;;  %v1325_v30 = vpop.xlane.xlu0 %1324 }
 0x7eb   :  { %5181 = vrcp.f32 %v1451_v22  ;;  %v4193_v22 = vld [vmem:[%s6396_s8 + $0xb8] sm:$0xff] }
 0x7ec   :  { %v5174_v34 = vpop.eup %5173  ;;  %5183 = vrcp.f32 %v1325_v30  ;;  %v4192_v30 = vld [vmem:[%s6396_s8 + $0xb0] sm:$0xff] }
 0x7ed   :  { %v1064_v35 = vmul.f32 %v5174_v34, %v5160_v0  ;;  %v5176_v41 = vpop.eup %5175  ;;  %v4179_v0 = vld [vmem:[%s6395_s7 + $0xc8] sm:$0xff]  ;;  %v4190_v34 = vld [vmem:[%s6396_s8 + $0xa0] sm:$0xff] }
 0x7ee   :  { %v1454_v37 = vpop.xlane.xlu0 %1453  ;;  %v1200_v46 = vmul.f32 %v5176_v41, %v5158_v60 }
 0x7ef   :  { %5185 = vrcp.f32 %v1454_v37  ;;  %4717 = vmatprep.mubr.msk.f32.mxu0 %vm288_vm4, %v1064_v35  ;;  %v4189_v35 = vld [vmem:[%s6396_s8 + $0x98] sm:$0xff]  ;;  %v4188_v37 = vld [vmem:[%s6396_s8 + $0x90] sm:$0xff] }
 0x7f0   :  { %v5178_v42 = vpop.eup %5177  ;;  %4718 = vmatmul.mubr.msk.f32.vlgmr.msra.gmra.mxu0 %vm288_vm4, %v1065_v38  ;;  %v4187_v38 = vld [vmem:[%s6396_s8 + $0x88] sm:$0xff] }
 0x7f1   :  { %4721 = vmatpush3.msra.mxu0 %v5688_v8  ;;  %v1199_v44 = vmul.f32 %v5178_v42, %v5162_v2  ;;  %v1460_v8 = vmul.f32 %v5676_v7, %v5470_v27  ;;  %v4185_v7 = vld [vmem:[%s6395_s7 + $0xf8] sm:$0xff]  ;;  %v4176_v2 = vld [vmem:[%s6395_s7 + $0xb0] sm:$0xff] }
 0x7f2   :  { %4722 = vmatprep.subr.mxu0 %v1201_v43  ;;  %4741 = vmatprep.subr.mxu1 %v4185_v7 }
 0x7f3   :  { %4723 = vmatpush3.msra.mxu0 %v1201_v43  ;;  %4724 = vmatprep.mubr.msk.f32.mxu0 %vm288_vm4, %v1199_v44  ;;  %v4161_v44 = vld [vmem:[%s6397_s9] ss:$0 sm:$0xff] }
 0x7f4   :  { %v5180_v48 = vpop.eup %5179  ;;  %4727 = vmatprep.subr.mxu0 %v1331_v45  ;;  %4725 = vmatmul.mubr.msk.f32.vlgmr.msra.gmra.mxu0 %vm288_vm4, %v1200_v46 }
 0x7f5   :  { %4728 = vmatpush3.msra.mxu0 %v1331_v45  ;;  %v1328_v50 = vmul.f32 %v5180_v48, %v5164_v29  ;;  %4742 = vmatpush3.msra.mxu1 %v4185_v7  ;;  %v4174_v29 = vld [vmem:[%s6395_s7 + $0xa0] sm:$0xff] }
 0x7f6   :  { %4729 = vmatprep.subr.mxu0 %v1330_v49  ;;  %4743 = vmatprep.subr.mxu1 %v4184_v52 }
 0x7f7   :  { %4730 = vmatpush3.msra.mxu0 %v1330_v49  ;;  %4731 = vmatprep.mubr.msk.f32.mxu0 %vm288_vm4, %v1328_v50 }
 0x7f8   :  { %v5182_v53 = vpop.eup %5181  ;;  %4734 = vmatprep.subr.mxu0 %v1460_v8  ;;  %4744 = vmatpush3.msra.mxu1 %v4184_v52 }
 0x7f9   :  { %v5184_v51 = vpop.eup %5183  ;;  %v1457_v54 = vmul.f32 %v5182_v53, %v5168_v9  ;;  %4745 = vmatprep.subr.mxu1 %v4183_v4  ;;  %v4171_v9 = vld [vmem:[%s6395_s7 + $0x88] sm:$0xff] }
 0x7fa   :  { %v1329_v55 = vmul.f32 %v5184_v51, %v5166_v32  ;;  %4746 = vmatpush3.msra.mxu1 %v4183_v4  ;;  %v4172_v32 = vld [vmem:[%s6395_s7 + $0x90] sm:$0xff] }
 0x7fb   :  { %4747 = vmatprep.subr.mxu1 %v4182_v61 }
 0x7fc   :  { %v5186_v57 = vpop.eup %5185  ;;  %4732 = vmatmul.mubr.msk.f32.vlgmr.msra.gmra.mxu0 %vm288_vm4, %v1329_v55  ;;  %4748 = vmatpush3.msra.mxu1 %v4182_v61 }
 0x7fd   :  { %4735 = vmatpush3.msra.mxu0 %v1460_v8  ;;  %4738 = vmatprep.mubr.msk.f32.mxu0 %vm288_vm4, %v1457_v54  ;;  %v1458_v60 = vmul.f32 %v5186_v57, %v5170_v13  ;;  %v4170_v13 = vld [vmem:[%s6395_s7 + $0x80] sm:$0xff] }
 0x7fe   :  { %4736 = vmatprep.subr.mxu0 %v1459_v58  ;;  %4749 = vmatprep.subr.mxu1 %v4181_v62 }
 0x7ff   :  { %4737 = vmatpush3.msra.mxu0 %v1459_v58  ;;  %4750 = vmatpush3.msra.mxu1 %v4181_v62 }
 0x800   :  { %4739 = vmatmul.mubr.msk.f32.vlgmr.msra.gmra.mxu0 %vm288_vm4, %v1458_v60  ;;  %4751 = vmatprep.subr.mxu1 %v4180_v63 }
 0x801   :  { %4752 = vmatpush3.msra.mxu1 %v4180_v63  ;;  %4776 = vmatprep.subr.mxu0 %v4201_v11 }
 0x802   :  { %4753 = vmatprep.subr.mxu1 %v4179_v0  ;;  %4777 = vmatpush3.msra.mxu0 %v4201_v11 }
 0x803   :  { %4754 = vmatpush3.msra.mxu1 %v4179_v0  ;;  %4778 = vmatprep.subr.mxu0 %v4200_v12 }
 0x804   :  { %4755 = vmatprep.subr.mxu1 %v4178_v25  ;;  %4779 = vmatpush3.msra.mxu0 %v4200_v12 }
 0x805   :  { %4756 = vmatpush3.msra.mxu1 %v4178_v25  ;;  %4780 = vmatprep.subr.mxu0 %v4199_v15 }
 0x806   :  { %4757 = vmatprep.subr.mxu1 %v4177_v1  ;;  %4781 = vmatpush3.msra.mxu0 %v4199_v15 }
 0x807   :  { %4758 = vmatpush3.msra.mxu1 %v4177_v1  ;;  %4782 = vmatprep.subr.mxu0 %v4198_v16 }
 0x808   :  { %4759 = vmatprep.subr.mxu1 %v4176_v2  ;;  %4783 = vmatpush3.msra.mxu0 %v4198_v16 }
 0x809   :  { %4760 = vmatpush3.msra.mxu1 %v4176_v2  ;;  %4784 = vmatprep.subr.mxu0 %v4197_v17 }
 0x80a   :  { %4761 = vmatprep.subr.mxu1 %v4175_v6  ;;  %4785 = vmatpush3.msra.mxu0 %v4197_v17 }
 0x80b   :  { %4762 = vmatpush3.msra.mxu1 %v4175_v6  ;;  %4786 = vmatprep.subr.mxu0 %v4196_v14 }
 0x80c   :  { %4763 = vmatprep.subr.mxu1 %v4174_v29  ;;  %4787 = vmatpush3.msra.mxu0 %v4196_v14 }
 0x80d   :  { %4764 = vmatpush3.msra.mxu1 %v4174_v29  ;;  %4788 = vmatprep.subr.mxu0 %v4195_v18 }
 0x80e   :  { %4765 = vmatprep.subr.mxu1 %v4173_v3  ;;  %4789 = vmatpush3.msra.mxu0 %v4195_v18 }
 0x80f   :  { %4766 = vmatpush3.msra.mxu1 %v4173_v3  ;;  %4790 = vmatprep.subr.mxu0 %v4194_v21 }
 0x810   :  { %4767 = vmatprep.subr.mxu1 %v4172_v32  ;;  %4791 = vmatpush3.msra.mxu0 %v4194_v21 }
 0x811   :  { %4768 = vmatpush3.msra.mxu1 %v4172_v32  ;;  %4792 = vmatprep.subr.mxu0 %v4193_v22 }
 0x812   :  { %4769 = vmatprep.subr.mxu1 %v4171_v9  ;;  %4793 = vmatpush3.msra.mxu0 %v4193_v22  ;;  %v4168_v22 = vld [vmem:[%s6398_s10] ss:$0 sm:$0xff] }
 0x813   :  { %4770 = vmatpush3.msra.mxu1 %v4171_v9  ;;  %4794 = vmatprep.subr.mxu0 %v4192_v30 }
 0x814   :  { %4771 = vmatprep.subr.mxu1 %v4170_v13  ;;  %4795 = vmatpush3.msra.mxu0 %v4192_v30 }
 0x815   :  { %4772 = vmatpush3.msra.mxu1 %v4170_v13  ;;  %4796 = vmatprep.subr.mxu0 %v4191_v31 }
 0x816   :  { %4797 = vmatpush3.msra.mxu0 %v4191_v31 }
 0x817   :  { %4798 = vmatprep.subr.mxu0 %v4190_v34 }
 0x818   :  { %4799 = vmatpush3.msra.mxu0 %v4190_v34  ;;  %v4169_v34 = vld [vmem:[%s6399_s11] ss:$0 sm:$0xff] }
 0x819   :  { %4800 = vmatprep.subr.mxu0 %v4189_v35 }
 0x81a   :  { %4801 = vmatpush3.msra.mxu0 %v4189_v35 }
 0x81b   :  { %4802 = vmatprep.subr.mxu0 %v4188_v37 }
 0x81c   :  { %4803 = vmatpush3.msra.mxu0 %v4188_v37 }
 0x81d   :  { %4804 = vmatprep.subr.mxu0 %v4187_v38 }
 0x81e   :  { %4805 = vmatpush3.msra.mxu0 %v4187_v38 }
 0x8b0   :  { %v4719_v41 = vpop.f32.mrf.mxu0 }
 0x8b1   :  { %v1156_v46 = vadd.f32 %v4719_v41, %v4161_v44 }
 0x8b2   :  { %v1140_v42 = vpop.f32.mrf.mxu0 }
 0x8b3   :  { %v1155_v49 = vadd.f32 %v4161_v44, %v1140_v42  ;;  %v4186_v42 = vld [vmem:[%s6396_s8 + $0x80] sm:$0xff] }
 0x8b4   :  { %v4726_v43 = vpop.f32.mrf.mxu0  ;;  %4806 = vmatprep.subr.mxu0 %v4186_v42 }
 0x8b5   :  { %v1285_v50 = vadd.f32 %v4726_v43, %v1156_v46  ;;  %4807 = vmatpush3.msra.mxu0 %v4186_v42 }
 0x8b6   :  { %v1275_v45 = vpop.f32.mrf.mxu0 }
 0x8b7   :  { %v1284_v53 = vadd.f32 %v1275_v45, %v1155_v49 }
 0x8bc   :  { %v4733_v48 = vpop.f32.mrf.mxu0 }
 0x8bd   :  { %v1414_v51 = vadd.f32 %v4733_v48, %v1285_v50 }
 0x8be   :  { %v1404_v8 = vpop.f32.mrf.mxu0 }
 0x8bf   :  { %v1413_v55 = vadd.f32 %v1404_v8, %v1284_v53 }
 0x8c0   :  { %v4740_v54 = vpop.f32.mrf.mxu0 }
 0x8c1   :  { %v1543_v57 = vadd.f32 %v4740_v54, %v1414_v51 }
 0x8c2   :  { %v1533_v58 = vpop.f32.mrf.mxu0 }
 0x8c3   :  { %v1542_v60 = vadd.f32 %v1533_v58, %v1413_v55  ;;  %v1545_v7 = vmax.f32 %v1543_v57, 0.0 }
 0x8c5   :  { %v1544_v52 = vmax.f32 %v1542_v60, 0.0 }
 0x8c7   :  { %v1546_v4 = vadd.f32 %v1545_v7, %v1544_v52 }
 0x8c9   :  { %v1547_v61 = vrot.slane %v1546_v4, 4 }
 0x8cb   :  { %v1548_v62 = vadd.f32 %v1547_v61, %v1546_v4 }
 0x8cd   :  { %v1549_v63 = vrot.slane %v1548_v62, 2 }
 0x8cf   :  { %v1550_v0 = vadd.f32 %v1549_v63, %v1548_v62 }
 0x8d1   :  { %v1551_v25 = vrot.slane %v1550_v0, 1 }
 0x8d3   :  { %v1552_v1 = vadd.f32 %v1551_v25, %v1550_v0 }
 0x8d5   :  { %v1554_v2 = vmul.f32 0.0625, %v1552_v1 }
 0x8d7   :  { %v1555_v6 = vsub.f32 %v1544_v52, %v1554_v2  ;;  %v1556_v29 = vsub.f32 %v1545_v7, %v1554_v2 }
 0x8d9   :  { %v1557_v3 = vmul.f32 %v1555_v6, %v1555_v6  ;;  %v1558_v32 = vmul.f32 %v1556_v29, %v1556_v29 }
 0x8db   :  { %v1559_v9 = vadd.f32 %v1558_v32, %v1557_v3 }
 0x8dd   :  { %v1560_v11 = vrot.slane %v1559_v9, 4 }
 0x8df   :  { %v1561_v12 = vadd.f32 %v1560_v11, %v1559_v9 }
 0x8e1   :  { %v1562_v13 = vrot.slane %v1561_v12, 2 }
 0x8e3   :  { %v1563_v15 = vadd.f32 %v1562_v13, %v1561_v12 }
 0x8e5   :  { %v1564_v16 = vrot.slane %v1563_v15, 1 }
 0x8e7   :  { %v1565_v17 = vadd.f32 %v1564_v16, %v1563_v15 }
 0x8e9   :  { %v1566_v14 = vmul.f32 0.0625, %v1565_v17 }
 0x8eb   :  { %v1567_v18 = vadd.f32 1e-05, %v1566_v14 }
 0x8ed   :  { %5187 = vrsqrt.f32 %v1567_v18 }
 0x8fa   :  { %v5188_v21 = vpop.eup %5187 }
 0x8fb   :  { %v1569_v30 = vmul.f32 %v5188_v21, %v1555_v6  ;;  %v1570_v31 = vmul.f32 %v5188_v21, %v1556_v29 }
 0x8fd   :  { %v1578_v35 = vmul.f32 %v4168_v22, %v1569_v30  ;;  %v1579_v37 = vmul.f32 %v4168_v22, %v1570_v31 }
 0x8ff   :  { %v5847_v38 = vadd.f32 %v4169_v34, %v1578_v35  ;;  %v5849_v41 = vadd.f32 %v4169_v34, %v1579_v37 }
 0x901   :  { %4773 = vmatprep.mubr.f32.mxu1 %v5847_v38 }
 0x902   :  { %4774 = vmatmul.mubr.f32.vlgmr.msra.gmra.mxu1 %v5849_v41 }
 0x9c2   :  { %v4775_v43 = vpop.f32.mrf.mxu1 }
 0x9c3   :  { %v1854_v44 = vmul.f32 %v4775_v43, %v5466_v26  ;;  %v1989_v45 = vmul.f32 %v4775_v43, %v5484_v33  ;;  %v5866_v50 = vmul.f32 %v4775_v43, %v5555_v56  ;;  %v5869_v8 = vmul.f32 %v4775_v43, %v5470_v27 }
 0x9c4   :  { %v5858_v46 = vpop.f32.mrf.mxu1 }
 0x9c5   :  { %4808 = vmatprep.mubr.f32.mxu0 %v5858_v46  ;;  %4811 = vmatprep.subr.mxu1 %v1854_v44  ;;  %v1853_v48 = vmul.f32 %v5858_v46, %v5466_v26  ;;  %v1988_v49 = vmul.f32 %v5858_v46, %v5484_v33 }
 0x9c6   :  { %4818 = vmatprep.subr.mxu0 %v1989_v45  ;;  %4809 = vmatmul.mubr.f32.vlgmr.msra.gmra.mxu0 %v4775_v43 }
 0x9c7   :  { %4812 = vmatpush3.msra.mxu1 %v1854_v44  ;;  %4819 = vmatpush3.msra.mxu0 %v1989_v45 }
 0x9c8   :  { %4813 = vmatprep.subr.mxu1 %v1853_v48  ;;  %4820 = vmatprep.subr.mxu0 %v1988_v49 }
 0x9c9   :  { %4814 = vmatpush3.msra.mxu1 %v1853_v48  ;;  %4821 = vmatpush3.msra.mxu0 %v1988_v49 }
 0x9ca   :  { %4825 = vmatprep.subr.mxu1 %v5866_v50  ;;  %4832 = vmatprep.subr.mxu0 %v5869_v8 }
 0xa86   :  { %v4810_v53 = vpop.f32.mrf.mxu0 }
 0xa87   :  { %1949 = vperm.xlu1 %5100, %v4810_v53   ;;  %1814 = vperm.xlu0 %5092, %v4810_v53  }
 0xa88   :  { %v1766_v51 = vpop.f32.mrf.mxu0 }
 0xa8b   :  { %5101 = vset.pattern.permute.xlu1 %v5315_v39  ;;  %5104 = vset.pattern.permute.xlu0 %v5315_v39 }
 0xa8c   :  { %2078 = vperm.xlu1 %5101, %v4810_v53   ;;  %2074 = vperm.xlu0 %5104, %v1766_v51  }
 0xa90   :  { %5102 = vset.pattern.permute.xlu1 %v5314_v20  ;;  %5105 = vset.pattern.permute.xlu0 %v5316_v40 }
 0xa91   :  { %2207 = vperm.xlu0 %5105, %v4810_v53   ;;  %1809 = vperm.xlu1 %5102, %v1766_v51  }
 0xa95   :  { %5103 = vset.pattern.permute.xlu1 %v5313_v19  ;;  %5107 = vset.pattern.permute.xlu0 %v5314_v20 }
 0xa96   :  { %1945 = vperm.xlu1 %5103, %v1766_v51  }
 0xa9a   :  { %5106 = vset.pattern.permute.xlu1 %v5316_v40 }
 0xa9b   :  { %2203 = vperm.xlu1 %5106, %v1766_v51  }
 0xac4   :  { %1775 = vxpose.xlu1.b32.start [1/2] (short) (narrow) %v1766_v51, 8 }
 0xac8   :  { %1776 = vxpose.xlu1.b32.end [2/2] (short) (narrow) %v4810_v53, 8 }
 0xae6   :  { %5108 = vset.pattern.permute.xlu1 %v5313_v19 }
 0xb02   :  { %v1950_v54 = vpop.permute.xlu1 %1949  ;;  %v1815_v7 = vpop.permute.xlu0 %1814 }
 0xb07   :  { %v2079_v55 = vpop.permute.xlu1 %2078  ;;  %v2075_v63 = vpop.permute.xlu0 %2074 }
 0xb0c   :  { %v1810_v57 = vpop.permute.xlu1 %1809  ;;  %v2208_v44 = vpop.permute.xlu0 %2207 }
 0xb11   :  { %v1946_v58 = vpop.permute.xlu1 %1945 }
 0xb16   :  { %v2204_v60 = vpop.permute.xlu1 %2203 }
 0xb40   :  { %v1791_v52 = vpop.trf.xlu1 }
 0xb41   :  { %v1820_v4 = vrot.slane %v1791_v52, %v5455_v23  ;;  %v1955_v61 = vrot.slane %v1791_v52, %v5472_v28  ;;  %v2084_v62 = vrot.slane %v1791_v52, %v5507_v47  ;;  %v2213_v17 = vrot.slane %v1791_v52, %v5457_v24 }
 0xb43   :  { %v1821_v0 = vadd.f32 %v1820_v4, %v1810_v57  ;;  %v1822_v25 = vadd.f32 %v1820_v4, %v1815_v7  ;;  %v1957_v1 = vadd.f32 %v1955_v61, %v1950_v54  ;;  %v2085_v2 = vadd.f32 %v2084_v62, %v2075_v63 }
 0xb44   :  { %v1956_v32 = vadd.f32 %v1955_v61, %v1946_v58  ;;  %v2086_v21 = vadd.f32 %v2084_v62, %v2079_v55  ;;  %v2214_v37 = vadd.f32 %v2213_v17, %v2204_v60  ;;  %v2215_v49 = vadd.f32 %v2213_v17, %v2208_v44 }
 0xb45   :  { %vm1824_vm5 = vcmp.gt.f32.partialorder %v1822_v25, 0.0  ;;  %v1826_v6 = vmul.f32 0.2, %v1822_v25  ;;  %vm1959_vm6 = vcmp.gt.f32.partialorder %v1957_v1, 0.0  ;;  %v1961_v29 = vmul.f32 0.2, %v1957_v1 }
 0xb46   :  { %vm2087_vm7 = vcmp.gt.f32.partialorder %v2085_v2, 0.0  ;;  %v2089_v3 = vmul.f32 0.2, %v2085_v2  ;;  %v1825_v12 = vmul.f32 0.2, %v1821_v0  ;;  %vm1823_vm8 = vcmp.gt.f32.partialorder %v1821_v0, 0.0 }
 0xb47   :  { %v1828_v9 = vsel %vm1824_vm5, %v1822_v25, %v1826_v6  ;;  %v1963_v11 = vsel %vm1959_vm6, %v1957_v1, %v1961_v29  ;;  %v1960_v31 = vmul.f32 0.2, %v1956_v32  ;;  %vm1958_vm9 = vcmp.gt.f32.partialorder %v1956_v32, 0.0 }
 0xb48   :  { %v2091_v13 = vsel %vm2087_vm7, %v2085_v2, %v2089_v3  ;;  %v1830_v15 = vadd.f32 %v1828_v9, %v5515_v59  ;;  %v1965_v18 = vadd.f32 %v1963_v11, %v5515_v59  ;;  %v1827_v30 = vsel %vm1823_vm8, %v1821_v0, %v1825_v12 }
 0xb49   :  { %v5886_v16 = vadd.f32 %v2091_v13, %v5522_v10  ;;  %v1829_v35 = vadd.f32 %v1827_v30, %v5522_v10  ;;  %v1962_v42 = vsel %vm1958_vm9, %v1956_v32, %v1960_v31  ;;  %v2090_v43 = vmul.f32 0.2, %v2086_v21 }
 0xb4a   :  { %v1834_v14 = vsel %vm288_vm4, %v1830_v15, -inf  ;;  %v1969_v34 = vsel %vm288_vm4, %v1965_v18, -inf  ;;  %vm2088_vm10 = vcmp.gt.f32.partialorder %v2086_v21, 0.0  ;;  %v1964_v48 = vadd.f32 %v1962_v42, %v5522_v10 }
 0xb4b   :  { %v2095_v22 = vsel %vm288_vm4, %v5886_v16, -inf  ;;  %1835 = vmax.xlane.f32.xlu0 %v1834_v14  ;;  %v1831_v45 = vsel %vm288_vm4, %v1829_v35, -inf  ;;  %v2092_v53 = vsel %vm2088_vm10, %v2086_v21, %v2090_v43  ;;  %v2218_v51 = vmul.f32 0.2, %v2214_v37 }
 0xb4c   :  { %2096 = vmax.xlane.f32.xlu1 %v2095_v22  ;;  %vm2216_vm11 = vcmp.gt.f32.partialorder %v2214_v37, 0.0  ;;  %v1966_v54 = vsel %vm288_vm4, %v1964_v48, -inf  ;;  %v2094_v55 = vadd.f32 %v2092_v53, %v5515_v59  ;;  %v2219_v58 = vmul.f32 0.2, %v2215_v49 }
 0xb4d   :  { %v2220_v57 = vsel %vm2216_vm11, %v2214_v37, %v2218_v51  ;;  %vm2217_vm12 = vcmp.gt.f32.partialorder %v2215_v49, 0.0 }
 0xb4e   :  { %v2098_v60 = vsel %vm288_vm4, %v2094_v55, -inf  ;;  %v2222_v7 = vadd.f32 %v2220_v57, %v5522_v10  ;;  %v2221_v52 = vsel %vm2217_vm12, %v2215_v49, %v2219_v58 }
 0xb4f   :  { %1970 = vmax.xlane.f32.xlu0 %v1969_v34  ;;  %v2223_v61 = vadd.f32 %v2221_v52, %v5515_v59 }
 0xb50   :  { %v2224_v4 = vsel %vm288_vm4, %v2222_v7, -inf }
 0xb51   :  { %v2227_v62 = vsel %vm288_vm4, %v2223_v61, -inf }
 0xb53   :  { %1832 = vmax.xlane.f32.xlu0 %v1831_v45 }
 0xb57   :  { %1967 = vmax.xlane.f32.xlu0 %v1966_v54 }
 0xb5b   :  { %2099 = vmax.xlane.f32.xlu0 %v2098_v60 }
 0xb5f   :  { %2225 = vmax.xlane.f32.xlu0 %v2224_v4 }
 0xb63   :  { %2228 = vmax.xlane.f32.xlu0 %v2227_v62 }
 0xbd4   :  { %v1836_v63 = vpop.xlane.xlu0 %1835 }
 0xbd5   :  { %v1838_v0 = vsub.f32 %v1830_v15, %v1836_v63  ;;  %v2097_v13 = vpop.xlane.xlu1 %2096 }
 0xbd6   :  { %v2101_v31 = vsub.f32 %v5886_v16, %v2097_v13 }
 0xbd7   :  { %v1841_v25 = vmul.f32 1.442695, %v1838_v0 }
 0xbd8   :  { %v1971_v1 = vpop.xlane.xlu0 %1970  ;;  %v2103_v43 = vmul.f32 1.442695, %v2101_v31 }
 0xbd9   :  { %5189 = vpow2.f32 %v1841_v25  ;;  %v1973_v2 = vsub.f32 %v1965_v18, %v1971_v1 }
 0xbdb   :  { %v1976_v6 = vmul.f32 1.442695, %v1973_v2 }
 0xbdc   :  { %v1833_v29 = vpop.xlane.xlu0 %1832 }
 0xbdd   :  { %5191 = vpow2.f32 %v1976_v6  ;;  %v1837_v32 = vsub.f32 %v1829_v35, %v1833_v29 }
 0xbdf   :  { %v1839_v17 = vmul.f32 1.442695, %v1837_v32 }
 0xbe0   :  { %v1968_v3 = vpop.xlane.xlu0 %1967 }
 0xbe1   :  { %v1972_v14 = vsub.f32 %v1964_v48, %v1968_v3 }
 0xbe3   :  { %v1974_v34 = vmul.f32 1.442695, %v1972_v14 }
 0xbe4   :  { %v2100_v9 = vpop.xlane.xlu0 %2099 }
 0xbe5   :  { %v2102_v11 = vsub.f32 %v2094_v55, %v2100_v9 }
 0xbe6   :  { %v5904_v12 = vpop.eup %5189 }
 0xbe7   :  { %v2105_v21 = vmul.f32 1.442695, %v2102_v11  ;;  %v1846_v15 = vsel %vm288_vm4, %v5904_v12, 0.0 }
 0xbe8   :  { %1847 = vadd.xlane.f32.xlu0 %v1846_v15  ;;  %v2226_v22 = vpop.xlane.xlu0 %2225 }
 0xbe9   :  { %5193 = vpow2.f32 %v2105_v21  ;;  %v2230_v18 = vsub.f32 %v2222_v7, %v2226_v22 }
 0xbea   :  { %v5192_v30 = vpop.eup %5191  ;;  %5195 = vpow2.f32 %v1839_v17  ;;  %v2117_v17 = vmul.f32 %v5858_v46, %v5555_v56 }
 0xbeb   :  { %v2232_v35 = vmul.f32 1.442695, %v2230_v18  ;;  %v1981_v37 = vsel %vm288_vm4, %v5192_v30, 0.0 }
 0xbec   :  { %1982 = vadd.xlane.f32.xlu0 %v1981_v37  ;;  %v2229_v42 = vpop.xlane.xlu0 %2228  ;;  %v4228_v37 = vld [vmem:[%s6395_s7 + $0x160] sm:$0xff] }
 0xbed   :  { %5197 = vpow2.f32 %v2232_v35  ;;  %v2231_v44 = vsub.f32 %v2223_v61, %v2229_v42  ;;  %v4229_v35 = vld [vmem:[%s6395_s7 + $0x168] sm:$0xff]  ;;  %v4227_v42 = vld [vmem:[%s6395_s7 + $0x158] sm:$0xff] }
 0xbee   :  { %5199 = vpow2.f32 %v1974_v34 }
 0xbef   :  { %5201 = vpow2.f32 %v2103_v43  ;;  %v2234_v45 = vmul.f32 1.442695, %v2231_v44  ;;  %v4226_v43 = vld [vmem:[%s6395_s7 + $0x150] sm:$0xff]  ;;  %v4225_v44 = vld [vmem:[%s6395_s7 + $0x148] sm:$0xff] }
 0xbf1   :  { %5203 = vpow2.f32 %v2234_v45  ;;  %v4224_v45 = vld [vmem:[%s6395_s7 + $0x140] sm:$0xff] }
 0xbf6   :  { %v5194_v48 = vpop.eup %5193 }
 0xbf7   :  { %v2110_v49 = vsel %vm288_vm4, %v5194_v48, 0.0  ;;  %v5196_v53 = vpop.eup %5195 }
 0xbf8   :  { %2111 = vadd.xlane.f32.xlu0 %v2110_v49  ;;  %v1843_v51 = vsel %vm288_vm4, %v5196_v53, 0.0  ;;  %v4222_v49 = vld [vmem:[%s6395_s7 + $0x130] sm:$0xff] }
 0xbfa   :  { %v5198_v16 = vpop.eup %5197 }
 0xbfb   :  { %v2236_v54 = vsel %vm288_vm4, %v5198_v16, 0.0  ;;  %v5200_v55 = vpop.eup %5199 }
 0xbfc   :  { %1844 = vadd.xlane.f32.xlu0 %v1843_v51  ;;  %2237 = vadd.xlane.f32.xlu1 %v2236_v54  ;;  %v1978_v57 = vsel %vm288_vm4, %v5200_v55, 0.0  ;;  %v5202_v58 = vpop.eup %5201  ;;  %v4219_v51 = vld [vmem:[%s6395_s7 + $0x118] sm:$0xff]  ;;  %v4218_v54 = vld [vmem:[%s6395_s7 + $0x110] sm:$0xff] }
 0xbfd   :  { %v2107_v60 = vsel %vm288_vm4, %v5202_v58, 0.0 }
 0xbfe   :  { %v5204_v7 = vpop.eup %5203 }
 0xbff   :  { %v2239_v52 = vsel %vm288_vm4, %v5204_v7, 0.0 }
 0xc00   :  { %1979 = vadd.xlane.f32.xlu0 %v1978_v57  ;;  %v4247_v57 = vld [vmem:[%s6396_s8 + $0x178] sm:$0xff] }
 0xc04   :  { %2108 = vadd.xlane.f32.xlu0 %v2107_v60  ;;  %v4216_v60 = vld [vmem:[%s6395_s7 + $0x100] sm:$0xff] }
 0xc08   :  { %2240 = vadd.xlane.f32.xlu0 %v2239_v52  ;;  %v4244_v52 = vld [vmem:[%s6396_s8 + $0x160] sm:$0xff] }
 0xc71   :  { %v1848_v4 = vpop.xlane.xlu0 %1847 }
 0xc72   :  { %5205 = vrcp.f32 %v1848_v4  ;;  %v4243_v4 = vld [vmem:[%s6396_s8 + $0x158] sm:$0xff] }
 0xc75   :  { %v1983_v61 = vpop.xlane.xlu0 %1982 }
 0xc7f   :  { %v5206_v6 = vpop.eup %5205 }
 0xc80   :  { %v1852_v11 = vmul.f32 %v5206_v6, %v5904_v12  ;;  %v2246_v12 = vmul.f32 %v5858_v46, %v5470_v27  ;;  %v4231_v46 = vld [vmem:[%s6395_s7 + $0x178] sm:$0xff] }
 0xc81   :  { %v2112_v62 = vpop.xlane.xlu0 %2111  ;;  %v4235_v6 = vld [vmem:[%s6396_s8 + $0x118] sm:$0xff] }
 0xc85   :  { %v1845_v63 = vpop.xlane.xlu0 %1844  ;;  %v2238_v0 = vpop.xlane.xlu1 %2237 }
 0xc86   :  { %5207 = vrcp.f32 %v1845_v63  ;;  %v4240_v63 = vld [vmem:[%s6396_s8 + $0x140] sm:$0xff] }
 0xc87   :  { %5209 = vrcp.f32 %v1983_v61  ;;  %v4242_v61 = vld [vmem:[%s6396_s8 + $0x150] sm:$0xff] }
 0xc88   :  { %5211 = vrcp.f32 %v2238_v0  ;;  %v4239_v0 = vld [vmem:[%s6396_s8 + $0x138] sm:$0xff] }
 0xc89   :  { %v1980_v25 = vpop.xlane.xlu0 %1979 }
 0xc8a   :  { %5213 = vrcp.f32 %v1980_v25  ;;  %v4238_v25 = vld [vmem:[%s6396_s8 + $0x130] sm:$0xff] }
 0xc8b   :  { %5215 = vrcp.f32 %v2112_v62  ;;  %v4241_v62 = vld [vmem:[%s6396_s8 + $0x148] sm:$0xff] }
 0xc8d   :  { %v2109_v1 = vpop.xlane.xlu0 %2108 }
 0xc8e   :  { %5217 = vrcp.f32 %v2109_v1  ;;  %v4237_v1 = vld [vmem:[%s6396_s8 + $0x128] sm:$0xff] }
 0xc91   :  { %v2241_v2 = vpop.xlane.xlu0 %2240 }
 0xc92   :  { %5219 = vrcp.f32 %v2241_v2  ;;  %v4236_v2 = vld [vmem:[%s6396_s8 + $0x120] sm:$0xff] }
 0xc93   :  { %v5208_v29 = vpop.eup %5207 }
 0xc94   :  { %v5210_v3 = vpop.eup %5209  ;;  %v1851_v32 = vmul.f32 %v5208_v29, %v5196_v53  ;;  %v4221_v53 = vld [vmem:[%s6395_s7 + $0x128] sm:$0xff]  ;;  %v4234_v29 = vld [vmem:[%s6396_s8 + $0x110] sm:$0xff] }
 0xc95   :  { %v5212_v9 = vpop.eup %5211  ;;  %v1987_v21 = vmul.f32 %v5210_v3, %v5192_v30  ;;  %v4233_v3 = vld [vmem:[%s6396_s8 + $0x108] sm:$0xff] }
 0xc96   :  { %4815 = vmatprep.mubr.msk.f32.mxu1 %vm288_vm4, %v1851_v32  ;;  %v2244_v22 = vmul.f32 %v5212_v9, %v5198_v16  ;;  %v4220_v16 = vld [vmem:[%s6395_s7 + $0x120] sm:$0xff] }
 0xc97   :  { %v5214_v13 = vpop.eup %5213  ;;  %4816 = vmatmul.mubr.msk.f32.vlgmr.msra.gmra.mxu1 %vm288_vm4, %v1852_v11  ;;  %v4205_v9 = vld [vmem:[%s6397_s9 + $0x1] ss:$0 sm:$0xff] }
 0xc98   :  { %v1986_v14 = vmul.f32 %v5214_v13, %v5200_v55  ;;  %4826 = vmatpush3.msra.mxu1 %v5866_v50  ;;  %v5216_v15 = vpop.eup %5215  ;;  %v4217_v55 = vld [vmem:[%s6395_s7 + $0x108] sm:$0xff] }
 0xc99   :  { %4827 = vmatprep.subr.mxu1 %v2117_v17  ;;  %v2116_v50 = vmul.f32 %v5216_v15, %v5194_v48  ;;  %v4223_v48 = vld [vmem:[%s6395_s7 + $0x138] sm:$0xff] }
 0xc9a   :  { %4822 = vmatprep.mubr.msk.f32.mxu0 %vm288_vm4, %v1986_v14  ;;  %4828 = vmatpush3.msra.mxu1 %v2117_v17 }
 0xc9b   :  { %v5218_v18 = vpop.eup %5217  ;;  %4823 = vmatmul.mubr.msk.f32.vlgmr.msra.gmra.mxu0 %vm288_vm4, %v1987_v21  ;;  %4839 = vmatprep.subr.mxu1 %v4231_v46 }
 0xc9c   :  { %4833 = vmatpush3.msra.mxu0 %v5869_v8  ;;  %4836 = vmatprep.mubr.msk.f32.mxu0 %vm288_vm4, %v2244_v22  ;;  %v2115_v31 = vmul.f32 %v5218_v18, %v5202_v58  ;;  %v4230_v8 = vld [vmem:[%s6395_s7 + $0x170] sm:$0xff] }
 0xc9d   :  { %4834 = vmatprep.subr.mxu0 %v2246_v12  ;;  %v4246_v58 = vld [vmem:[%s6396_s8 + $0x170] sm:$0xff] }
 0xc9e   :  { %4835 = vmatpush3.msra.mxu0 %v2246_v12  ;;  %4829 = vmatprep.mubr.msk.f32.mxu1 %vm288_vm4, %v2115_v31 }
 0xc9f   :  { %v5220_v30 = vpop.eup %5219  ;;  %4830 = vmatmul.mubr.msk.f32.vlgmr.msra.gmra.mxu1 %vm288_vm4, %v2116_v50  ;;  %4874 = vmatprep.subr.mxu0 %v4247_v57 }
 0xca0   :  { %v2245_v34 = vmul.f32 %v5220_v30, %v5204_v7  ;;  %4840 = vmatpush3.msra.mxu1 %v4231_v46  ;;  %v4245_v7 = vld [vmem:[%s6396_s8 + $0x168] sm:$0xff] }
 0xca1   :  { %4841 = vmatprep.subr.mxu1 %v4230_v8 }
 0xca2   :  { %4837 = vmatmul.mubr.msk.f32.vlgmr.msra.gmra.mxu0 %vm288_vm4, %v2245_v34  ;;  %4842 = vmatpush3.msra.mxu1 %v4230_v8 }
 0xca3   :  { %4843 = vmatprep.subr.mxu1 %v4229_v35  ;;  %4875 = vmatpush3.msra.mxu0 %v4247_v57 }
 0xca4   :  { %4844 = vmatpush3.msra.mxu1 %v4229_v35  ;;  %4876 = vmatprep.subr.mxu0 %v4246_v58 }
 0xca5   :  { %4845 = vmatprep.subr.mxu1 %v4228_v37  ;;  %4877 = vmatpush3.msra.mxu0 %v4246_v58 }
 0xca6   :  { %4846 = vmatpush3.msra.mxu1 %v4228_v37  ;;  %4878 = vmatprep.subr.mxu0 %v4245_v7 }
 0xca7   :  { %4847 = vmatprep.subr.mxu1 %v4227_v42  ;;  %4879 = vmatpush3.msra.mxu0 %v4245_v7 }
 0xca8   :  { %4848 = vmatpush3.msra.mxu1 %v4227_v42  ;;  %4880 = vmatprep.subr.mxu0 %v4244_v52 }
 0xca9   :  { %4849 = vmatprep.subr.mxu1 %v4226_v43  ;;  %4881 = vmatpush3.msra.mxu0 %v4244_v52 }
 0xcaa   :  { %4850 = vmatpush3.msra.mxu1 %v4226_v43  ;;  %4882 = vmatprep.subr.mxu0 %v4243_v4 }
 0xcab   :  { %4851 = vmatprep.subr.mxu1 %v4225_v44  ;;  %4883 = vmatpush3.msra.mxu0 %v4243_v4 }
 0xcac   :  { %4852 = vmatpush3.msra.mxu1 %v4225_v44  ;;  %4884 = vmatprep.subr.mxu0 %v4242_v61 }
 0xcad   :  { %4853 = vmatprep.subr.mxu1 %v4224_v45  ;;  %4885 = vmatpush3.msra.mxu0 %v4242_v61 }
 0xcae   :  { %4854 = vmatpush3.msra.mxu1 %v4224_v45  ;;  %4886 = vmatprep.subr.mxu0 %v4241_v62 }
 0xcaf   :  { %4855 = vmatprep.subr.mxu1 %v4223_v48  ;;  %4887 = vmatpush3.msra.mxu0 %v4241_v62 }
 0xcb0   :  { %4856 = vmatpush3.msra.mxu1 %v4223_v48  ;;  %4888 = vmatprep.subr.mxu0 %v4240_v63 }
 0xcb1   :  { %4857 = vmatprep.subr.mxu1 %v4222_v49  ;;  %4889 = vmatpush3.msra.mxu0 %v4240_v63 }
 0xcb2   :  { %4858 = vmatpush3.msra.mxu1 %v4222_v49  ;;  %4890 = vmatprep.subr.mxu0 %v4239_v0 }
 0xcb3   :  { %4859 = vmatprep.subr.mxu1 %v4221_v53  ;;  %4891 = vmatpush3.msra.mxu0 %v4239_v0 }
 0xcb4   :  { %4860 = vmatpush3.msra.mxu1 %v4221_v53  ;;  %4892 = vmatprep.subr.mxu0 %v4238_v25 }
 0xcb5   :  { %4861 = vmatprep.subr.mxu1 %v4220_v16  ;;  %4893 = vmatpush3.msra.mxu0 %v4238_v25 }
 0xcb6   :  { %4862 = vmatpush3.msra.mxu1 %v4220_v16  ;;  %4894 = vmatprep.subr.mxu0 %v4237_v1 }
 0xcb7   :  { %4863 = vmatprep.subr.mxu1 %v4219_v51  ;;  %4895 = vmatpush3.msra.mxu0 %v4237_v1 }
 0xcb8   :  { %4864 = vmatpush3.msra.mxu1 %v4219_v51  ;;  %4896 = vmatprep.subr.mxu0 %v4236_v2 }
 0xcb9   :  { %4865 = vmatprep.subr.mxu1 %v4218_v54  ;;  %4897 = vmatpush3.msra.mxu0 %v4236_v2 }
 0xcba   :  { %4866 = vmatpush3.msra.mxu1 %v4218_v54  ;;  %4898 = vmatprep.subr.mxu0 %v4235_v6 }
 0xcbb   :  { %4867 = vmatprep.subr.mxu1 %v4217_v55  ;;  %4899 = vmatpush3.msra.mxu0 %v4235_v6  ;;  %v4213_v6 = vld [vmem:[%s6398_s10 + $0x1] ss:$0 sm:$0xff] }
 0xcbc   :  { %4868 = vmatpush3.msra.mxu1 %v4217_v55  ;;  %4900 = vmatprep.subr.mxu0 %v4234_v29 }
 0xcbd   :  { %4869 = vmatprep.subr.mxu1 %v4216_v60  ;;  %4901 = vmatpush3.msra.mxu0 %v4234_v29 }
 0xcbe   :  { %4870 = vmatpush3.msra.mxu1 %v4216_v60  ;;  %4902 = vmatprep.subr.mxu0 %v4233_v3 }
 0xcbf   :  { %4903 = vmatpush3.msra.mxu0 %v4233_v3 }
 0xd57   :  { %v4817_v32 = vpop.f32.mrf.mxu1 }
 0xd58   :  { %v1943_v17 = vadd.f32 %v4817_v32, %v4205_v9  ;;  %v4215_v32 = vld [vmem:[%s6399_s11 + $0x1] ss:$0 sm:$0xff] }
 0xd59   :  { %v1927_v11 = vpop.f32.mrf.mxu1 }
 0xd5a   :  { %v1942_v21 = vadd.f32 %v4205_v9, %v1927_v11 }
 0xd5b   :  { %v4824_v13 = vpop.f32.mrf.mxu0 }
 0xd5c   :  { %v2072_v15 = vadd.f32 %v4824_v13, %v1943_v17 }
 0xd5d   :  { %v2062_v14 = vpop.f32.mrf.mxu0 }
 0xd5e   :  { %v2071_v18 = vadd.f32 %v2062_v14, %v1942_v21  ;;  %v4232_v14 = vld [vmem:[%s6396_s8 + $0x100] sm:$0xff] }
 0xd5f   :  { %v4831_v22 = vpop.f32.mrf.mxu1  ;;  %4904 = vmatprep.subr.mxu0 %v4232_v14 }
 0xd60   :  { %v2201_v12 = vadd.f32 %v4831_v22, %v2072_v15  ;;  %4905 = vmatpush3.msra.mxu0 %v4232_v14 }
 0xd61   :  { %v2191_v31 = vpop.f32.mrf.mxu1 }
 0xd62   :  { %v2200_v50 = vadd.f32 %v2191_v31, %v2071_v18  ;;  %v4838_v30 = vpop.f32.mrf.mxu0 }
 0xd63   :  { %v2330_v34 = vadd.f32 %v4838_v30, %v2201_v12 }
 0xd64   :  { %v2320_v46 = vpop.f32.mrf.mxu0 }
 0xd65   :  { %v2332_v8 = vmax.f32 %v2330_v34, 0.0  ;;  %v2329_v35 = vadd.f32 %v2320_v46, %v2200_v50 }
 0xd67   :  { %v2334_v37 = vadd.f32 %v2332_v8, %v5849_v41  ;;  %v2331_v42 = vmax.f32 %v2329_v35, 0.0 }
 0xd69   :  { %v2333_v43 = vadd.f32 %v2331_v42, %v5847_v38  ;;  %v2336_v44 = vmax.f32 %v2334_v37, 0.0 }
 0xd6b   :  { %v2335_v45 = vmax.f32 %v2333_v43, 0.0 }
 0xd6d   :  { %v2337_v48 = vadd.f32 %v2336_v44, %v2335_v45 }
 0xd6f   :  { %v2338_v49 = vrot.slane %v2337_v48, 4 }
 0xd71   :  { %v2339_v53 = vadd.f32 %v2338_v49, %v2337_v48 }
 0xd73   :  { %v2340_v16 = vrot.slane %v2339_v53, 2 }
 0xd75   :  { %v2341_v51 = vadd.f32 %v2340_v16, %v2339_v53 }
 0xd77   :  { %v2342_v54 = vrot.slane %v2341_v51, 1 }
 0xd79   :  { %v2343_v55 = vadd.f32 %v2342_v54, %v2341_v51 }
 0xd7b   :  { %v2344_v57 = vmul.f32 0.0625, %v2343_v55 }
 0xd7d   :  { %v2345_v58 = vsub.f32 %v2335_v45, %v2344_v57  ;;  %v2346_v60 = vsub.f32 %v2336_v44, %v2344_v57 }
 0xd7f   :  { %v2347_v7 = vmul.f32 %v2345_v58, %v2345_v58  ;;  %v2348_v52 = vmul.f32 %v2346_v60, %v2346_v60 }
 0xd81   :  { %v2349_v4 = vadd.f32 %v2348_v52, %v2347_v7 }
 0xd83   :  { %v2350_v61 = vrot.slane %v2349_v4, 4 }
 0xd85   :  { %v2351_v41 = vadd.f32 %v2350_v61, %v2349_v4 }
 0xd87   :  { %v2352_v62 = vrot.slane %v2351_v41, 2 }
 0xd89   :  { %v2353_v63 = vadd.f32 %v2352_v62, %v2351_v41 }
 0xd8b   :  { %v2354_v38 = vrot.slane %v2353_v63, 1 }
 0xd8d   :  { %v2355_v0 = vadd.f32 %v2354_v38, %v2353_v63 }
 0xd8f   :  { %v2356_v25 = vmul.f32 0.0625, %v2355_v0 }
 0xd91   :  { %v2357_v1 = vadd.f32 1e-05, %v2356_v25 }
 0xd93   :  { %5221 = vrsqrt.f32 %v2357_v1 }
 0xda0   :  { %v5222_v2 = vpop.eup %5221 }
 0xda1   :  { %v2359_v29 = vmul.f32 %v5222_v2, %v2345_v58  ;;  %v2360_v3 = vmul.f32 %v5222_v2, %v2346_v60 }
 0xda3   :  { %v2369_v9 = vmul.f32 %v4213_v6, %v2359_v29  ;;  %v2370_v11 = vmul.f32 %v4213_v6, %v2360_v3 }
 0xda5   :  { %v2379_v13 = vadd.f32 %v4215_v32, %v2369_v9  ;;  %v2380_v17 = vadd.f32 %v4215_v32, %v2370_v11 }
 0xda7   :  { %4871 = vmatprep.mubr.f32.mxu1 %v2379_v13 }
 0xda8   :  { %4872 = vmatmul.mubr.f32.vlgmr.msra.gmra.mxu1 %v2380_v17 }
 0xe68   :  { %v4873_v21 = vpop.f32.mrf.mxu1 }
 0xe69   :  { %v2646_v15 = vmul.f32 %v4873_v21, %v5466_v26  ;;  %v2781_v22 = vmul.f32 %v4873_v21, %v5484_v33  ;;  %v6048_v50 = vmul.f32 %v4873_v21, %v5555_v56  ;;  %v6051_v30 = vmul.f32 %v4873_v21, %v5470_v27 }
 0xe6a   :  { %v6040_v18 = vpop.f32.mrf.mxu1 }
 0xe6b   :  { %4906 = vmatprep.mubr.f32.mxu0 %v6040_v18  ;;  %4909 = vmatprep.subr.mxu1 %v2646_v15  ;;  %v2645_v12 = vmul.f32 %v6040_v18, %v5466_v26  ;;  %v2780_v31 = vmul.f32 %v6040_v18, %v5484_v33 }
 0xe6c   :  { %4916 = vmatprep.subr.mxu0 %v2781_v22  ;;  %4907 = vmatmul.mubr.f32.vlgmr.msra.gmra.mxu0 %v4873_v21 }
 0xe6d   :  { %4910 = vmatpush3.msra.mxu1 %v2646_v15  ;;  %4917 = vmatpush3.msra.mxu0 %v2781_v22 }
 0xe6e   :  { %4911 = vmatprep.subr.mxu1 %v2645_v12  ;;  %4918 = vmatprep.subr.mxu0 %v2780_v31 }
 0xe6f   :  { %4912 = vmatpush3.msra.mxu1 %v2645_v12  ;;  %4919 = vmatpush3.msra.mxu0 %v2780_v31 }
 0xe70   :  { %4923 = vmatprep.subr.mxu1 %v6048_v50  ;;  %4930 = vmatprep.subr.mxu0 %v6051_v30 }
 0xf2c   :  { %v4908_v34 = vpop.f32.mrf.mxu0 }
 0xf2d   :  { %2741 = vperm.xlu1 %5108, %v4908_v34   ;;  %2606 = vperm.xlu0 %5107, %v4908_v34  }
 0xf2e   :  { %v2558_v46 = vpop.f32.mrf.mxu0 }
 0xf31   :  { %5109 = vset.pattern.permute.xlu1 %v5315_v39  ;;  %5116 = vset.pattern.permute.xlu0 %v5313_v19 }
 0xf32   :  { %2870 = vperm.xlu1 %5109, %v4908_v34  }
 0xf36   :  { %5110 = vset.pattern.permute.xlu1 %v5316_v40 }
 0xf37   :  { %2999 = vperm.xlu1 %5110, %v4908_v34  }
 0xf3b   :  { %5111 = vset.pattern.permute.xlu1 %v5314_v20 }
 0xf3c   :  { %2601 = vperm.xlu1 %5111, %v2558_v46  }
 0xf40   :  { %5112 = vset.pattern.permute.xlu1 %v5313_v19 }
 0xf41   :  { %2737 = vperm.xlu1 %5112, %v2558_v46  }
 0xf45   :  { %5113 = vset.pattern.permute.xlu1 %v5315_v39 }
 0xf46   :  { %2866 = vperm.xlu1 %5113, %v2558_v46  }
 0xf4a   :  { %5114 = vset.pattern.permute.xlu1 %v5316_v40 }
 0xf4b   :  { %2995 = vperm.xlu1 %5114, %v2558_v46  }
 0xf74   :  { %2567 = vxpose.xlu1.b32.start [1/2] (short) (narrow) %v2558_v46, 8 }
 0xf78   :  { %2568 = vxpose.xlu1.b32.end [2/2] (short) (narrow) %v4908_v34, 8 }
 0xf96   :  { %5115 = vset.pattern.permute.xlu1 %v5314_v20 }
 0xfa8   :  { %v2742_v8 = vpop.permute.xlu1 %2741  ;;  %v2607_v51 = vpop.permute.xlu0 %2606 }
 0xfad   :  { %v2871_v35 = vpop.permute.xlu1 %2870 }
 0xfb2   :  { %v3000_v37 = vpop.permute.xlu1 %2999 }
 0xfb7   :  { %v2602_v42 = vpop.permute.xlu1 %2601 }
 0xfbc   :  { %v2738_v43 = vpop.permute.xlu1 %2737 }
 0xfc1   :  { %v2867_v44 = vpop.permute.xlu1 %2866 }
 0xfc6   :  { %v2996_v45 = vpop.permute.xlu1 %2995 }
 0xff0   :  { %v2583_v48 = vpop.trf.xlu1 }
 0xff1   :  { %v2612_v49 = vrot.slane %v2583_v48, %v5455_v23  ;;  %v2747_v53 = vrot.slane %v2583_v48, %v5472_v28  ;;  %v2876_v16 = vrot.slane %v2583_v48, %v5507_v47  ;;  %v3005_v25 = vrot.slane %v2583_v48, %v5457_v24 }
 0xff3   :  { %v2613_v54 = vadd.f32 %v2612_v49, %v2602_v42  ;;  %v2614_v55 = vadd.f32 %v2612_v49, %v2607_v51  ;;  %v2749_v57 = vadd.f32 %v2747_v53, %v2742_v8  ;;  %v2877_v58 = vadd.f32 %v2876_v16, %v2867_v44 }
 0xff4   :  { %v2748_v4 = vadd.f32 %v2747_v53, %v2738_v43  ;;  %v2878_v6 = vadd.f32 %v2876_v16, %v2871_v35  ;;  %v3006_v13 = vadd.f32 %v3005_v25, %v2996_v45  ;;  %v3007_v22 = vadd.f32 %v3005_v25, %v3000_v37 }
 0xff5   :  { %vm2616_vm13 = vcmp.gt.f32.partialorder %v2614_v55, 0.0  ;;  %v2618_v60 = vmul.f32 0.2, %v2614_v55  ;;  %vm2751_vm14 = vcmp.gt.f32.partialorder %v2749_v57, 0.0  ;;  %v2753_v7 = vmul.f32 0.2, %v2749_v57 }
 0xff6   :  { %vm2879_vm15 = vcmp.gt.f32.partialorder %v2877_v58, 0.0  ;;  %v2881_v52 = vmul.f32 0.2, %v2877_v58  ;;  %v2617_v62 = vmul.f32 0.2, %v2613_v54  ;;  %vm2615_vm0 = vcmp.gt.f32.partialorder %v2613_v54, 0.0 }
 0xff7   :  { %v2620_v61 = vsel %vm2616_vm13, %v2614_v55, %v2618_v60  ;;  %v2755_v41 = vsel %vm2751_vm14, %v2749_v57, %v2753_v7  ;;  %v2752_v32 = vmul.f32 0.2, %v2748_v4  ;;  %vm2750_vm1 = vcmp.gt.f32.partialorder %v2748_v4, 0.0 }
 0xff8   :  { %v2883_v63 = vsel %vm2879_vm15, %v2877_v58, %v2881_v52  ;;  %v2622_v38 = vadd.f32 %v2620_v61, %v5515_v59  ;;  %v2757_v2 = vadd.f32 %v2755_v41, %v5515_v59  ;;  %v2619_v3 = vsel %vm2615_vm0, %v2613_v54, %v2617_v62 }
 0xff9   :  { %v6068_v0 = vadd.f32 %v2883_v63, %v5522_v10  ;;  %v2621_v11 = vadd.f32 %v2619_v3, %v5522_v10  ;;  %v2754_v17 = vsel %vm2750_vm1, %v2748_v4, %v2752_v32  ;;  %v2882_v14 = vmul.f32 0.2, %v2878_v6 }
 0xffa   :  { %v2626_v1 = vsel %vm288_vm4, %v2622_v38, -inf  ;;  %v2761_v9 = vsel %vm288_vm4, %v2757_v2, -inf  ;;  %vm2880_vm2 = vcmp.gt.f32.partialorder %v2878_v6, 0.0  ;;  %v2756_v15 = vadd.f32 %v2754_v17, %v5522_v10 }
 0xffb   :  { %v2887_v29 = vsel %vm288_vm4, %v6068_v0, -inf  ;;  %2627 = vmax.xlane.f32.xlu0 %v2626_v1  ;;  %v2623_v21 = vsel %vm288_vm4, %v2621_v11, -inf  ;;  %v2884_v12 = vsel %vm2880_vm2, %v2878_v6, %v2882_v14  ;;  %v3010_v31 = vmul.f32 0.2, %v3006_v13 }
 0xffc   :  { %2888 = vmax.xlane.f32.xlu1 %v2887_v29  ;;  %vm3008_vm3 = vcmp.gt.f32.partialorder %v3006_v13, 0.0  ;;  %v2758_v34 = vsel %vm288_vm4, %v2756_v15, -inf  ;;  %v2886_v46 = vadd.f32 %v2884_v12, %v5515_v59  ;;  %v3011_v35 = vmul.f32 0.2, %v3007_v22 }
 0xffd   :  { %v3012_v8 = vsel %vm3008_vm3, %v3006_v13, %v3010_v31  ;;  %vm3009_vm5 = vcmp.gt.f32.partialorder %v3007_v22, 0.0  ;;  %vm5319_vm14 = vmmov 0   ;;  %vm4132_vm15 = vcmask 254976  }
 0xffe   :  { %v2890_v42 = vsel %vm288_vm4, %v2886_v46, -inf  ;;  %v3014_v43 = vadd.f32 %v3012_v8, %v5522_v10  ;;  %v3013_v44 = vsel %vm3009_vm5, %v3007_v22, %v3011_v35 }
 0xfff   :  { %2762 = vmax.xlane.f32.xlu0 %v2761_v9  ;;  %v3015_v45 = vadd.f32 %v3013_v44, %v5515_v59 }
0x1000   :  { %v3016_v37 = vsel %vm288_vm4, %v3014_v43, -inf }
0x1001   :  { %v3019_v48 = vsel %vm288_vm4, %v3015_v45, -inf }
0x1003   :  { %2624 = vmax.xlane.f32.xlu0 %v2623_v21 }
0x1007   :  { %2759 = vmax.xlane.f32.xlu0 %v2758_v34 }
0x100b   :  { %2891 = vmax.xlane.f32.xlu0 %v2890_v42 }
0x100f   :  { %3017 = vmax.xlane.f32.xlu0 %v3016_v37 }
0x1013   :  { %3020 = vmax.xlane.f32.xlu0 %v3019_v48 }
0x1084   :  { %v2628_v49 = vpop.xlane.xlu0 %2627 }
0x1085   :  { %v2630_v53 = vsub.f32 %v2622_v38, %v2628_v49  ;;  %v2889_v25 = vpop.xlane.xlu1 %2888 }
0x1087   :  { %v2633_v16 = vmul.f32 1.442695, %v2630_v53 }
0x1088   :  { %v2763_v51 = vpop.xlane.xlu0 %2762 }
0x1089   :  { %5223 = vpow2.f32 %v2633_v16  ;;  %v2765_v54 = vsub.f32 %v2757_v2, %v2763_v51  ;;  %v2893_v2 = vsub.f32 %v6068_v0, %v2889_v25 }
0x108b   :  { %v2768_v55 = vmul.f32 1.442695, %v2765_v54  ;;  %v2895_v9 = vmul.f32 1.442695, %v2893_v2 }
0x108c   :  { %v2625_v57 = vpop.xlane.xlu0 %2624 }
0x108d   :  { %5225 = vpow2.f32 %v2768_v55  ;;  %v2629_v60 = vsub.f32 %v2621_v11, %v2625_v57 }
0x108f   :  { %v2631_v61 = vmul.f32 1.442695, %v2629_v60  ;;  %v2909_v60 = vmul.f32 %v6040_v18, %v5555_v56 }
0x1090   :  { %v2760_v58 = vpop.xlane.xlu0 %2759 }
0x1091   :  { %v2764_v41 = vsub.f32 %v2756_v15, %v2760_v58 }
0x1093   :  { %v2766_v6 = vmul.f32 1.442695, %v2764_v41 }
0x1094   :  { %v2892_v7 = vpop.xlane.xlu0 %2891 }
0x1095   :  { %v2894_v52 = vsub.f32 %v2886_v46, %v2892_v7 }
0x1096   :  { %v5224_v4 = vpop.eup %5223 }
0x1097   :  { %v2897_v62 = vmul.f32 1.442695, %v2894_v52  ;;  %v2638_v63 = vsel %vm288_vm4, %v5224_v4, 0.0 }
0x1098   :  { %2639 = vadd.xlane.f32.xlu0 %v2638_v63  ;;  %v3018_v38 = vpop.xlane.xlu0 %3017 }
0x1099   :  { %5227 = vpow2.f32 %v2897_v62  ;;  %v3022_v11 = vsub.f32 %v3014_v43, %v3018_v38 }
0x109a   :  { %v6087_v1 = vpop.eup %5225  ;;  %5229 = vpow2.f32 %v2631_v61 }
0x109b   :  { %v2773_v29 = vsel %vm288_vm4, %v6087_v1, 0.0  ;;  %5231 = vpow2.f32 %v2766_v6  ;;  %v3024_v17 = vmul.f32 1.442695, %v3022_v11  ;;  %v4275_v6 = vld [vmem:[%s6395_s7 + $0x1e8] sm:$0xff]  ;;  %v4270_v11 = vld [vmem:[%s6395_s7 + $0x1c0] sm:$0xff] }
0x109c   :  { %2774 = vadd.xlane.f32.xlu0 %v2773_v29  ;;  %v3021_v3 = vpop.xlane.xlu0 %3020  ;;  %v4274_v29 = vld [vmem:[%s6395_s7 + $0x1e0] sm:$0xff] }
0x109d   :  { %v3023_v32 = vsub.f32 %v3015_v45, %v3021_v3  ;;  %v4273_v3 = vld [vmem:[%s6395_s7 + $0x1d8] sm:$0xff] }
0x109f   :  { %v3026_v13 = vmul.f32 1.442695, %v3023_v32  ;;  %v4272_v32 = vld [vmem:[%s6395_s7 + $0x1d0] sm:$0xff] }
0x10a1   :  { %5233 = vpow2.f32 %v3026_v13  ;;  %v4269_v13 = vld [vmem:[%s6395_s7 + $0x1b8] sm:$0xff] }
0x10a2   :  { %5235 = vpow2.f32 %v2895_v9  ;;  %v4271_v9 = vld [vmem:[%s6395_s7 + $0x1c8] sm:$0xff] }
0x10a3   :  { %5237 = vpow2.f32 %v3024_v17  ;;  %v4268_v17 = vld [vmem:[%s6395_s7 + $0x1b0] sm:$0xff] }
0x10a6   :  { %v5228_v14 = vpop.eup %5227 }
0x10a7   :  { %v2902_v21 = vsel %vm288_vm4, %v5228_v14, 0.0  ;;  %v5230_v0 = vpop.eup %5229 }
0x10a8   :  { %2903 = vadd.xlane.f32.xlu0 %v2902_v21  ;;  %v2635_v15 = vsel %vm288_vm4, %v5230_v0, 0.0  ;;  %v5232_v22 = vpop.eup %5231  ;;  %v4266_v21 = vld [vmem:[%s6395_s7 + $0x1a0] sm:$0xff] }
0x10a9   :  { %v2770_v31 = vsel %vm288_vm4, %v5232_v22, 0.0 }
0x10ac   :  { %2636 = vadd.xlane.f32.xlu0 %v2635_v15  ;;  %v4264_v15 = vld [vmem:[%s6395_s7 + $0x190] sm:$0xff] }
0x10ae   :  { %v5234_v12 = vpop.eup %5233 }
0x10af   :  { %v3031_v34 = vsel %vm288_vm4, %v5234_v12, 0.0  ;;  %v5236_v46 = vpop.eup %5235 }
0x10b0   :  { %2771 = vadd.xlane.f32.xlu0 %v2770_v31  ;;  %3032 = vadd.xlane.f32.xlu1 %v3031_v34  ;;  %v2899_v8 = vsel %vm288_vm4, %v5236_v46, 0.0  ;;  %v5238_v35 = vpop.eup %5237  ;;  %v4292_v31 = vld [vmem:[%s6396_s8 + $0x1f0] sm:$0xff]  ;;  %v4262_v34 = vld [vmem:[%s6395_s7 + $0x180] sm:$0xff] }
0x10b1   :  { %v3028_v42 = vsel %vm288_vm4, %v5238_v35, 0.0 }
0x10b4   :  { %2900 = vadd.xlane.f32.xlu0 %v2899_v8  ;;  %v4290_v8 = vld [vmem:[%s6396_s8 + $0x1e0] sm:$0xff] }
0x10b8   :  { %3029 = vadd.xlane.f32.xlu0 %v3028_v42  ;;  %v4288_v42 = vld [vmem:[%s6396_s8 + $0x1d0] sm:$0xff] }
0x1121   :  { %v2640_v43 = vpop.xlane.xlu0 %2639 }
0x1122   :  { %5239 = vrcp.f32 %v2640_v43  ;;  %v4287_v43 = vld [vmem:[%s6396_s8 + $0x1c8] sm:$0xff] }
0x1125   :  { %v2775_v44 = vpop.xlane.xlu0 %2774 }
0x112f   :  { %v5240_v51 = vpop.eup %5239 }
0x1130   :  { %v2644_v57 = vmul.f32 %v5240_v51, %v5224_v4  ;;  %v3038_v4 = vmul.f32 %v6040_v18, %v5470_v27  ;;  %v4277_v18 = vld [vmem:[%s6395_s7 + $0x1f8] sm:$0xff]  ;;  %v4279_v51 = vld [vmem:[%s6396_s8 + $0x188] sm:$0xff] }
0x1131   :  { %v2904_v37 = vpop.xlane.xlu0 %2903 }
0x1135   :  { %v2637_v45 = vpop.xlane.xlu0 %2636 }
0x1136   :  { %5241 = vrcp.f32 %v2637_v45  ;;  %v4284_v45 = vld [vmem:[%s6396_s8 + $0x1b0] sm:$0xff] }
0x1137   :  { %5243 = vrcp.f32 %v2775_v44  ;;  %v4286_v44 = vld [vmem:[%s6396_s8 + $0x1c0] sm:$0xff] }
0x1139   :  { %v2772_v48 = vpop.xlane.xlu0 %2771  ;;  %v3033_v53 = vpop.xlane.xlu1 %3032 }
0x113a   :  { %5245 = vrcp.f32 %v2772_v48  ;;  %v4283_v48 = vld [vmem:[%s6396_s8 + $0x1a8] sm:$0xff] }
0x113b   :  { %5247 = vrcp.f32 %v2904_v37  ;;  %v4285_v37 = vld [vmem:[%s6396_s8 + $0x1b8] sm:$0xff] }
0x113d   :  { %v2901_v49 = vpop.xlane.xlu0 %2900 }
0x113e   :  { %5249 = vrcp.f32 %v2901_v49  ;;  %v4282_v49 = vld [vmem:[%s6396_s8 + $0x1a0] sm:$0xff] }
0x113f   :  { %5251 = vrcp.f32 %v3033_v53  ;;  %v4281_v53 = vld [vmem:[%s6396_s8 + $0x198] sm:$0xff] }
0x1141   :  { %v3030_v16 = vpop.xlane.xlu0 %3029 }
0x1142   :  { %5253 = vrcp.f32 %v3030_v16  ;;  %v4280_v16 = vld [vmem:[%s6396_s8 + $0x190] sm:$0xff] }
0x1143   :  { %v5242_v54 = vpop.eup %5241 }
0x1144   :  { %v2643_v55 = vmul.f32 %v5242_v54, %v5230_v0  ;;  %v5244_v58 = vpop.eup %5243  ;;  %v4265_v0 = vld [vmem:[%s6395_s7 + $0x198] sm:$0xff] }
0x1145   :  { %v2779_v41 = vmul.f32 %v5244_v58, %v6087_v1 }
0x1146   :  { %4913 = vmatprep.mubr.msk.f32.mxu1 %vm288_vm4, %v2643_v55  ;;  %v4251_v55 = vld [vmem:[%s6397_s9 + $0x2] ss:$0 sm:$0xff] }
0x1147   :  { %4914 = vmatmul.mubr.msk.f32.vlgmr.msra.gmra.mxu1 %vm288_vm4, %v2644_v57  ;;  %v5246_v7 = vpop.eup %5245 }
0x1148   :  { %4924 = vmatpush3.msra.mxu1 %v6048_v50  ;;  %v2778_v52 = vmul.f32 %v5246_v7, %v5232_v22  ;;  %v5248_v61 = vpop.eup %5247  ;;  %v4263_v22 = vld [vmem:[%s6395_s7 + $0x188] sm:$0xff] }
0x1149   :  { %4925 = vmatprep.subr.mxu1 %v2909_v60  ;;  %v2908_v25 = vmul.f32 %v5248_v61, %v5228_v14  ;;  %v4267_v14 = vld [vmem:[%s6395_s7 + $0x1a8] sm:$0xff] }
0x114a   :  { %4926 = vmatpush3.msra.mxu1 %v2909_v60  ;;  %4920 = vmatprep.mubr.msk.f32.mxu0 %vm288_vm4, %v2778_v52 }
0x114b   :  { %v5250_v62 = vpop.eup %5249  ;;  %4921 = vmatmul.mubr.msk.f32.vlgmr.msra.gmra.mxu0 %vm288_vm4, %v2779_v41  ;;  %4937 = vmatprep.subr.mxu1 %v4277_v18 }
0x114c   :  { %v2907_v63 = vmul.f32 %v5250_v62, %v5236_v46  ;;  %4931 = vmatpush3.msra.mxu0 %v6051_v30  ;;  %v5252_v38 = vpop.eup %5251  ;;  %v4276_v30 = vld [vmem:[%s6395_s7 + $0x1f0] sm:$0xff]  ;;  %v4291_v46 = vld [vmem:[%s6396_s8 + $0x1e8] sm:$0xff] }
0x114d   :  { %4932 = vmatprep.subr.mxu0 %v3038_v4  ;;  %v3037_v2 = vmul.f32 %v5252_v38, %v5234_v12  ;;  %v4293_v12 = vld [vmem:[%s6396_s8 + $0x1f8] sm:$0xff] }
0x114e   :  { %4927 = vmatprep.mubr.msk.f32.mxu1 %vm288_vm4, %v2907_v63  ;;  %4933 = vmatpush3.msra.mxu0 %v3038_v4 }
0x114f   :  { %v5254_v50 = vpop.eup %5253  ;;  %4928 = vmatmul.mubr.msk.f32.vlgmr.msra.gmra.mxu1 %vm288_vm4, %v2908_v25  ;;  %4972 = vmatprep.subr.mxu0 %v4293_v12 }
0x1150   :  { %v3036_v1 = vmul.f32 %v5254_v50, %v5238_v35  ;;  %4938 = vmatpush3.msra.mxu1 %v4277_v18  ;;  %v4289_v35 = vld [vmem:[%s6396_s8 + $0x1d8] sm:$0xff] }
0x1151   :  { %4939 = vmatprep.subr.mxu1 %v4276_v30 }
0x1152   :  { %4934 = vmatprep.mubr.msk.f32.mxu0 %vm288_vm4, %v3036_v1  ;;  %4940 = vmatpush3.msra.mxu1 %v4276_v30 }
0x1153   :  { %4935 = vmatmul.mubr.msk.f32.vlgmr.msra.gmra.mxu0 %vm288_vm4, %v3037_v2  ;;  %4941 = vmatprep.subr.mxu1 %v4275_v6 }
0x1154   :  { %4942 = vmatpush3.msra.mxu1 %v4275_v6  ;;  %4973 = vmatpush3.msra.mxu0 %v4293_v12 }
0x1155   :  { %4943 = vmatprep.subr.mxu1 %v4274_v29  ;;  %4974 = vmatprep.subr.mxu0 %v4292_v31 }
0x1156   :  { %4944 = vmatpush3.msra.mxu1 %v4274_v29  ;;  %4975 = vmatpush3.msra.mxu0 %v4292_v31 }
0x1157   :  { %4945 = vmatprep.subr.mxu1 %v4273_v3  ;;  %4976 = vmatprep.subr.mxu0 %v4291_v46 }
0x1158   :  { %4946 = vmatpush3.msra.mxu1 %v4273_v3  ;;  %4977 = vmatpush3.msra.mxu0 %v4291_v46 }
0x1159   :  { %4947 = vmatprep.subr.mxu1 %v4272_v32  ;;  %4978 = vmatprep.subr.mxu0 %v4290_v8 }
0x115a   :  { %4948 = vmatpush3.msra.mxu1 %v4272_v32  ;;  %4979 = vmatpush3.msra.mxu0 %v4290_v8 }
0x115b   :  { %4949 = vmatprep.subr.mxu1 %v4271_v9  ;;  %4980 = vmatprep.subr.mxu0 %v4289_v35 }
0x115c   :  { %4950 = vmatpush3.msra.mxu1 %v4271_v9  ;;  %4981 = vmatpush3.msra.mxu0 %v4289_v35 }
0x115d   :  { %4951 = vmatprep.subr.mxu1 %v4270_v11  ;;  %4982 = vmatprep.subr.mxu0 %v4288_v42 }
0x115e   :  { %4952 = vmatpush3.msra.mxu1 %v4270_v11  ;;  %4983 = vmatpush3.msra.mxu0 %v4288_v42 }
0x115f   :  { %4953 = vmatprep.subr.mxu1 %v4269_v13  ;;  %4984 = vmatprep.subr.mxu0 %v4287_v43 }
0x1160   :  { %4954 = vmatpush3.msra.mxu1 %v4269_v13  ;;  %4985 = vmatpush3.msra.mxu0 %v4287_v43 }
0x1161   :  { %4955 = vmatprep.subr.mxu1 %v4268_v17  ;;  %4986 = vmatprep.subr.mxu0 %v4286_v44 }
0x1162   :  { %4956 = vmatpush3.msra.mxu1 %v4268_v17  ;;  %4987 = vmatpush3.msra.mxu0 %v4286_v44 }
0x1163   :  { %4957 = vmatprep.subr.mxu1 %v4267_v14  ;;  %4988 = vmatprep.subr.mxu0 %v4285_v37 }
0x1164   :  { %4958 = vmatpush3.msra.mxu1 %v4267_v14  ;;  %4989 = vmatpush3.msra.mxu0 %v4285_v37 }
0x1165   :  { %4959 = vmatprep.subr.mxu1 %v4266_v21  ;;  %4990 = vmatprep.subr.mxu0 %v4284_v45 }
0x1166   :  { %4960 = vmatpush3.msra.mxu1 %v4266_v21  ;;  %4991 = vmatpush3.msra.mxu0 %v4284_v45 }
0x1167   :  { %4961 = vmatprep.subr.mxu1 %v4265_v0  ;;  %4992 = vmatprep.subr.mxu0 %v4283_v48 }
0x1168   :  { %4962 = vmatpush3.msra.mxu1 %v4265_v0  ;;  %4993 = vmatpush3.msra.mxu0 %v4283_v48  ;;  %v4259_v48 = vld [vmem:[%s6398_s10 + $0x2] ss:$0 sm:$0xff] }
0x1169   :  { %4963 = vmatprep.subr.mxu1 %v4264_v15  ;;  %4994 = vmatprep.subr.mxu0 %v4282_v49 }
0x116a   :  { %4964 = vmatpush3.msra.mxu1 %v4264_v15  ;;  %4995 = vmatpush3.msra.mxu0 %v4282_v49 }
0x116b   :  { %4965 = vmatprep.subr.mxu1 %v4263_v22  ;;  %4996 = vmatprep.subr.mxu0 %v4281_v53 }
0x116c   :  { %4966 = vmatpush3.msra.mxu1 %v4263_v22  ;;  %4997 = vmatpush3.msra.mxu0 %v4281_v53 }
0x116d   :  { %4967 = vmatprep.subr.mxu1 %v4262_v34  ;;  %4998 = vmatprep.subr.mxu0 %v4280_v16 }
0x116e   :  { %4968 = vmatpush3.msra.mxu1 %v4262_v34  ;;  %4999 = vmatpush3.msra.mxu0 %v4280_v16  ;;  %v4261_v16 = vld [vmem:[%s6399_s11 + $0x2] ss:$0 sm:$0xff] }
0x116f   :  { %5000 = vmatprep.subr.mxu0 %v4279_v51 }
0x1170   :  { %5001 = vmatpush3.msra.mxu0 %v4279_v51 }
0x1207   :  { %v4915_v54 = vpop.f32.mrf.mxu1 }
0x1208   :  { %v2735_v60 = vadd.f32 %v4915_v54, %v4251_v55 }
0x1209   :  { %v2719_v58 = vpop.f32.mrf.mxu1 }
0x120a   :  { %v2734_v61 = vadd.f32 %v4251_v55, %v2719_v58  ;;  %v4278_v58 = vld [vmem:[%s6396_s8 + $0x180] sm:$0xff] }
0x120b   :  { %v4922_v57 = vpop.f32.mrf.mxu0  ;;  %5002 = vmatprep.subr.mxu0 %v4278_v58 }
0x120c   :  { %v2864_v41 = vadd.f32 %v4922_v57, %v2735_v60  ;;  %5003 = vmatpush3.msra.mxu0 %v4278_v58 }
0x120d   :  { %v2854_v7 = vpop.f32.mrf.mxu0 }
0x120e   :  { %v2863_v4 = vadd.f32 %v2854_v7, %v2734_v61 }
0x120f   :  { %v4929_v52 = vpop.f32.mrf.mxu1 }
0x1210   :  { %v2993_v63 = vadd.f32 %v4929_v52, %v2864_v41 }
0x1211   :  { %v2983_v62 = vpop.f32.mrf.mxu1 }
0x1212   :  { %v2992_v38 = vadd.f32 %v2983_v62, %v2863_v4 }
0x1213   :  { %v4936_v25 = vpop.f32.mrf.mxu0 }
0x1214   :  { %v3122_v50 = vadd.f32 %v4936_v25, %v2993_v63 }
0x1215   :  { %v3112_v1 = vpop.f32.mrf.mxu0 }
0x1216   :  { %v3124_v2 = vmax.f32 %v3122_v50, 0.0  ;;  %v3121_v18 = vadd.f32 %v3112_v1, %v2992_v38 }
0x1218   :  { %v3126_v30 = vadd.f32 %v3124_v2, %v5666_v36  ;;  %v3123_v6 = vmax.f32 %v3121_v18, 0.0 }
0x121a   :  { %v3125_v29 = vadd.f32 %v3123_v6, %v5664_v5  ;;  %v3128_v3 = vmax.f32 %v3126_v30, 0.0 }
0x121c   :  { %v3127_v32 = vmax.f32 %v3125_v29, 0.0 }
0x121e   :  { %v3129_v9 = vadd.f32 %v3128_v3, %v3127_v32 }
0x1220   :  { %v3130_v11 = vrot.slane %v3129_v9, 4 }
0x1222   :  { %v3131_v13 = vadd.f32 %v3130_v11, %v3129_v9 }
0x1224   :  { %v3132_v17 = vrot.slane %v3131_v13, 2 }
0x1226   :  { %v3133_v14 = vadd.f32 %v3132_v17, %v3131_v13 }
0x1228   :  { %v3134_v21 = vrot.slane %v3133_v14, 1 }
0x122a   :  { %v3135_v0 = vadd.f32 %v3134_v21, %v3133_v14 }
0x122c   :  { %v3136_v15 = vmul.f32 0.0625, %v3135_v0 }
0x122e   :  { %v3137_v22 = vsub.f32 %v3127_v32, %v3136_v15  ;;  %v3138_v12 = vsub.f32 %v3128_v3, %v3136_v15 }
0x1230   :  { %v3139_v31 = vmul.f32 %v3137_v22, %v3137_v22  ;;  %v3140_v34 = vmul.f32 %v3138_v12, %v3138_v12 }
0x1232   :  { %v3141_v46 = vadd.f32 %v3140_v34, %v3139_v31 }
0x1234   :  { %v3142_v8 = vrot.slane %v3141_v46, 4 }
0x1236   :  { %v3143_v36 = vadd.f32 %v3142_v8, %v3141_v46 }
0x1238   :  { %v3144_v35 = vrot.slane %v3143_v36, 2 }
0x123a   :  { %v3145_v42 = vadd.f32 %v3144_v35, %v3143_v36 }
0x123c   :  { %v3146_v5 = vrot.slane %v3145_v42, 1 }
0x123e   :  { %v3147_v43 = vadd.f32 %v3146_v5, %v3145_v42 }
0x1240   :  { %v3148_v44 = vmul.f32 0.0625, %v3147_v43 }
0x1242   :  { %v3149_v37 = vadd.f32 1e-05, %v3148_v44 }
0x1244   :  { %5255 = vrsqrt.f32 %v3149_v37 }
0x1251   :  { %v5256_v45 = vpop.eup %5255 }
0x1252   :  { %v3151_v49 = vmul.f32 %v5256_v45, %v3137_v22  ;;  %v3152_v53 = vmul.f32 %v5256_v45, %v3138_v12 }
0x1254   :  { %v3161_v51 = vmul.f32 %v4259_v48, %v3151_v49  ;;  %v3162_v54 = vmul.f32 %v4259_v48, %v3152_v53 }
0x1256   :  { %v6217_v55 = vadd.f32 %v4261_v16, %v3161_v51  ;;  %v6219_v57 = vadd.f32 %v4261_v16, %v3162_v54 }
0x1258   :  { %4969 = vmatprep.mubr.f32.mxu1 %v6217_v55 }
0x1259   :  { %4970 = vmatmul.mubr.f32.vlgmr.msra.gmra.mxu1 %v6219_v57 }
0x1319   :  { %v4971_v60 = vpop.f32.mrf.mxu1 }
0x131a   :  { %v3438_v7 = vmul.f32 %v4971_v60, %v5466_v26  ;;  %v3573_v52 = vmul.f32 %v4971_v60, %v5484_v33  ;;  %v6236_v4 = vmul.f32 %v4971_v60, %v5555_v56  ;;  %v6239_v63 = vmul.f32 %v4971_v60, %v5470_v27 }
0x131b   :  { %v6228_v61 = vpop.f32.mrf.mxu1 }
0x131c   :  { %5004 = vmatprep.mubr.f32.mxu0 %v6228_v61  ;;  %5007 = vmatprep.subr.mxu1 %v3438_v7  ;;  %v3437_v41 = vmul.f32 %v6228_v61, %v5466_v26  ;;  %v3572_v62 = vmul.f32 %v6228_v61, %v5484_v33 }
0x131d   :  { %5014 = vmatprep.subr.mxu0 %v3573_v52  ;;  %5005 = vmatmul.mubr.f32.vlgmr.msra.gmra.mxu0 %v4971_v60 }
0x131e   :  { %5008 = vmatpush3.msra.mxu1 %v3438_v7  ;;  %5015 = vmatpush3.msra.mxu0 %v3573_v52 }
0x131f   :  { %5009 = vmatprep.subr.mxu1 %v3437_v41  ;;  %5016 = vmatprep.subr.mxu0 %v3572_v62 }
0x1320   :  { %5010 = vmatpush3.msra.mxu1 %v3437_v41  ;;  %5017 = vmatpush3.msra.mxu0 %v3572_v62 }
0x1321   :  { %5021 = vmatprep.subr.mxu1 %v6236_v4  ;;  %5028 = vmatprep.subr.mxu0 %v6239_v63 }
0x13dd   :  { %v5006_v26 = vpop.f32.mrf.mxu0 }
0x13de   :  { %3533 = vperm.xlu0 %5116, %v5006_v26   ;;  %3398 = vperm.xlu1 %5115, %v5006_v26  }
0x13df   :  { %v3350_v33 = vpop.f32.mrf.mxu0 }
0x13e2   :  { %5118 = vset.pattern.permute.xlu0 %v5314_v20  ;;  %5117 = vset.pattern.permute.xlu1 %v5315_v39 }
0x13e3   :  { %3662 = vperm.xlu1 %5117, %v5006_v26   ;;  %3393 = vperm.xlu0 %5118, %v3350_v33  }
0x13e7   :  { %5119 = vset.pattern.permute.xlu1 %v5313_v19  ;;  %5121 = vset.pattern.permute.xlu0 %v5316_v40 }
0x13e8   :  { %3529 = vperm.xlu1 %5119, %v3350_v33   ;;  %3787 = vperm.xlu0 %5121, %v3350_v33  }
0x13ec   :  { %5120 = vset.pattern.permute.xlu1 %v5315_v39 }
0x13ed   :  { %3658 = vperm.xlu1 %5120, %v3350_v33  }
0x13f1   :  { %5122 = vset.pattern.permute.xlu1 %v5316_v40 }
0x13f2   :  { %3791 = vperm.xlu1 %5122, %v5006_v26  }
0x141b   :  { %3359 = vxpose.xlu1.b32.start [1/2] (short) (narrow) %v3350_v33, 8 }
0x141f   :  { %3360 = vxpose.xlu1.b32.end [2/2] (short) (narrow) %v5006_v26, 8 }
0x1459   :  { %v3399_v25 = vpop.permute.xlu1 %3398  ;;  %v3534_v1 = vpop.permute.xlu0 %3533 }
0x145e   :  { %v3663_v20 = vpop.permute.xlu1 %3662  ;;  %v3394_v39 = vpop.permute.xlu0 %3393 }
0x1463   :  { %v3530_v38 = vpop.permute.xlu1 %3529  ;;  %v3788_v36 = vpop.permute.xlu0 %3787 }
0x1468   :  { %v3659_v50 = vpop.permute.xlu1 %3658 }
0x146d   :  { %v3792_v2 = vpop.permute.xlu1 %3791 }
0x1497   :  { %v3375_v18 = vpop.trf.xlu1 }
0x1498   :  { %v3404_v19 = vrot.slane %v3375_v18, %v5455_v23  ;;  %v3539_v30 = vrot.slane %v3375_v18, %v5472_v28  ;;  %v3668_v6 = vrot.slane %v3375_v18, %v5507_v47  ;;  %v3797_v15 = vrot.slane %v3375_v18, %v5457_v24 }
0x149a   :  { %v3405_v29 = vadd.f32 %v3404_v19, %v3394_v39  ;;  %v3406_v3 = vadd.f32 %v3404_v19, %v3399_v25  ;;  %v3541_v40 = vadd.f32 %v3539_v30, %v3534_v1  ;;  %v3669_v32 = vadd.f32 %v3668_v6, %v3659_v50 }
0x149b   :  { %v3540_v17 = vadd.f32 %v3539_v30, %v3530_v38  ;;  %v3670_v31 = vadd.f32 %v3668_v6, %v3663_v20  ;;  %v3798_v5 = vadd.f32 %v3797_v15, %v3788_v36  ;;  %v3799_v45 = vadd.f32 %v3797_v15, %v3792_v2 }
0x149c   :  { %vm3408_vm6 = vcmp.gt.f32.partialorder %v3406_v3, 0.0  ;;  %v3410_v9 = vmul.f32 0.2, %v3406_v3  ;;  %vm3543_vm7 = vcmp.gt.f32.partialorder %v3541_v40, 0.0  ;;  %v3545_v11 = vmul.f32 0.2, %v3541_v40 }
0x149d   :  { %vm3671_vm8 = vcmp.gt.f32.partialorder %v3669_v32, 0.0  ;;  %v3673_v13 = vmul.f32 0.2, %v3669_v32  ;;  %v3409_v0 = vmul.f32 0.2, %v3405_v29  ;;  %vm3407_vm9 = vcmp.gt.f32.partialorder %v3405_v29, 0.0 }
0x149e   :  { %v3412_v14 = vsel %vm3408_vm6, %v3406_v3, %v3410_v9  ;;  %v3547_v21 = vsel %vm3543_vm7, %v3541_v40, %v3545_v11  ;;  %v3544_v8 = vmul.f32 0.2, %v3540_v17  ;;  %vm3542_vm10 = vcmp.gt.f32.partialorder %v3540_v17, 0.0 }
0x149f   :  { %v3675_v23 = vsel %vm3671_vm8, %v3669_v32, %v3673_v13  ;;  %v3414_v28 = vadd.f32 %v3412_v14, %v5515_v59  ;;  %v3549_v12 = vadd.f32 %v3547_v21, %v5515_v59  ;;  %v3411_v46 = vsel %vm3407_vm9, %v3405_v29, %v3409_v0 }
0x14a0   :  { %v6254_v47 = vadd.f32 %v3675_v23, %v5522_v10  ;;  %v3413_v42 = vadd.f32 %v3411_v46, %v5522_v10  ;;  %v3546_v24 = vsel %vm3542_vm10, %v3540_v17, %v3544_v8  ;;  %v3674_v43 = vmul.f32 0.2, %v3670_v31 }
0x14a1   :  { %v3418_v22 = vsel %vm288_vm4, %v3414_v28, -inf  ;;  %v3553_v35 = vsel %vm288_vm4, %v3549_v12, -inf  ;;  %vm3672_vm11 = vcmp.gt.f32.partialorder %v3670_v31, 0.0  ;;  %v3548_v37 = vadd.f32 %v3546_v24, %v5522_v10 }
0x14a2   :  { %v3679_v34 = vsel %vm288_vm4, %v6254_v47, -inf  ;;  %3419 = vmax.xlane.f32.xlu0 %v3418_v22  ;;  %v3415_v44 = vsel %vm288_vm4, %v3413_v42, -inf  ;;  %v3676_v48 = vsel %vm3672_vm11, %v3670_v31, %v3674_v43  ;;  %v3802_v49 = vmul.f32 0.2, %v3798_v5 }
0x14a3   :  { %3680 = vmax.xlane.f32.xlu1 %v3679_v34  ;;  %vm3800_vm12 = vcmp.gt.f32.partialorder %v3798_v5, 0.0  ;;  %v3550_v53 = vsel %vm288_vm4, %v3548_v37, -inf  ;;  %v3678_v16 = vadd.f32 %v3676_v48, %v5515_v59  ;;  %v3803_v54 = vmul.f32 0.2, %v3799_v45 }
0x14a4   :  { %v3804_v51 = vsel %vm3800_vm12, %v3798_v5, %v3802_v49  ;;  %vm3801_vm13 = vcmp.gt.f32.partialorder %v3799_v45, 0.0 }
0x14a5   :  { %v3682_v58 = vsel %vm288_vm4, %v3678_v16, -inf  ;;  %v3806_v60 = vadd.f32 %v3804_v51, %v5522_v10  ;;  %v3805_v7 = vsel %vm3801_vm13, %v3799_v45, %v3803_v54 }
0x14a6   :  { %3554 = vmax.xlane.f32.xlu0 %v3553_v35  ;;  %v3807_v41 = vadd.f32 %v3805_v7, %v5515_v59  ;;  %v3701_v7 = vmul.f32 %v6228_v61, %v5555_v56 }
0x14a7   :  { %v3808_v52 = vsel %vm288_vm4, %v3806_v60, -inf }
0x14a8   :  { %v3811_v62 = vsel %vm288_vm4, %v3807_v41, -inf }
0x14aa   :  { %3416 = vmax.xlane.f32.xlu0 %v3415_v44 }
0x14ae   :  { %3551 = vmax.xlane.f32.xlu0 %v3550_v53 }
0x14b2   :  { %3683 = vmax.xlane.f32.xlu0 %v3682_v58 }
0x14b6   :  { %3809 = vmax.xlane.f32.xlu0 %v3808_v52 }
0x14ba   :  { %3812 = vmax.xlane.f32.xlu0 %v3811_v62 }
0x152b   :  { %v3420_v26 = vpop.xlane.xlu0 %3419 }
0x152c   :  { %v3422_v33 = vsub.f32 %v3414_v28, %v3420_v26  ;;  %v3681_v3 = vpop.xlane.xlu1 %3680 }
0x152d   :  { %v3685_v9 = vsub.f32 %v6254_v47, %v3681_v3  ;;  %v4043_v3 = vld [vmem:[%s6400_s12 + $0x20] sm:$0xff] }
0x152e   :  { %v3425_v25 = vmul.f32 1.442695, %v3422_v33 }
0x152f   :  { %v3555_v20 = vpop.xlane.xlu0 %3554  ;;  %v3687_v21 = vmul.f32 1.442695, %v3685_v9  ;;  %v4040_v9 = vld [vmem:[%s6400_s12 + $0x8] sm:$0xff] }
0x1530   :  { %5257 = vpow2.f32 %v3425_v25  ;;  %v3557_v38 = vsub.f32 %v3549_v12, %v3555_v20  ;;  %v3830_v25 = vmul.f32 %v6228_v61, %v5470_v27  ;;  %v4054_v27 = vld [vmem:[%s6400_s12 + $0x78] sm:$0xff]  ;;  %v4053_v61 = vld [vmem:[%s6400_s12 + $0x70] sm:$0xff] }
0x1532   :  { %v3560_v50 = vmul.f32 1.442695, %v3557_v38 }
0x1533   :  { %v3417_v1 = vpop.xlane.xlu0 %3416 }
0x1534   :  { %5259 = vpow2.f32 %v3560_v50  ;;  %v3421_v2 = vsub.f32 %v3413_v42, %v3417_v1 }
0x1536   :  { %v3423_v6 = vmul.f32 1.442695, %v3421_v2  ;;  %v4051_v2 = vld [vmem:[%s6400_s12 + $0x60] sm:$0xff] }
0x1537   :  { %v3552_v10 = vpop.xlane.xlu0 %3551 }
0x1538   :  { %v3556_v59 = vsub.f32 %v3548_v37, %v3552_v10  ;;  %v5318_v10 = vmov 0.0  }
0x153a   :  { %v3558_v11 = vmul.f32 1.442695, %v3556_v59  ;;  %v4046_v59 = vld [vmem:[%s6400_s12 + $0x38] sm:$0xff] }
0x153b   :  { %v3684_v18 = vpop.xlane.xlu0 %3683 }
0x153c   :  { %v3686_v19 = vsub.f32 %v3678_v16, %v3684_v18  ;;  %v4050_v18 = vld [vmem:[%s6400_s12 + $0x58] sm:$0xff] }
0x153d   :  { %v5258_v30 = vpop.eup %5257 }
0x153e   :  { %v3689_v39 = vmul.f32 1.442695, %v3686_v19  ;;  %v3430_v29 = vsel %vm288_vm4, %v5258_v30, 0.0  ;;  %v4049_v19 = vld [vmem:[%s6400_s12 + $0x50] sm:$0xff] }
0x153f   :  { %3431 = vadd.xlane.f32.xlu0 %v3430_v29  ;;  %v3810_v40 = vpop.xlane.xlu0 %3809  ;;  %v4044_v29 = vld [vmem:[%s6400_s12 + $0x28] sm:$0xff] }
0x1540   :  { %5261 = vpow2.f32 %v3689_v39  ;;  %v3814_v0 = vsub.f32 %v3806_v60, %v3810_v40  ;;  %v4045_v39 = vld [vmem:[%s6400_s12 + $0x30] sm:$0xff]  ;;  %v4042_v40 = vld [vmem:[%s6400_s12 + $0x18] sm:$0xff] }
0x1541   :  { %v6273_v32 = vpop.eup %5259  ;;  %5263 = vpow2.f32 %v3423_v6  ;;  %v4047_v6 = vld [vmem:[%s6400_s12 + $0x40] sm:$0xff] }
0x1542   :  { %v3565_v13 = vsel %vm288_vm4, %v6273_v32, 0.0  ;;  %5265 = vpow2.f32 %v3558_v11  ;;  %v3816_v28 = vmul.f32 1.442695, %v3814_v0 }
0x1543   :  { %3566 = vadd.xlane.f32.xlu0 %v3565_v13  ;;  %v3813_v17 = vpop.xlane.xlu0 %3812  ;;  %v4297_v13 = vld [vmem:[%s6397_s9 + $0x3] ss:$0 sm:$0xff] }
0x1544   :  { %v3815_v14 = vsub.f32 %v3807_v41, %v3813_v17 }
0x1546   :  { %v3818_v23 = vmul.f32 1.442695, %v3815_v14 }
0x1548   :  { %5267 = vpow2.f32 %v3818_v23 }
0x1549   :  { %5269 = vpow2.f32 %v3687_v21 }
0x154a   :  { %5271 = vpow2.f32 %v3816_v28 }
0x154d   :  { %v5262_v15 = vpop.eup %5261 }
0x154e   :  { %v3694_v22 = vsel %vm288_vm4, %v5262_v15, 0.0  ;;  %v5264_v47 = vpop.eup %5263 }
0x154f   :  { %3695 = vadd.xlane.f32.xlu0 %v3694_v22  ;;  %v3427_v12 = vsel %vm288_vm4, %v5264_v47, 0.0  ;;  %v5266_v31 = vpop.eup %5265 }
0x1550   :  { %v3562_v46 = vsel %vm288_vm4, %v5266_v31, 0.0 }
0x1553   :  { %3428 = vadd.xlane.f32.xlu0 %v3427_v12 }
0x1555   :  { %v5268_v34 = vpop.eup %5267 }
0x1556   :  { %v3823_v8 = vsel %vm288_vm4, %v5268_v34, 0.0  ;;  %v5270_v36 = vpop.eup %5269 }
0x1557   :  { %3563 = vadd.xlane.f32.xlu0 %v3562_v46  ;;  %3824 = vadd.xlane.f32.xlu1 %v3823_v8  ;;  %v3691_v35 = vsel %vm288_vm4, %v5270_v36, 0.0  ;;  %v5272_v42 = vpop.eup %5271 }
0x1558   :  { %v3820_v5 = vsel %vm288_vm4, %v5272_v42, 0.0 }
0x155b   :  { %3692 = vadd.xlane.f32.xlu0 %v3691_v35 }
0x155f   :  { %3821 = vadd.xlane.f32.xlu0 %v3820_v5 }
0x15c8   :  { %v3432_v24 = vpop.xlane.xlu0 %3431 }
0x15c9   :  { %5273 = vrcp.f32 %v3432_v24 }
0x15cc   :  { %v3567_v43 = vpop.xlane.xlu0 %3566 }
0x15d6   :  { %v5274_v16 = vpop.eup %5273 }
0x15d7   :  { %v3436_v58 = vmul.f32 %v5274_v16, %v5258_v30  ;;  %v4048_v30 = vld [vmem:[%s6400_s12 + $0x48] sm:$0xff] }
0x15d8   :  { %v3696_v44 = vpop.xlane.xlu0 %3695 }
0x15dc   :  { %v3429_v37 = vpop.xlane.xlu0 %3428 }
0x15dd   :  { %5275 = vrcp.f32 %v3429_v37 }
0x15de   :  { %5277 = vrcp.f32 %v3567_v43 }
0x15e0   :  { %v3564_v45 = vpop.xlane.xlu0 %3563  ;;  %v3825_v49 = vpop.xlane.xlu1 %3824 }
0x15e1   :  { %5279 = vrcp.f32 %v3564_v45 }
0x15e2   :  { %5281 = vrcp.f32 %v3696_v44 }
0x15e4   :  { %v3693_v48 = vpop.xlane.xlu0 %3692 }
0x15e5   :  { %5283 = vrcp.f32 %v3693_v48 }
0x15e6   :  { %5285 = vrcp.f32 %v3825_v49 }
0x15e8   :  { %v3822_v53 = vpop.xlane.xlu0 %3821 }
0x15e9   :  { %5287 = vrcp.f32 %v3822_v53 }
0x15ea   :  { %v5276_v51 = vpop.eup %5275 }
0x15eb   :  { %v3435_v54 = vmul.f32 %v5276_v51, %v5264_v47  ;;  %v5278_v60 = vpop.eup %5277 }
0x15ec   :  { %v3571_v26 = vmul.f32 %v5278_v60, %v6273_v32  ;;  %v4041_v32 = vld [vmem:[%s6400_s12 + $0x10] sm:$0xff] }
0x15ed   :  { %5011 = vmatprep.mubr.msk.f32.mxu1 %vm288_vm4, %v3435_v54 }
0x15ee   :  { %5012 = vmatmul.mubr.msk.f32.vlgmr.msra.gmra.mxu1 %vm288_vm4, %v3436_v58  ;;  %v5280_v52 = vpop.eup %5279 }
0x15ef   :  { %5022 = vmatpush3.msra.mxu1 %v6236_v4  ;;  %v3570_v41 = vmul.f32 %v5280_v52, %v5266_v31  ;;  %v5282_v62 = vpop.eup %5281 }
0x15f0   :  { %5023 = vmatprep.subr.mxu1 %v3701_v7  ;;  %v3700_v56 = vmul.f32 %v5282_v62, %v5262_v15 }
0x15f1   :  { %5024 = vmatpush3.msra.mxu1 %v3701_v7  ;;  %5018 = vmatprep.mubr.msk.f32.mxu0 %vm288_vm4, %v3570_v41 }
0x15f2   :  { %v5284_v33 = vpop.eup %5283  ;;  %5019 = vmatmul.mubr.msk.f32.vlgmr.msra.gmra.mxu0 %vm288_vm4, %v3571_v26  ;;  %5035 = vmatprep.subr.mxu1 %v5318_v10 }
0x15f3   :  { %v3699_v20 = vmul.f32 %v5284_v33, %v5270_v36  ;;  %5029 = vmatpush3.msra.mxu0 %v6239_v63  ;;  %v5286_v38 = vpop.eup %5285  ;;  %v4052_v63 = vld [vmem:[%s6400_s12 + $0x68] sm:$0xff] }
0x15f4   :  { %5030 = vmatprep.subr.mxu0 %v3830_v25  ;;  %v3829_v1 = vmul.f32 %v5286_v38, %v5268_v34 }
0x15f5   :  { %5025 = vmatprep.mubr.msk.f32.mxu1 %vm288_vm4, %v3699_v20  ;;  %5031 = vmatpush3.msra.mxu0 %v3830_v25 }
0x15f6   :  { %v5288_v4 = vpop.eup %5287  ;;  %5026 = vmatmul.mubr.msk.f32.vlgmr.msra.gmra.mxu1 %vm288_vm4, %v3700_v56  ;;  %5042 = vmatprep.subr.mxu0 %v5318_v10 }
0x15f7   :  { %v3828_v50 = vmul.f32 %v5288_v4, %v5272_v42  ;;  %5039 = vmatprep.mubr.msk.f32.mxu1 %vm5319_vm14, %v5318_v10  ;;  %v4305_v4 = vld [vmem:[%s6398_s10 + $0x3] ss:$0 sm:$0xff] }
0x15f9   :  { %5032 = vmatprep.mubr.msk.f32.mxu0 %vm288_vm4, %v3828_v50 }
0x15fa   :  { %5033 = vmatmul.mubr.msk.f32.vlgmr.msra.gmra.mxu0 %vm288_vm4, %v3829_v1 }
0x15fb   :  { %5074 = vmatprep.mubr.msk.f32.mxu0 %vm5319_vm14, %v5318_v10  ;;  %5043 = vmatpush3.msra.mxu0 %v4054_v27  ;;  %v4307_v27 = vld [vmem:[%s6399_s11 + $0x3] ss:$0 sm:$0xff] }
0x15fc   :  { %5044 = vmatprep.subr.mxu0 %v5318_v10 }
0x15fd   :  { %5045 = vmatpush3.msra.mxu0 %v4053_v61 }
0x15fe   :  { %5046 = vmatprep.subr.mxu0 %v5318_v10 }
0x15ff   :  { %5047 = vmatpush3.msra.mxu0 %v4052_v63 }
0x1600   :  { %5048 = vmatprep.subr.mxu0 %v5318_v10 }
0x1601   :  { %5049 = vmatpush3.msra.mxu0 %v4051_v2 }
0x1602   :  { %5050 = vmatprep.subr.mxu0 %v5318_v10 }
0x1603   :  { %5051 = vmatpush3.msra.mxu0 %v4050_v18 }
0x1604   :  { %5052 = vmatprep.subr.mxu0 %v5318_v10 }
0x1605   :  { %5053 = vmatpush3.msra.mxu0 %v4049_v19  ;;  %v3965_v19 = vld [vmem:[%s6390_s2] sm:$0x3]  ;;  %s5291_s2 = scalar_lea.vmem %s4141_s4, 32 }
0x1606   :  { %5054 = vmatprep.subr.mxu0 %v5318_v10  ;;  %p5292_p0 = scmp.ne.s32.totalorder %s4141_s4, %s5291_s2  ;;  %p5297_p2 = scmp.lt.s32.totalorder %s5291_s2, %s5291_s2 }
0x1607   :  { %5055 = vmatpush3.msra.mxu0 %v4048_v30  ;;  %v4039_v30 = vld [vmem:[%s6400_s12] sm:$0xff] }
0x1608   :  { %5056 = vmatprep.subr.mxu0 %v5318_v10  ;;  %p5298_p3 = por %p5297_p2, %p5296_p1 }
0x1609   :  { %5057 = vmatpush3.msra.mxu0 %v4047_v6 }
0x160a   :  { %5058 = vmatprep.subr.mxu0 %v5318_v10  ;;  %p5299_p4 = pnand %p5298_p3, %p5292_p0 }
0x160b   :  { %5059 = vmatpush3.msra.mxu0 %v4046_v59 }
0x160c   :  { %5060 = vmatprep.subr.mxu0 %v5318_v10 }
0x160d   :  { %5061 = vmatpush3.msra.mxu0 %v4045_v39  ;;  %v4309_v39 = vld [vmem:[%s6401_s13] ss:$0 sm:$0xff] }
0x160e   :  { %5062 = vmatprep.subr.mxu0 %v5318_v10 }
0x160f   :  { %5063 = vmatpush3.msra.mxu0 %v4044_v29 }
0x1610   :  { %5064 = vmatprep.subr.mxu0 %v5318_v10 }
0x1611   :  { %5065 = vmatpush3.msra.mxu0 %v4043_v3 }
0x1612   :  { %5066 = vmatprep.subr.mxu0 %v5318_v10 }
0x1613   :  { %5067 = vmatpush3.msra.mxu0 %v4042_v40 }
0x1614   :  { %5068 = vmatprep.subr.mxu0 %v5318_v10 }
0x1615   :  { %5069 = vmatpush3.msra.mxu0 %v4041_v32 }
0x1616   :  { %5070 = vmatprep.subr.mxu0 %v5318_v10 }
0x1617   :  { %5071 = vmatpush3.msra.mxu0 %v4040_v9 }
0x1618   :  { %5072 = vmatprep.subr.mxu0 %v5318_v10 }
0x1619   :  { %5073 = vmatpush3.msra.mxu0 %v4039_v30 }
0x16ae   :  { %v5013_v11 = vpop.f32.mrf.mxu1 }
0x16af   :  { %v3527_v21 = vadd.f32 %v5013_v11, %v4297_v13 }
0x16b0   :  { %v3511_v14 = vpop.f32.mrf.mxu1 }
0x16b1   :  { %v3526_v28 = vadd.f32 %v4297_v13, %v3511_v14 }
0x16b2   :  { %v5020_v17 = vpop.f32.mrf.mxu0 }
0x16b3   :  { %v3656_v15 = vadd.f32 %v5020_v17, %v3527_v21 }
0x16b4   :  { %v3646_v0 = vpop.f32.mrf.mxu0 }
0x16b5   :  { %v3655_v47 = vadd.f32 %v3646_v0, %v3526_v28 }
0x16b6   :  { %v5027_v23 = vpop.f32.mrf.mxu1 }
0x16b7   :  { %v3785_v12 = vadd.f32 %v5027_v23, %v3656_v15 }
0x16b8   :  { %v3775_v22 = vpop.f32.mrf.mxu1 }
0x16b9   :  { %v3784_v34 = vadd.f32 %v3775_v22, %v3655_v47 }
0x16ba   :  { %v5034_v31 = vpop.f32.mrf.mxu0 }
0x16bb   :  { %v3914_v46 = vadd.f32 %v5034_v31, %v3785_v12 }
0x16bc   :  { %v3904_v8 = vpop.f32.mrf.mxu0 }
0x16bd   :  { %v3916_v36 = vmax.f32 %v3914_v46, 0.0  ;;  %v3913_v35 = vadd.f32 %v3904_v8, %v3784_v34 }
0x16bf   :  { %v3918_v42 = vadd.f32 %v3916_v36, %v6219_v57  ;;  %v3915_v5 = vmax.f32 %v3913_v35, 0.0 }
0x16c1   :  { %v3917_v24 = vadd.f32 %v3915_v5, %v6217_v55  ;;  %v3920_v43 = vmax.f32 %v3918_v42, 0.0 }
0x16c3   :  { %v3919_v44 = vmax.f32 %v3917_v24, 0.0 }
0x16c5   :  { %v3921_v37 = vadd.f32 %v3920_v43, %v3919_v44 }
0x16c7   :  { %v3922_v45 = vrot.slane %v3921_v37, 4 }
0x16c9   :  { %v3923_v48 = vadd.f32 %v3922_v45, %v3921_v37 }
0x16cb   :  { %v3924_v49 = vrot.slane %v3923_v48, 2 }
0x16cd   :  { %v3925_v53 = vadd.f32 %v3924_v49, %v3923_v48 }
0x16cf   :  { %v3926_v16 = vrot.slane %v3925_v53, 1 }
0x16d1   :  { %v3927_v51 = vadd.f32 %v3926_v16, %v3925_v53 }
0x16d3   :  { %v3928_v54 = vmul.f32 0.0625, %v3927_v51 }
0x16d5   :  { %v3929_v58 = vsub.f32 %v3919_v44, %v3928_v54  ;;  %v3930_v60 = vsub.f32 %v3920_v43, %v3928_v54 }
0x16d7   :  { %v3931_v7 = vmul.f32 %v3929_v58, %v3929_v58  ;;  %v3932_v52 = vmul.f32 %v3930_v60, %v3930_v60 }
0x16d9   :  { %v3933_v41 = vadd.f32 %v3932_v52, %v3931_v7 }
0x16db   :  { %v3934_v62 = vrot.slane %v3933_v41, 4 }
0x16dd   :  { %v3935_v57 = vadd.f32 %v3934_v62, %v3933_v41 }
0x16df   :  { %v3936_v26 = vrot.slane %v3935_v57, 2 }
0x16e1   :  { %v3937_v33 = vadd.f32 %v3936_v26, %v3935_v57 }
0x16e3   :  { %v3938_v55 = vrot.slane %v3937_v33, 1 }
0x16e5   :  { %v3939_v25 = vadd.f32 %v3938_v55, %v3937_v33 }
0x16e7   :  { %v3940_v20 = vmul.f32 0.0625, %v3939_v25 }
0x16e9   :  { %v3941_v56 = vadd.f32 1e-05, %v3940_v20 }
0x16eb   :  { %5289 = vrsqrt.f32 %v3941_v56 }
0x16f8   :  { %v5290_v38 = vpop.eup %5289 }
0x16f9   :  { %v3943_v50 = vmul.f32 %v5290_v38, %v3929_v58  ;;  %v3944_v1 = vmul.f32 %v5290_v38, %v3930_v60 }
0x16fb   :  { %v3954_v61 = vmul.f32 %v4305_v4, %v3944_v1  ;;  %v3953_v63 = vmul.f32 %v4305_v4, %v3943_v50 }
0x16fd   :  { %v3964_v2 = vadd.f32 %v4307_v27, %v3954_v61  ;;  %v3963_v18 = vadd.f32 %v4307_v27, %v3953_v63 }
0x16ff   :  { %5036 = vmatpush3.msra.mxu1 %v3964_v2 }
0x1700   :  { %5037 = vmatprep.subr.mxu1 %v5318_v10 }
0x1701   :  { %5038 = vmatpush3.msra.mxu1 %v3963_v18 }
0x1702   :  { %5040 = vmatmul.mubr.msk.f32.vlgmr.msra.gmra.mxu1 %vm288_vm4, %v3965_v19 }
0x17c2   :  { %v4035_v6 = vpop.f32.mrf.mxu1 }
0x17c3   :  { %5075 = vmatmul.mubr.f32.vlgmr.msra.gmra.mxu0 %v4035_v6 }
0x17c4   :  { %v5041_v59 = vpop.f32.mrf.mxu1 }
0x1883   :  { %v4128_v29 = vpop.f32.mrf.mxu0 }
0x1884   :  { %v4129_v10 = vadd.f32 %v4309_v39, %v4128_v29 }
0x1885   :  { %v5076_v3 = vpop.f32.mrf.mxu0 }
0x1886   :  { %4133 = vst.msk [vmem:[#allocation2] sm:$0x3] %vm4132_vm15, %v4129_v10 }
0x1887   :  { %5302 = shalt.err (!%p5299_p4)
}
0x1888   :  { %4143 = dma.vmem_to_hbm [thread:$0]  %s4141_s4, 32, %s6402_s14, [#allocation3]  }
0x1889   :  { %5311 = dma.done.wait [#allocation3], 32  }
0x188a   :  { %5312 = vsyncadd [#allocation3], 4294967264 }
0x188b   :  { %4147 = vsyncpa [#allocation3], 1 }

</bundles_post_ra>
